<compile_context>
chip_gen: v5e
topology: v5e:2x2
jax: 0.10.0
libtpu: 0.0.40
codegen_flags: <defaults>
</compile_context>

<pallas_src>
import functools

import jax
import jax.numpy as jnp
from jax.experimental import pallas as pl
from jax.experimental.pallas import tpu as pltpu

COMPUTE_DTYPE = jnp.bfloat16  # MXU operand dtype; accumulation & elementwise stay f32


def _sal_seq_kernel(tok_ref, vlen_ref, wx_ref, ball_ref, wif_ref, wom_ref, wco_ref,
                    out_ref, gx_sc):
    """Whole sequence in one invocation. Gate packing order along 4H: [input, forget, output, memory]."""
    S, Bp, F = tok_ref.shape
    H = wco_ref.shape[0]
    G4 = 4 * H

    # --- hoisted input projection: one big MXU matmul over all timesteps,
    #     with ALL recurrent/peephole biases pre-folded into ball_ref ---
    x_all = tok_ref[...].reshape(S * Bp, F)                                   # bf16
    gx_all = jnp.dot(x_all, wx_ref[...], preferred_element_type=jnp.float32)  # f32
    gx_sc[...] = (gx_all + ball_ref[...]).reshape(S, Bp, G4)

    # loop-invariant loads (hoisted out of the recurrence)
    vlen = vlen_ref[...]                                           # (Bp, 1) int32
    w_if = wif_ref[...]                                            # (2H, 2H) bf16: [wh_i|wh_f ; wc_i|wc_f]
    w_om = wom_ref[...]                                            # (H, 2H)  bf16: [wh_o|wh_m]
    wco = wco_ref[...]                                             # (H, H)   bf16
    cdt = w_if.dtype

    def step(t, carry):
        h, c, acc = carry                                          # all (Bp, H) f32
        gx = gx_sc[t]                                              # (Bp, 4H) f32, biases included

        # i/f gates: fused [h, c_old] @ W_if (one 2H-deep MXU pass on v6e/v7x)
        hc = jnp.concatenate([h, c], axis=1).astype(cdt)           # (Bp, 2H) bf16
        pre_if = gx[:, :2 * H] + jnp.dot(hc, w_if, preferred_element_type=jnp.float32)
        # o/m gates: h only (no old-c peephole rows -> 25% fewer weight rows streamed)
        pre_om = gx[:, 2 * H:] + jnp.dot(h.astype(cdt), w_om,
                                         preferred_element_type=jnp.float32)

        i_g = jax.nn.sigmoid(pre_if[:, 0:H])
        f_g = jax.nn.sigmoid(pre_if[:, H:2 * H])
        g_g = jnp.tanh(pre_om[:, H:2 * H])
        next_c = f_g * c + i_g * g_g

        # peephole on the NEW cell for the output gate (its bias is already folded into gx)
        gco = jnp.dot(next_c.astype(cdt), wco, preferred_element_type=jnp.float32)
        o_g = jax.nn.sigmoid(pre_om[:, 0:H] + gco)
        new_h = o_g * next_c                                       # (no tanh; matches G_LSTM)

        # crop_seq: keep hidden state at step valid_len-1 per batch row
        acc = jnp.where(vlen == (t + 1), new_h, acc)
        return new_h, next_c, acc

    zero = jnp.zeros((Bp, H), jnp.float32)
    # S is small here (8); full unroll keeps LLO scheduling visibility.
    # Switch to a bounded partial unroll (e.g. 4) once seq_len grows beyond ~16.
    _, _, acc = jax.lax.fori_loop(0, S, step, (zero, zero, zero), unroll=True)
    out_ref[...] = acc


def sal_seq_pallas(feat, fixation, duration, valid_len, params, *, im_size, seq_len):
    """feat: (B, F, h, w) backend feature map. fixation: (B, S, 2) pixel coords.
    duration: (B, S) (unused: mask=False, joint=False). valid_len: (B,) ints."""
    del duration
    B, F, fh, fw = feat.shape
    H_im, W_im = im_size
    H = params["wco"].shape[0]
    S = seq_len

    # --- get_fix_tokens (gather; JAX glue) ---
    row = (fixation[:, :, 0] * (fh - 1) / H_im).astype(jnp.int32)
    col = (fixation[:, :, 1] * (fw - 1) / W_im).astype(jnp.int32)
    idx = row * fw + col                                           # (B, S)
    flat = feat.reshape(B, F, fh * fw)
    idx_b = jnp.broadcast_to(idx[:, None, :], (B, F, S))
    tokens = jnp.take_along_axis(flat, idx_b, axis=2)              # (B, F, S)
    tokens = jnp.transpose(tokens, (2, 0, 1))                      # (S, B, F)

    # pad batch to the f32 sublane granule so every vreg/store is full-width
    Bp = max(8, -(-B // 8) * 8)
    tokens = jnp.pad(tokens, ((0, 0), (0, Bp - B), (0, 0))).astype(COMPUTE_DTYPE)
    vlen = jnp.pad(valid_len.astype(jnp.int32), (0, Bp - B)).reshape(Bp, 1)

    wx = params["wx"].astype(COMPUTE_DTYPE)
    w_if = params["w_if"].astype(COMPUTE_DTYPE)
    w_om = params["w_om"].astype(COMPUTE_DTYPE)
    wco = params["wco"].astype(COMPUTE_DTYPE)
    b_all = params["b_all"]                                        # (1, 4H) f32, all biases folded

    # Single-buffered whole-array VMEM residents: no grid -> no pipeline -> no
    # double-buffering of tokens / weights.
    vmem = pl.BlockSpec(memory_space=pltpu.MemorySpace.VMEM)

    acc = pl.pallas_call(
        _sal_seq_kernel,
        out_shape=jax.ShapeDtypeStruct((Bp, H), jnp.float32),
        in_specs=[vmem] * 7,
        out_specs=vmem,
        scratch_shapes=[
            pltpu.VMEM((S, Bp, 4 * H), jnp.float32),   # precomputed input-gate activations
        ],
    )(tokens, vlen, wx, b_all, w_if, w_om, wco)

    # decoder Linear(H, 1) + sigmoid on the lane-dense accumulator (tiny; avoids a
    # 1-column MXU matmul + masked partial store inside the kernel).
    return jax.nn.sigmoid(acc[:B] @ params["wd"] + params["bd"])


# ---------------------------------------------------------------------------
# Parameter construction (per-gate, torch-Linear-style) and packing.
# Weights stored as (in, out) so y = x @ W + b matches torch's x @ W.T + b.
# ---------------------------------------------------------------------------
def make_raw_params(key, input_size, hidden_size):
    H = hidden_size
    spec = {
        "wx_i": (input_size, H), "wx_f": (input_size, H),
        "wx_o": (input_size, H), "wx_m": (input_size, H),
        "wh_i": (H, H), "wh_f": (H, H), "wh_o": (H, H), "wh_m": (H, H),
        "wc_i": (H, H), "wc_f": (H, H), "wc_o": (H, H),
        "bx_i": (H,), "bx_f": (H,), "bx_o": (H,), "bx_m": (H,),
        "bh_i": (H,), "bh_f": (H,), "bh_o": (H,), "bh_m": (H,),
        "bc_i": (H,), "bc_f": (H,), "bc_o": (H,),
        "wd": (H, 1), "bd": (1,),
    }
    keys = jax.random.split(key, len(spec))
    return {name: jax.random.normal(k, shape, jnp.float32) * 0.05
            for (name, shape), k in zip(spec.items(), keys)}


def pack_params(raw, hidden_size):
    """Pack per-gate weights into the fused layout used by the kernel.
    Output-axis gate order: [input, forget, output, memory]."""
    del hidden_size
    wx = jnp.concatenate([raw["wx_i"], raw["wx_f"], raw["wx_o"], raw["wx_m"]], axis=1)
    # ALL biases folded into the hoisted input projection (incl. o-gate peephole bias).
    b_all = jnp.concatenate([
        raw["bx_i"] + raw["bh_i"] + raw["bc_i"],
        raw["bx_f"] + raw["bh_f"] + raw["bc_f"],
        raw["bx_o"] + raw["bh_o"] + raw["bc_o"],
        raw["bx_m"] + raw["bh_m"],
    ])[None, :]                                                    # (1, 4H)
    # i/f gates: [h | c_old] contraction (old-c peephole rows included, no zero padding)
    w_if = jnp.concatenate([
        jnp.concatenate([raw["wh_i"], raw["wh_f"]], axis=1),
        jnp.concatenate([raw["wc_i"], raw["wc_f"]], axis=1),
    ], axis=0)                                                     # (2H, 2H)
    # o/m gates: h contraction only
    w_om = jnp.concatenate([raw["wh_o"], raw["wh_m"]], axis=1)     # (H, 2H)
    return {
        "wx": wx, "b_all": b_all,
        "w_if": w_if, "w_om": w_om,
        "wco": raw["wc_o"],
        "wd": raw["wd"], "bd": raw["bd"][None, :],
    }


def reference_forward(feat, fixation, duration, valid_len, raw, *, im_size, seq_len):
    """Pure-JAX reference mirroring the PyTorch forward (backend excluded).
    MXU operands are cast to COMPUTE_DTYPE exactly like the kernel path."""
    del duration
    B, F, fh, fw = feat.shape
    H_im, W_im = im_size
    H = raw["wh_i"].shape[0]
    cd = COMPUTE_DTYPE

    row = (fixation[:, :, 0] * (fh - 1) / H_im).astype(jnp.int32)
    col = (fixation[:, :, 1] * (fw - 1) / W_im).astype(jnp.int32)
    idx = row * fw + col
    flat = feat.reshape(B, F, fh * fw)
    idx_b = jnp.broadcast_to(idx[:, None, :], (B, F, seq_len))
    tokens = jnp.take_along_axis(flat, idx_b, axis=2)              # (B, F, S)

    def lin(x, w, b):
        return jnp.dot(x.astype(cd), w.astype(cd),
                       preferred_element_type=jnp.float32) + b

    h = jnp.zeros((B, H), jnp.float32)
    c = jnp.zeros((B, H), jnp.float32)
    acc = jnp.zeros((B, H), jnp.float32)
    for t in range(seq_len):
        x = tokens[:, :, t]
        i = jax.nn.sigmoid(lin(x, raw["wx_i"], raw["bx_i"]) + lin(h, raw["wh_i"], raw["bh_i"])
                           + lin(c, raw["wc_i"], raw["bc_i"]))
        f = jax.nn.sigmoid(lin(x, raw["wx_f"], raw["bx_f"]) + lin(h, raw["wh_f"], raw["bh_f"])
                           + lin(c, raw["wc_f"], raw["bc_f"]))
        g = jnp.tanh(lin(x, raw["wx_m"], raw["bx_m"]) + lin(h, raw["wh_m"], raw["bh_m"]))
        nc = f * c + i * g
        o = jax.nn.sigmoid(lin(x, raw["wx_o"], raw["bx_o"]) + lin(h, raw["wh_o"], raw["bh_o"])
                           + lin(nc, raw["wc_o"], raw["bc_o"]))
        h = o * nc
        c = nc
        acc = jnp.where((valid_len == (t + 1))[:, None], h, acc)
    return jax.nn.sigmoid(acc @ raw["wd"] + raw["bd"][None, :])


if __name__ == "__main__":
    # Small config consistent with the module (feature channels / hidden kept
    # lane-aligned: small analogs of input_size=2048/512, hidden_size=512).
    B = 2            # batch
    FEAT = 128       # backend feature channels (input_size)
    FH = FW = 4      # backend feature-map spatial size
    SEQ = 8          # seq_len
    HID = 128        # hidden_size (128 keeps gate slices 128-lane aligned)
    IM = (16, 16)    # im_size (H, W) in pixels

    key = jax.random.PRNGKey(0)
    k_feat, k_fix, k_dur, k_par = jax.random.split(key, 4)

    feat = jax.random.normal(k_feat, (B, FEAT, FH, FW), jnp.float32)
    fixation = jax.random.uniform(k_fix, (B, SEQ, 2), jnp.float32,
                                  minval=0.0, maxval=float(min(IM)) - 1.0)
    duration = jax.random.uniform(k_dur, (B, SEQ), jnp.float32)    # unused (mask/joint False)
    valid_len = jnp.array([SEQ, SEQ - 3], dtype=jnp.int32)

    raw = make_raw_params(k_par, FEAT, HID)
    params = pack_params(raw, HID)

    fwd = jax.jit(functools.partial(sal_seq_pallas, im_size=IM, seq_len=SEQ))
    out = jax.block_until_ready(fwd(feat, fixation, duration, valid_len, params))

    ref = reference_forward(feat, fixation, duration, valid_len, raw,
                            im_size=IM, seq_len=SEQ)
    assert out.shape == (B, 1)
    assert jnp.allclose(out, ref, atol=2e-3, rtol=2e-3), (out, ref)

    print("KERNEL_OK")
</pallas_src>

<mosaic_0001>
module attributes {stable_mosaic.version = 11 : i64} {
  func.func @_sal_seq_kernel(%arg0: memref<8x8x128xbf16, #tpu.memory_space<vmem>>, %arg1: memref<8x1xi32, #tpu.memory_space<vmem>>, %arg2: memref<128x512xbf16, #tpu.memory_space<vmem>>, %arg3: memref<1x512xf32, #tpu.memory_space<vmem>>, %arg4: memref<256x256xbf16, #tpu.memory_space<vmem>>, %arg5: memref<128x256xbf16, #tpu.memory_space<vmem>>, %arg6: memref<128x128xbf16, #tpu.memory_space<vmem>>, %arg7: memref<8x128xf32, #tpu.memory_space<vmem>>, %arg8: memref<8x8x512xf32, #tpu.memory_space<vmem>>) attributes {dimension_semantics = [], scalar_prefetch = 0 : i64, scratch_operands = 1 : i64, tpu.core_type = #tpu.core_type<tc>} {
    %c0 = arith.constant 0 : index
    %c0_0 = arith.constant 0 : index
    %c0_1 = arith.constant 0 : index
    %0 = vector.load %arg0[%c0, %c0_0, %c0_1] : memref<8x8x128xbf16, #tpu.memory_space<vmem>>, vector<8x8x128xbf16>
    %1 = vector.shape_cast %0 : vector<8x8x128xbf16> to vector<64x128xbf16>
    %c0_2 = arith.constant 0 : index
    %c0_3 = arith.constant 0 : index
    %2 = vector.load %arg2[%c0_2, %c0_3] : memref<128x512xbf16, #tpu.memory_space<vmem>>, vector<128x512xbf16>
    %cst = arith.constant dense<0.000000e+00> : vector<64x512xf32>
    %3 = tpu.matmul %1, %2, %cst {dimension_numbers = #tpu.dot_dimension_numbers<[1], [0], [0], [1], [0, 0, 1, 1], [], []>} : vector<64x128xbf16>, vector<128x512xbf16>, vector<64x512xf32> -> vector<64x512xf32>
    %c0_4 = arith.constant 0 : index
    %c0_5 = arith.constant 0 : index
    %4 = vector.load %arg3[%c0_4, %c0_5] : memref<1x512xf32, #tpu.memory_space<vmem>>, vector<1x512xf32>
    %5 = vector.broadcast %4 : vector<1x512xf32> to vector<64x512xf32>
    %6 = arith.addf %3, %5 : vector<64x512xf32>
    %7 = vector.shape_cast %6 : vector<64x512xf32> to vector<8x8x512xf32>
    %c0_6 = arith.constant 0 : index
    %c0_7 = arith.constant 0 : index
    %c0_8 = arith.constant 0 : index
    %8 = vector.load %arg8[%c0_6, %c0_7, %c0_8] : memref<8x8x512xf32, #tpu.memory_space<vmem>>, vector<8x8x512xf32>
    tpu.vector_store %arg8[%c0_6, %c0_7, %c0_8], %7 {strides = array<i32>} : memref<8x8x512xf32, #tpu.memory_space<vmem>>, vector<8x8x512xf32>,
    %c0_9 = arith.constant 0 : index
    %c0_10 = arith.constant 0 : index
    %9 = vector.load %arg1[%c0_9, %c0_10] : memref<8x1xi32, #tpu.memory_space<vmem>>, vector<8x1xi32>
    %c0_11 = arith.constant 0 : index
    %c0_12 = arith.constant 0 : index
    %10 = vector.load %arg4[%c0_11, %c0_12] : memref<256x256xbf16, #tpu.memory_space<vmem>>, vector<256x256xbf16>
    %c0_13 = arith.constant 0 : index
    %c0_14 = arith.constant 0 : index
    %11 = vector.load %arg5[%c0_13, %c0_14] : memref<128x256xbf16, #tpu.memory_space<vmem>>, vector<128x256xbf16>
    %c0_15 = arith.constant 0 : index
    %c0_16 = arith.constant 0 : index
    %12 = vector.load %arg6[%c0_15, %c0_16] : memref<128x128xbf16, #tpu.memory_space<vmem>>, vector<128x128xbf16>
    %cst_17 = arith.constant 0.000000e+00 : f32
    %13 = vector.broadcast %cst_17 : f32 to vector<8x128xf32>
    %c0_i32 = arith.constant 0 : i32
    %14 = arith.index_cast %c0_i32 : i32 to index
    %c0_18 = arith.constant 0 : index
    %c0_19 = arith.constant 0 : index
    %15 = vector.load %arg8[%14, %c0_18, %c0_19] : memref<8x8x512xf32, #tpu.memory_space<vmem>>, vector<1x8x512xf32>
    %16 = vector.shape_cast %15 : vector<1x8x512xf32> to vector<8x512xf32>
    %17 = tpu.concatenate %13, %13 in 1 : vector<8x128xf32>, vector<8x128xf32> -> vector<8x256xf32>
    %18 = arith.truncf %17 : vector<8x256xf32> to vector<8x256xbf16>
    %19 = vector.extract_strided_slice %16 {offsets = [0, 0], sizes = [8, 256], strides = [1, 1]} : vector<8x512xf32> to vector<8x256xf32>
    %cst_20 = arith.constant dense<0.000000e+00> : vector<8x256xf32>
    %20 = tpu.matmul %18, %10, %cst_20 {dimension_numbers = #tpu.dot_dimension_numbers<[1], [0], [0], [1], [0, 0, 1, 1], [], []>} : vector<8x256xbf16>, vector<256x256xbf16>, vector<8x256xf32> -> vector<8x256xf32>
    %21 = arith.addf %19, %20 : vector<8x256xf32>
    %22 = vector.extract_strided_slice %16 {offsets = [0, 256], sizes = [8, 256], strides = [1, 1]} : vector<8x512xf32> to vector<8x256xf32>
    %23 = arith.truncf %13 : vector<8x128xf32> to vector<8x128xbf16>
    %cst_21 = arith.constant dense<0.000000e+00> : vector<8x256xf32>
    %24 = tpu.matmul %23, %11, %cst_21 {dimension_numbers = #tpu.dot_dimension_numbers<[1], [0], [0], [1], [0, 0, 1, 1], [], []>} : vector<8x128xbf16>, vector<128x256xbf16>, vector<8x256xf32> -> vector<8x256xf32>
    %25 = arith.addf %22, %24 : vector<8x256xf32>
    %26 = vector.extract_strided_slice %21 {offsets = [0, 0], sizes = [8, 128], strides = [1, 1]} : vector<8x256xf32> to vector<8x128xf32>
    %27 = arith.negf %26 : vector<8x128xf32>
    %28 = math.exp %27 : vector<8x128xf32>
    %cst_22 = arith.constant 1.000000e+00 : f32
    %29 = vector.broadcast %cst_22 : f32 to vector<8x128xf32>
    %30 = arith.addf %29, %28 : vector<8x128xf32>
    %31 = arith.divf %29, %30 : vector<8x128xf32>
    %32 = vector.extract_strided_slice %21 {offsets = [0, 128], sizes = [8, 128], strides = [1, 1]} : vector<8x256xf32> to vector<8x128xf32>
    %33 = arith.negf %32 : vector<8x128xf32>
    %34 = math.exp %33 : vector<8x128xf32>
    %cst_23 = arith.constant 1.000000e+00 : f32
    %35 = vector.broadcast %cst_23 : f32 to vector<8x128xf32>
    %36 = arith.addf %35, %34 : vector<8x128xf32>
    %37 = arith.divf %35, %36 : vector<8x128xf32>
    %38 = vector.extract_strided_slice %25 {offsets = [0, 128], sizes = [8, 128], strides = [1, 1]} : vector<8x256xf32> to vector<8x128xf32>
    %39 = math.tanh %38 : vector<8x128xf32>
    %40 = arith.mulf %37, %13 : vector<8x128xf32>
    %41 = arith.mulf %31, %39 : vector<8x128xf32>
    %42 = arith.addf %40, %41 : vector<8x128xf32>
    %43 = arith.truncf %42 : vector<8x128xf32> to vector<8x128xbf16>
    %cst_24 = arith.constant dense<0.000000e+00> : vector<8x128xf32>
    %44 = tpu.matmul %43, %12, %cst_24 {dimension_numbers = #tpu.dot_dimension_numbers<[1], [0], [0], [1], [0, 0, 1, 1], [], []>} : vector<8x128xbf16>, vector<128x128xbf16>, vector<8x128xf32> -> vector<8x128xf32>
    %45 = vector.extract_strided_slice %25 {offsets = [0, 0], sizes = [8, 128], strides = [1, 1]} : vector<8x256xf32> to vector<8x128xf32>
    %46 = arith.addf %45, %44 : vector<8x128xf32>
    %47 = arith.negf %46 : vector<8x128xf32>
    %48 = math.exp %47 : vector<8x128xf32>
    %cst_25 = arith.constant 1.000000e+00 : f32
    %49 = vector.broadcast %cst_25 : f32 to vector<8x128xf32>
    %50 = arith.addf %49, %48 : vector<8x128xf32>
    %51 = arith.divf %49, %50 : vector<8x128xf32>
    %52 = arith.mulf %51, %42 : vector<8x128xf32>
    %c1_i32 = arith.constant 1 : i32
    %53 = arith.addi %c0_i32, %c1_i32 : i32
    %54 = vector.broadcast %53 : i32 to vector<8x1xi32>
    %55 = arith.cmpi eq, %9, %54 : vector<8x1xi32>
    %56 = vector.shape_cast %55 : vector<8x1xi1> to vector<8x1xi1>
    %57 = vector.broadcast %56 : vector<8x1xi1> to vector<8x128xi1>
    %58 = arith.select %57, %52, %13 : vector<8x128xi1>, vector<8x128xf32>
    %c1_i32_26 = arith.constant 1 : i32
    %59 = arith.index_cast %c1_i32_26 : i32 to index
    %c0_27 = arith.constant 0 : index
    %c0_28 = arith.constant 0 : index
    %60 = vector.load %arg8[%59, %c0_27, %c0_28] : memref<8x8x512xf32, #tpu.memory_space<vmem>>, vector<1x8x512xf32>
    %61 = vector.shape_cast %60 : vector<1x8x512xf32> to vector<8x512xf32>
    %62 = tpu.concatenate %52, %42 in 1 : vector<8x128xf32>, vector<8x128xf32> -> vector<8x256xf32>
    %63 = arith.truncf %62 : vector<8x256xf32> to vector<8x256xbf16>
    %64 = vector.extract_strided_slice %61 {offsets = [0, 0], sizes = [8, 256], strides = [1, 1]} : vector<8x512xf32> to vector<8x256xf32>
    %cst_29 = arith.constant dense<0.000000e+00> : vector<8x256xf32>
    %65 = tpu.matmul %63, %10, %cst_29 {dimension_numbers = #tpu.dot_dimension_numbers<[1], [0], [0], [1], [0, 0, 1, 1], [], []>} : vector<8x256xbf16>, vector<256x256xbf16>, vector<8x256xf32> -> vector<8x256xf32>
    %66 = arith.addf %64, %65 : vector<8x256xf32>
    %67 = vector.extract_strided_slice %61 {offsets = [0, 256], sizes = [8, 256], strides = [1, 1]} : vector<8x512xf32> to vector<8x256xf32>
    %68 = arith.truncf %52 : vector<8x128xf32> to vector<8x128xbf16>
    %cst_30 = arith.constant dense<0.000000e+00> : vector<8x256xf32>
    %69 = tpu.matmul %68, %11, %cst_30 {dimension_numbers = #tpu.dot_dimension_numbers<[1], [0], [0], [1], [0, 0, 1, 1], [], []>} : vector<8x128xbf16>, vector<128x256xbf16>, vector<8x256xf32> -> vector<8x256xf32>
    %70 = arith.addf %67, %69 : vector<8x256xf32>
    %71 = vector.extract_strided_slice %66 {offsets = [0, 0], sizes = [8, 128], strides = [1, 1]} : vector<8x256xf32> to vector<8x128xf32>
    %72 = arith.negf %71 : vector<8x128xf32>
    %73 = math.exp %72 : vector<8x128xf32>
    %cst_31 = arith.constant 1.000000e+00 : f32
    %74 = vector.broadcast %cst_31 : f32 to vector<8x128xf32>
    %75 = arith.addf %74, %73 : vector<8x128xf32>
    %76 = arith.divf %74, %75 : vector<8x128xf32>
    %77 = vector.extract_strided_slice %66 {offsets = [0, 128], sizes = [8, 128], strides = [1, 1]} : vector<8x256xf32> to vector<8x128xf32>
    %78 = arith.negf %77 : vector<8x128xf32>
    %79 = math.exp %78 : vector<8x128xf32>
    %cst_32 = arith.constant 1.000000e+00 : f32
    %80 = vector.broadcast %cst_32 : f32 to vector<8x128xf32>
    %81 = arith.addf %80, %79 : vector<8x128xf32>
    %82 = arith.divf %80, %81 : vector<8x128xf32>
    %83 = vector.extract_strided_slice %70 {offsets = [0, 128], sizes = [8, 128], strides = [1, 1]} : vector<8x256xf32> to vector<8x128xf32>
    %84 = math.tanh %83 : vector<8x128xf32>
    %85 = arith.mulf %82, %42 : vector<8x128xf32>
    %86 = arith.mulf %76, %84 : vector<8x128xf32>
    %87 = arith.addf %85, %86 : vector<8x128xf32>
    %88 = arith.truncf %87 : vector<8x128xf32> to vector<8x128xbf16>
    %cst_33 = arith.constant dense<0.000000e+00> : vector<8x128xf32>
    %89 = tpu.matmul %88, %12, %cst_33 {dimension_numbers = #tpu.dot_dimension_numbers<[1], [0], [0], [1], [0, 0, 1, 1], [], []>} : vector<8x128xbf16>, vector<128x128xbf16>, vector<8x128xf32> -> vector<8x128xf32>
    %90 = vector.extract_strided_slice %70 {offsets = [0, 0], sizes = [8, 128], strides = [1, 1]} : vector<8x256xf32> to vector<8x128xf32>
    %91 = arith.addf %90, %89 : vector<8x128xf32>
    %92 = arith.negf %91 : vector<8x128xf32>
    %93 = math.exp %92 : vector<8x128xf32>
    %cst_34 = arith.constant 1.000000e+00 : f32
    %94 = vector.broadcast %cst_34 : f32 to vector<8x128xf32>
    %95 = arith.addf %94, %93 : vector<8x128xf32>
    %96 = arith.divf %94, %95 : vector<8x128xf32>
    %97 = arith.mulf %96, %87 : vector<8x128xf32>
    %c1_i32_35 = arith.constant 1 : i32
    %98 = arith.addi %c1_i32_26, %c1_i32_35 : i32
    %99 = vector.broadcast %98 : i32 to vector<8x1xi32>
    %100 = arith.cmpi eq, %9, %99 : vector<8x1xi32>
    %101 = vector.shape_cast %100 : vector<8x1xi1> to vector<8x1xi1>
    %102 = vector.broadcast %101 : vector<8x1xi1> to vector<8x128xi1>
    %103 = arith.select %102, %97, %58 : vector<8x128xi1>, vector<8x128xf32>
    %c2_i32 = arith.constant 2 : i32
    %104 = arith.index_cast %c2_i32 : i32 to index
    %c0_36 = arith.constant 0 : index
    %c0_37 = arith.constant 0 : index
    %105 = vector.load %arg8[%104, %c0_36, %c0_37] : memref<8x8x512xf32, #tpu.memory_space<vmem>>, vector<1x8x512xf32>
    %106 = vector.shape_cast %105 : vector<1x8x512xf32> to vector<8x512xf32>
    %107 = tpu.concatenate %97, %87 in 1 : vector<8x128xf32>, vector<8x128xf32> -> vector<8x256xf32>
    %108 = arith.truncf %107 : vector<8x256xf32> to vector<8x256xbf16>
    %109 = vector.extract_strided_slice %106 {offsets = [0, 0], sizes = [8, 256], strides = [1, 1]} : vector<8x512xf32> to vector<8x256xf32>
    %cst_38 = arith.constant dense<0.000000e+00> : vector<8x256xf32>
    %110 = tpu.matmul %108, %10, %cst_38 {dimension_numbers = #tpu.dot_dimension_numbers<[1], [0], [0], [1], [0, 0, 1, 1], [], []>} : vector<8x256xbf16>, vector<256x256xbf16>, vector<8x256xf32> -> vector<8x256xf32>
    %111 = arith.addf %109, %110 : vector<8x256xf32>
    %112 = vector.extract_strided_slice %106 {offsets = [0, 256], sizes = [8, 256], strides = [1, 1]} : vector<8x512xf32> to vector<8x256xf32>
    %113 = arith.truncf %97 : vector<8x128xf32> to vector<8x128xbf16>
    %cst_39 = arith.constant dense<0.000000e+00> : vector<8x256xf32>
    %114 = tpu.matmul %113, %11, %cst_39 {dimension_numbers = #tpu.dot_dimension_numbers<[1], [0], [0], [1], [0, 0, 1, 1], [], []>} : vector<8x128xbf16>, vector<128x256xbf16>, vector<8x256xf32> -> vector<8x256xf32>
    %115 = arith.addf %112, %114 : vector<8x256xf32>
    %116 = vector.extract_strided_slice %111 {offsets = [0, 0], sizes = [8, 128], strides = [1, 1]} : vector<8x256xf32> to vector<8x128xf32>
    %117 = arith.negf %116 : vector<8x128xf32>
    %118 = math.exp %117 : vector<8x128xf32>
    %cst_40 = arith.constant 1.000000e+00 : f32
    %119 = vector.broadcast %cst_40 : f32 to vector<8x128xf32>
    %120 = arith.addf %119, %118 : vector<8x128xf32>
    %121 = arith.divf %119, %120 : vector<8x128xf32>
    %122 = vector.extract_strided_slice %111 {offsets = [0, 128], sizes = [8, 128], strides = [1, 1]} : vector<8x256xf32> to vector<8x128xf32>
    %123 = arith.negf %122 : vector<8x128xf32>
    %124 = math.exp %123 : vector<8x128xf32>
    %cst_41 = arith.constant 1.000000e+00 : f32
    %125 = vector.broadcast %cst_41 : f32 to vector<8x128xf32>
    %126 = arith.addf %125, %124 : vector<8x128xf32>
    %127 = arith.divf %125, %126 : vector<8x128xf32>
    %128 = vector.extract_strided_slice %115 {offsets = [0, 128], sizes = [8, 128], strides = [1, 1]} : vector<8x256xf32> to vector<8x128xf32>
    %129 = math.tanh %128 : vector<8x128xf32>
    %130 = arith.mulf %127, %87 : vector<8x128xf32>
    %131 = arith.mulf %121, %129 : vector<8x128xf32>
    %132 = arith.addf %130, %131 : vector<8x128xf32>
    %133 = arith.truncf %132 : vector<8x128xf32> to vector<8x128xbf16>
    %cst_42 = arith.constant dense<0.000000e+00> : vector<8x128xf32>
    %134 = tpu.matmul %133, %12, %cst_42 {dimension_numbers = #tpu.dot_dimension_numbers<[1], [0], [0], [1], [0, 0, 1, 1], [], []>} : vector<8x128xbf16>, vector<128x128xbf16>, vector<8x128xf32> -> vector<8x128xf32>
    %135 = vector.extract_strided_slice %115 {offsets = [0, 0], sizes = [8, 128], strides = [1, 1]} : vector<8x256xf32> to vector<8x128xf32>
    %136 = arith.addf %135, %134 : vector<8x128xf32>
    %137 = arith.negf %136 : vector<8x128xf32>
    %138 = math.exp %137 : vector<8x128xf32>
    %cst_43 = arith.constant 1.000000e+00 : f32
    %139 = vector.broadcast %cst_43 : f32 to vector<8x128xf32>
    %140 = arith.addf %139, %138 : vector<8x128xf32>
    %141 = arith.divf %139, %140 : vector<8x128xf32>
    %142 = arith.mulf %141, %132 : vector<8x128xf32>
    %c1_i32_44 = arith.constant 1 : i32
    %143 = arith.addi %c2_i32, %c1_i32_44 : i32
    %144 = vector.broadcast %143 : i32 to vector<8x1xi32>
    %145 = arith.cmpi eq, %9, %144 : vector<8x1xi32>
    %146 = vector.shape_cast %145 : vector<8x1xi1> to vector<8x1xi1>
    %147 = vector.broadcast %146 : vector<8x1xi1> to vector<8x128xi1>
    %148 = arith.select %147, %142, %103 : vector<8x128xi1>, vector<8x128xf32>
    %c3_i32 = arith.constant 3 : i32
    %149 = arith.index_cast %c3_i32 : i32 to index
    %c0_45 = arith.constant 0 : index
    %c0_46 = arith.constant 0 : index
    %150 = vector.load %arg8[%149, %c0_45, %c0_46] : memref<8x8x512xf32, #tpu.memory_space<vmem>>, vector<1x8x512xf32>
    %151 = vector.shape_cast %150 : vector<1x8x512xf32> to vector<8x512xf32>
    %152 = tpu.concatenate %142, %132 in 1 : vector<8x128xf32>, vector<8x128xf32> -> vector<8x256xf32>
    %153 = arith.truncf %152 : vector<8x256xf32> to vector<8x256xbf16>
    %154 = vector.extract_strided_slice %151 {offsets = [0, 0], sizes = [8, 256], strides = [1, 1]} : vector<8x512xf32> to vector<8x256xf32>
    %cst_47 = arith.constant dense<0.000000e+00> : vector<8x256xf32>
    %155 = tpu.matmul %153, %10, %cst_47 {dimension_numbers = #tpu.dot_dimension_numbers<[1], [0], [0], [1], [0, 0, 1, 1], [], []>} : vector<8x256xbf16>, vector<256x256xbf16>, vector<8x256xf32> -> vector<8x256xf32>
    %156 = arith.addf %154, %155 : vector<8x256xf32>
    %157 = vector.extract_strided_slice %151 {offsets = [0, 256], sizes = [8, 256], strides = [1, 1]} : vector<8x512xf32> to vector<8x256xf32>
    %158 = arith.truncf %142 : vector<8x128xf32> to vector<8x128xbf16>
    %cst_48 = arith.constant dense<0.000000e+00> : vector<8x256xf32>
    %159 = tpu.matmul %158, %11, %cst_48 {dimension_numbers = #tpu.dot_dimension_numbers<[1], [0], [0], [1], [0, 0, 1, 1], [], []>} : vector<8x128xbf16>, vector<128x256xbf16>, vector<8x256xf32> -> vector<8x256xf32>
    %160 = arith.addf %157, %159 : vector<8x256xf32>
    %161 = vector.extract_strided_slice %156 {offsets = [0, 0], sizes = [8, 128], strides = [1, 1]} : vector<8x256xf32> to vector<8x128xf32>
    %162 = arith.negf %161 : vector<8x128xf32>
    %163 = math.exp %162 : vector<8x128xf32>
    %cst_49 = arith.constant 1.000000e+00 : f32
    %164 = vector.broadcast %cst_49 : f32 to vector<8x128xf32>
    %165 = arith.addf %164, %163 : vector<8x128xf32>
    %166 = arith.divf %164, %165 : vector<8x128xf32>
    %167 = vector.extract_strided_slice %156 {offsets = [0, 128], sizes = [8, 128], strides = [1, 1]} : vector<8x256xf32> to vector<8x128xf32>
    %168 = arith.negf %167 : vector<8x128xf32>
    %169 = math.exp %168 : vector<8x128xf32>
    %cst_50 = arith.constant 1.000000e+00 : f32
    %170 = vector.broadcast %cst_50 : f32 to vector<8x128xf32>
    %171 = arith.addf %170, %169 : vector<8x128xf32>
    %172 = arith.divf %170, %171 : vector<8x128xf32>
    %173 = vector.extract_strided_slice %160 {offsets = [0, 128], sizes = [8, 128], strides = [1, 1]} : vector<8x256xf32> to vector<8x128xf32>
    %174 = math.tanh %173 : vector<8x128xf32>
    %175 = arith.mulf %172, %132 : vector<8x128xf32>
    %176 = arith.mulf %166, %174 : vector<8x128xf32>
    %177 = arith.addf %175, %176 : vector<8x128xf32>
    %178 = arith.truncf %177 : vector<8x128xf32> to vector<8x128xbf16>
    %cst_51 = arith.constant dense<0.000000e+00> : vector<8x128xf32>
    %179 = tpu.matmul %178, %12, %cst_51 {dimension_numbers = #tpu.dot_dimension_numbers<[1], [0], [0], [1], [0, 0, 1, 1], [], []>} : vector<8x128xbf16>, vector<128x128xbf16>, vector<8x128xf32> -> vector<8x128xf32>
    %180 = vector.extract_strided_slice %160 {offsets = [0, 0], sizes = [8, 128], strides = [1, 1]} : vector<8x256xf32> to vector<8x128xf32>
    %181 = arith.addf %180, %179 : vector<8x128xf32>
    %182 = arith.negf %181 : vector<8x128xf32>
    %183 = math.exp %182 : vector<8x128xf32>
    %cst_52 = arith.constant 1.000000e+00 : f32
    %184 = vector.broadcast %cst_52 : f32 to vector<8x128xf32>
    %185 = arith.addf %184, %183 : vector<8x128xf32>
    %186 = arith.divf %184, %185 : vector<8x128xf32>
    %187 = arith.mulf %186, %177 : vector<8x128xf32>
    %c1_i32_53 = arith.constant 1 : i32
    %188 = arith.addi %c3_i32, %c1_i32_53 : i32
    %189 = vector.broadcast %188 : i32 to vector<8x1xi32>
    %190 = arith.cmpi eq, %9, %189 : vector<8x1xi32>
    %191 = vector.shape_cast %190 : vector<8x1xi1> to vector<8x1xi1>
    %192 = vector.broadcast %191 : vector<8x1xi1> to vector<8x128xi1>
    %193 = arith.select %192, %187, %148 : vector<8x128xi1>, vector<8x128xf32>
    %c4_i32 = arith.constant 4 : i32
    %194 = arith.index_cast %c4_i32 : i32 to index
    %c0_54 = arith.constant 0 : index
    %c0_55 = arith.constant 0 : index
    %195 = vector.load %arg8[%194, %c0_54, %c0_55] : memref<8x8x512xf32, #tpu.memory_space<vmem>>, vector<1x8x512xf32>
    %196 = vector.shape_cast %195 : vector<1x8x512xf32> to vector<8x512xf32>
    %197 = tpu.concatenate %187, %177 in 1 : vector<8x128xf32>, vector<8x128xf32> -> vector<8x256xf32>
    %198 = arith.truncf %197 : vector<8x256xf32> to vector<8x256xbf16>
    %199 = vector.extract_strided_slice %196 {offsets = [0, 0], sizes = [8, 256], strides = [1, 1]} : vector<8x512xf32> to vector<8x256xf32>
    %cst_56 = arith.constant dense<0.000000e+00> : vector<8x256xf32>
    %200 = tpu.matmul %198, %10, %cst_56 {dimension_numbers = #tpu.dot_dimension_numbers<[1], [0], [0], [1], [0, 0, 1, 1], [], []>} : vector<8x256xbf16>, vector<256x256xbf16>, vector<8x256xf32> -> vector<8x256xf32>
    %201 = arith.addf %199, %200 : vector<8x256xf32>
    %202 = vector.extract_strided_slice %196 {offsets = [0, 256], sizes = [8, 256], strides = [1, 1]} : vector<8x512xf32> to vector<8x256xf32>
    %203 = arith.truncf %187 : vector<8x128xf32> to vector<8x128xbf16>
    %cst_57 = arith.constant dense<0.000000e+00> : vector<8x256xf32>
    %204 = tpu.matmul %203, %11, %cst_57 {dimension_numbers = #tpu.dot_dimension_numbers<[1], [0], [0], [1], [0, 0, 1, 1], [], []>} : vector<8x128xbf16>, vector<128x256xbf16>, vector<8x256xf32> -> vector<8x256xf32>
    %205 = arith.addf %202, %204 : vector<8x256xf32>
    %206 = vector.extract_strided_slice %201 {offsets = [0, 0], sizes = [8, 128], strides = [1, 1]} : vector<8x256xf32> to vector<8x128xf32>
    %207 = arith.negf %206 : vector<8x128xf32>
    %208 = math.exp %207 : vector<8x128xf32>
    %cst_58 = arith.constant 1.000000e+00 : f32
    %209 = vector.broadcast %cst_58 : f32 to vector<8x128xf32>
    %210 = arith.addf %209, %208 : vector<8x128xf32>
    %211 = arith.divf %209, %210 : vector<8x128xf32>
    %212 = vector.extract_strided_slice %201 {offsets = [0, 128], sizes = [8, 128], strides = [1, 1]} : vector<8x256xf32> to vector<8x128xf32>
    %213 = arith.negf %212 : vector<8x128xf32>
    %214 = math.exp %213 : vector<8x128xf32>
    %cst_59 = arith.constant 1.000000e+00 : f32
    %215 = vector.broadcast %cst_59 : f32 to vector<8x128xf32>
    %216 = arith.addf %215, %214 : vector<8x128xf32>
    %217 = arith.divf %215, %216 : vector<8x128xf32>
    %218 = vector.extract_strided_slice %205 {offsets = [0, 128], sizes = [8, 128], strides = [1, 1]} : vector<8x256xf32> to vector<8x128xf32>
    %219 = math.tanh %218 : vector<8x128xf32>
    %220 = arith.mulf %217, %177 : vector<8x128xf32>
    %221 = arith.mulf %211, %219 : vector<8x128xf32>
    %222 = arith.addf %220, %221 : vector<8x128xf32>
    %223 = arith.truncf %222 : vector<8x128xf32> to vector<8x128xbf16>
    %cst_60 = arith.constant dense<0.000000e+00> : vector<8x128xf32>
    %224 = tpu.matmul %223, %12, %cst_60 {dimension_numbers = #tpu.dot_dimension_numbers<[1], [0], [0], [1], [0, 0, 1, 1], [], []>} : vector<8x128xbf16>, vector<128x128xbf16>, vector<8x128xf32> -> vector<8x128xf32>
    %225 = vector.extract_strided_slice %205 {offsets = [0, 0], sizes = [8, 128], strides = [1, 1]} : vector<8x256xf32> to vector<8x128xf32>
    %226 = arith.addf %225, %224 : vector<8x128xf32>
    %227 = arith.negf %226 : vector<8x128xf32>
    %228 = math.exp %227 : vector<8x128xf32>
    %cst_61 = arith.constant 1.000000e+00 : f32
    %229 = vector.broadcast %cst_61 : f32 to vector<8x128xf32>
    %230 = arith.addf %229, %228 : vector<8x128xf32>
    %231 = arith.divf %229, %230 : vector<8x128xf32>
    %232 = arith.mulf %231, %222 : vector<8x128xf32>
    %c1_i32_62 = arith.constant 1 : i32
    %233 = arith.addi %c4_i32, %c1_i32_62 : i32
    %234 = vector.broadcast %233 : i32 to vector<8x1xi32>
    %235 = arith.cmpi eq, %9, %234 : vector<8x1xi32>
    %236 = vector.shape_cast %235 : vector<8x1xi1> to vector<8x1xi1>
    %237 = vector.broadcast %236 : vector<8x1xi1> to vector<8x128xi1>
    %238 = arith.select %237, %232, %193 : vector<8x128xi1>, vector<8x128xf32>
    %c5_i32 = arith.constant 5 : i32
    %239 = arith.index_cast %c5_i32 : i32 to index
    %c0_63 = arith.constant 0 : index
    %c0_64 = arith.constant 0 : index
    %240 = vector.load %arg8[%239, %c0_63, %c0_64] : memref<8x8x512xf32, #tpu.memory_space<vmem>>, vector<1x8x512xf32>
    %241 = vector.shape_cast %240 : vector<1x8x512xf32> to vector<8x512xf32>
    %242 = tpu.concatenate %232, %222 in 1 : vector<8x128xf32>, vector<8x128xf32> -> vector<8x256xf32>
    %243 = arith.truncf %242 : vector<8x256xf32> to vector<8x256xbf16>
    %244 = vector.extract_strided_slice %241 {offsets = [0, 0], sizes = [8, 256], strides = [1, 1]} : vector<8x512xf32> to vector<8x256xf32>
    %cst_65 = arith.constant dense<0.000000e+00> : vector<8x256xf32>
    %245 = tpu.matmul %243, %10, %cst_65 {dimension_numbers = #tpu.dot_dimension_numbers<[1], [0], [0], [1], [0, 0, 1, 1], [], []>} : vector<8x256xbf16>, vector<256x256xbf16>, vector<8x256xf32> -> vector<8x256xf32>
    %246 = arith.addf %244, %245 : vector<8x256xf32>
    %247 = vector.extract_strided_slice %241 {offsets = [0, 256], sizes = [8, 256], strides = [1, 1]} : vector<8x512xf32> to vector<8x256xf32>
    %248 = arith.truncf %232 : vector<8x128xf32> to vector<8x128xbf16>
    %cst_66 = arith.constant dense<0.000000e+00> : vector<8x256xf32>
    %249 = tpu.matmul %248, %11, %cst_66 {dimension_numbers = #tpu.dot_dimension_numbers<[1], [0], [0], [1], [0, 0, 1, 1], [], []>} : vector<8x128xbf16>, vector<128x256xbf16>, vector<8x256xf32> -> vector<8x256xf32>
    %250 = arith.addf %247, %249 : vector<8x256xf32>
    %251 = vector.extract_strided_slice %246 {offsets = [0, 0], sizes = [8, 128], strides = [1, 1]} : vector<8x256xf32> to vector<8x128xf32>
    %252 = arith.negf %251 : vector<8x128xf32>
    %253 = math.exp %252 : vector<8x128xf32>
    %cst_67 = arith.constant 1.000000e+00 : f32
    %254 = vector.broadcast %cst_67 : f32 to vector<8x128xf32>
    %255 = arith.addf %254, %253 : vector<8x128xf32>
    %256 = arith.divf %254, %255 : vector<8x128xf32>
    %257 = vector.extract_strided_slice %246 {offsets = [0, 128], sizes = [8, 128], strides = [1, 1]} : vector<8x256xf32> to vector<8x128xf32>
    %258 = arith.negf %257 : vector<8x128xf32>
    %259 = math.exp %258 : vector<8x128xf32>
    %cst_68 = arith.constant 1.000000e+00 : f32
    %260 = vector.broadcast %cst_68 : f32 to vector<8x128xf32>
    %261 = arith.addf %260, %259 : vector<8x128xf32>
    %262 = arith.divf %260, %261 : vector<8x128xf32>
    %263 = vector.extract_strided_slice %250 {offsets = [0, 128], sizes = [8, 128], strides = [1, 1]} : vector<8x256xf32> to vector<8x128xf32>
    %264 = math.tanh %263 : vector<8x128xf32>
    %265 = arith.mulf %262, %222 : vector<8x128xf32>
    %266 = arith.mulf %256, %264 : vector<8x128xf32>
    %267 = arith.addf %265, %266 : vector<8x128xf32>
    %268 = arith.truncf %267 : vector<8x128xf32> to vector<8x128xbf16>
    %cst_69 = arith.constant dense<0.000000e+00> : vector<8x128xf32>
    %269 = tpu.matmul %268, %12, %cst_69 {dimension_numbers = #tpu.dot_dimension_numbers<[1], [0], [0], [1], [0, 0, 1, 1], [], []>} : vector<8x128xbf16>, vector<128x128xbf16>, vector<8x128xf32> -> vector<8x128xf32>
    %270 = vector.extract_strided_slice %250 {offsets = [0, 0], sizes = [8, 128], strides = [1, 1]} : vector<8x256xf32> to vector<8x128xf32>
    %271 = arith.addf %270, %269 : vector<8x128xf32>
    %272 = arith.negf %271 : vector<8x128xf32>
    %273 = math.exp %272 : vector<8x128xf32>
    %cst_70 = arith.constant 1.000000e+00 : f32
    %274 = vector.broadcast %cst_70 : f32 to vector<8x128xf32>
    %275 = arith.addf %274, %273 : vector<8x128xf32>
    %276 = arith.divf %274, %275 : vector<8x128xf32>
    %277 = arith.mulf %276, %267 : vector<8x128xf32>
    %c1_i32_71 = arith.constant 1 : i32
    %278 = arith.addi %c5_i32, %c1_i32_71 : i32
    %279 = vector.broadcast %278 : i32 to vector<8x1xi32>
    %280 = arith.cmpi eq, %9, %279 : vector<8x1xi32>
    %281 = vector.shape_cast %280 : vector<8x1xi1> to vector<8x1xi1>
    %282 = vector.broadcast %281 : vector<8x1xi1> to vector<8x128xi1>
    %283 = arith.select %282, %277, %238 : vector<8x128xi1>, vector<8x128xf32>
    %c6_i32 = arith.constant 6 : i32
    %284 = arith.index_cast %c6_i32 : i32 to index
    %c0_72 = arith.constant 0 : index
    %c0_73 = arith.constant 0 : index
    %285 = vector.load %arg8[%284, %c0_72, %c0_73] : memref<8x8x512xf32, #tpu.memory_space<vmem>>, vector<1x8x512xf32>
    %286 = vector.shape_cast %285 : vector<1x8x512xf32> to vector<8x512xf32>
    %287 = tpu.concatenate %277, %267 in 1 : vector<8x128xf32>, vector<8x128xf32> -> vector<8x256xf32>
    %288 = arith.truncf %287 : vector<8x256xf32> to vector<8x256xbf16>
    %289 = vector.extract_strided_slice %286 {offsets = [0, 0], sizes = [8, 256], strides = [1, 1]} : vector<8x512xf32> to vector<8x256xf32>
    %cst_74 = arith.constant dense<0.000000e+00> : vector<8x256xf32>
    %290 = tpu.matmul %288, %10, %cst_74 {dimension_numbers = #tpu.dot_dimension_numbers<[1], [0], [0], [1], [0, 0, 1, 1], [], []>} : vector<8x256xbf16>, vector<256x256xbf16>, vector<8x256xf32> -> vector<8x256xf32>
    %291 = arith.addf %289, %290 : vector<8x256xf32>
    %292 = vector.extract_strided_slice %286 {offsets = [0, 256], sizes = [8, 256], strides = [1, 1]} : vector<8x512xf32> to vector<8x256xf32>
    %293 = arith.truncf %277 : vector<8x128xf32> to vector<8x128xbf16>
    %cst_75 = arith.constant dense<0.000000e+00> : vector<8x256xf32>
    %294 = tpu.matmul %293, %11, %cst_75 {dimension_numbers = #tpu.dot_dimension_numbers<[1], [0], [0], [1], [0, 0, 1, 1], [], []>} : vector<8x128xbf16>, vector<128x256xbf16>, vector<8x256xf32> -> vector<8x256xf32>
    %295 = arith.addf %292, %294 : vector<8x256xf32>
    %296 = vector.extract_strided_slice %291 {offsets = [0, 0], sizes = [8, 128], strides = [1, 1]} : vector<8x256xf32> to vector<8x128xf32>
    %297 = arith.negf %296 : vector<8x128xf32>
    %298 = math.exp %297 : vector<8x128xf32>
    %cst_76 = arith.constant 1.000000e+00 : f32
    %299 = vector.broadcast %cst_76 : f32 to vector<8x128xf32>
    %300 = arith.addf %299, %298 : vector<8x128xf32>
    %301 = arith.divf %299, %300 : vector<8x128xf32>
    %302 = vector.extract_strided_slice %291 {offsets = [0, 128], sizes = [8, 128], strides = [1, 1]} : vector<8x256xf32> to vector<8x128xf32>
    %303 = arith.negf %302 : vector<8x128xf32>
    %304 = math.exp %303 : vector<8x128xf32>
    %cst_77 = arith.constant 1.000000e+00 : f32
    %305 = vector.broadcast %cst_77 : f32 to vector<8x128xf32>
    %306 = arith.addf %305, %304 : vector<8x128xf32>
    %307 = arith.divf %305, %306 : vector<8x128xf32>
    %308 = vector.extract_strided_slice %295 {offsets = [0, 128], sizes = [8, 128], strides = [1, 1]} : vector<8x256xf32> to vector<8x128xf32>
    %309 = math.tanh %308 : vector<8x128xf32>
    %310 = arith.mulf %307, %267 : vector<8x128xf32>
    %311 = arith.mulf %301, %309 : vector<8x128xf32>
    %312 = arith.addf %310, %311 : vector<8x128xf32>
    %313 = arith.truncf %312 : vector<8x128xf32> to vector<8x128xbf16>
    %cst_78 = arith.constant dense<0.000000e+00> : vector<8x128xf32>
    %314 = tpu.matmul %313, %12, %cst_78 {dimension_numbers = #tpu.dot_dimension_numbers<[1], [0], [0], [1], [0, 0, 1, 1], [], []>} : vector<8x128xbf16>, vector<128x128xbf16>, vector<8x128xf32> -> vector<8x128xf32>
    %315 = vector.extract_strided_slice %295 {offsets = [0, 0], sizes = [8, 128], strides = [1, 1]} : vector<8x256xf32> to vector<8x128xf32>
    %316 = arith.addf %315, %314 : vector<8x128xf32>
    %317 = arith.negf %316 : vector<8x128xf32>
    %318 = math.exp %317 : vector<8x128xf32>
    %cst_79 = arith.constant 1.000000e+00 : f32
    %319 = vector.broadcast %cst_79 : f32 to vector<8x128xf32>
    %320 = arith.addf %319, %318 : vector<8x128xf32>
    %321 = arith.divf %319, %320 : vector<8x128xf32>
    %322 = arith.mulf %321, %312 : vector<8x128xf32>
    %c1_i32_80 = arith.constant 1 : i32
    %323 = arith.addi %c6_i32, %c1_i32_80 : i32
    %324 = vector.broadcast %323 : i32 to vector<8x1xi32>
    %325 = arith.cmpi eq, %9, %324 : vector<8x1xi32>
    %326 = vector.shape_cast %325 : vector<8x1xi1> to vector<8x1xi1>
    %327 = vector.broadcast %326 : vector<8x1xi1> to vector<8x128xi1>
    %328 = arith.select %327, %322, %283 : vector<8x128xi1>, vector<8x128xf32>
    %c7_i32 = arith.constant 7 : i32
    %329 = arith.index_cast %c7_i32 : i32 to index
    %c0_81 = arith.constant 0 : index
    %c0_82 = arith.constant 0 : index
    %330 = vector.load %arg8[%329, %c0_81, %c0_82] : memref<8x8x512xf32, #tpu.memory_space<vmem>>, vector<1x8x512xf32>
    %331 = vector.shape_cast %330 : vector<1x8x512xf32> to vector<8x512xf32>
    %332 = tpu.concatenate %322, %312 in 1 : vector<8x128xf32>, vector<8x128xf32> -> vector<8x256xf32>
    %333 = arith.truncf %332 : vector<8x256xf32> to vector<8x256xbf16>
    %334 = vector.extract_strided_slice %331 {offsets = [0, 0], sizes = [8, 256], strides = [1, 1]} : vector<8x512xf32> to vector<8x256xf32>
    %cst_83 = arith.constant dense<0.000000e+00> : vector<8x256xf32>
    %335 = tpu.matmul %333, %10, %cst_83 {dimension_numbers = #tpu.dot_dimension_numbers<[1], [0], [0], [1], [0, 0, 1, 1], [], []>} : vector<8x256xbf16>, vector<256x256xbf16>, vector<8x256xf32> -> vector<8x256xf32>
    %336 = arith.addf %334, %335 : vector<8x256xf32>
    %337 = vector.extract_strided_slice %331 {offsets = [0, 256], sizes = [8, 256], strides = [1, 1]} : vector<8x512xf32> to vector<8x256xf32>
    %338 = arith.truncf %322 : vector<8x128xf32> to vector<8x128xbf16>
    %cst_84 = arith.constant dense<0.000000e+00> : vector<8x256xf32>
    %339 = tpu.matmul %338, %11, %cst_84 {dimension_numbers = #tpu.dot_dimension_numbers<[1], [0], [0], [1], [0, 0, 1, 1], [], []>} : vector<8x128xbf16>, vector<128x256xbf16>, vector<8x256xf32> -> vector<8x256xf32>
    %340 = arith.addf %337, %339 : vector<8x256xf32>
    %341 = vector.extract_strided_slice %336 {offsets = [0, 0], sizes = [8, 128], strides = [1, 1]} : vector<8x256xf32> to vector<8x128xf32>
    %342 = arith.negf %341 : vector<8x128xf32>
    %343 = math.exp %342 : vector<8x128xf32>
    %cst_85 = arith.constant 1.000000e+00 : f32
    %344 = vector.broadcast %cst_85 : f32 to vector<8x128xf32>
    %345 = arith.addf %344, %343 : vector<8x128xf32>
    %346 = arith.divf %344, %345 : vector<8x128xf32>
    %347 = vector.extract_strided_slice %336 {offsets = [0, 128], sizes = [8, 128], strides = [1, 1]} : vector<8x256xf32> to vector<8x128xf32>
    %348 = arith.negf %347 : vector<8x128xf32>
    %349 = math.exp %348 : vector<8x128xf32>
    %cst_86 = arith.constant 1.000000e+00 : f32
    %350 = vector.broadcast %cst_86 : f32 to vector<8x128xf32>
    %351 = arith.addf %350, %349 : vector<8x128xf32>
    %352 = arith.divf %350, %351 : vector<8x128xf32>
    %353 = vector.extract_strided_slice %340 {offsets = [0, 128], sizes = [8, 128], strides = [1, 1]} : vector<8x256xf32> to vector<8x128xf32>
    %354 = math.tanh %353 : vector<8x128xf32>
    %355 = arith.mulf %352, %312 : vector<8x128xf32>
    %356 = arith.mulf %346, %354 : vector<8x128xf32>
    %357 = arith.addf %355, %356 : vector<8x128xf32>
    %358 = arith.truncf %357 : vector<8x128xf32> to vector<8x128xbf16>
    %cst_87 = arith.constant dense<0.000000e+00> : vector<8x128xf32>
    %359 = tpu.matmul %358, %12, %cst_87 {dimension_numbers = #tpu.dot_dimension_numbers<[1], [0], [0], [1], [0, 0, 1, 1], [], []>} : vector<8x128xbf16>, vector<128x128xbf16>, vector<8x128xf32> -> vector<8x128xf32>
    %360 = vector.extract_strided_slice %340 {offsets = [0, 0], sizes = [8, 128], strides = [1, 1]} : vector<8x256xf32> to vector<8x128xf32>
    %361 = arith.addf %360, %359 : vector<8x128xf32>
    %362 = arith.negf %361 : vector<8x128xf32>
    %363 = math.exp %362 : vector<8x128xf32>
    %cst_88 = arith.constant 1.000000e+00 : f32
    %364 = vector.broadcast %cst_88 : f32 to vector<8x128xf32>
    %365 = arith.addf %364, %363 : vector<8x128xf32>
    %366 = arith.divf %364, %365 : vector<8x128xf32>
    %367 = arith.mulf %366, %357 : vector<8x128xf32>
    %c1_i32_89 = arith.constant 1 : i32
    %368 = arith.addi %c7_i32, %c1_i32_89 : i32
    %369 = vector.broadcast %368 : i32 to vector<8x1xi32>
    %370 = arith.cmpi eq, %9, %369 : vector<8x1xi32>
    %371 = vector.shape_cast %370 : vector<8x1xi1> to vector<8x1xi1>
    %372 = vector.broadcast %371 : vector<8x1xi1> to vector<8x128xi1>
    %373 = arith.select %372, %367, %328 : vector<8x128xi1>, vector<8x128xf32>
    %c8_i32 = arith.constant 8 : i32
    %c0_90 = arith.constant 0 : index
    %c0_91 = arith.constant 0 : index
    %374 = vector.load %arg7[%c0_90, %c0_91] : memref<8x128xf32, #tpu.memory_space<vmem>>, vector<8x128xf32>
    tpu.vector_store %arg7[%c0_90, %c0_91], %373 {strides = array<i32>} : memref<8x128xf32, #tpu.memory_space<vmem>>, vector<8x128xf32>,
    return
  }
}

</mosaic_0001>

<bundles_post_ra>
// kernel: sal_seq_pallas.1
= control target key start
LH: loop header
LB: loop body
LE: loop exit
PB: predicated region body
PF: predicated region fallthrough
CT: control target
= control target key end

     0   :  { %s4190_s2 = inlined_call_operand.vmem [shape: bf16[128,512], index: 2, kind: input, shape index: {}]   ;;  %s4191_s0 = inlined_call_operand.vmem [shape: bf16[8,8,128], index: 0, kind: input, shape index: {}]   ;;  %s4192_s4 = inlined_call_operand.vmem [shape: bf16[256,256], index: 4, kind: input, shape index: {}]   ;;  %s4193_s5 = inlined_call_operand.vmem [shape: bf16[128,256], index: 5, kind: input, shape index: {}]   ;;  %s4194_s3 = inlined_call_operand.vmem [shape: f32[1,512], index: 3, kind: input, shape index: {}]   ;;  %s4195_s6 = inlined_call_operand.vmem [shape: bf16[128,128], index: 6, kind: input, shape index: {}]   ;;  %s4196_s1 = inlined_call_operand.vmem [shape: s32[8,1], index: 1, kind: input, shape index: {}]   ;;  %s4197_s7 = inlined_call_operand.vmem [shape: f32[8,128], index: 7, kind: output, shape index: {}]  }
   0x1   :  { %v2272_v0 = vld [vmem:[%s4190_s2 + $0xe0] sm:$0xf]  ;;  %v2568_v1 = vld [vmem:[%s4190_s2 + $0xec] sm:$0xf0]  ;;  %v2566_v2 = vld [vmem:[%s4190_s2 + $0xe4] sm:$0xf] }
   0x2   :  { %v2273_v3 = vor.u32 %v2568_v1, %v2272_v0  ;;  %v2274_v4 = vld [vmem:[%s4190_s2 + $0xf0] sm:$0xf0]  ;;  %v2280_v5 = vld [vmem:[%s4190_s2 + $0xe8] sm:$0xf]  ;;  %v2569_v6 = vld [vmem:[%s4190_s2 + $0xf4] sm:$0xf0] }
   0x3   :  { %v2277_v7 = vor.u32 %v2566_v2, %v2274_v4  ;;  %v2281_v8 = vor.u32 %v2569_v6, %v2280_v5  ;;  %v2567_v9 = vld [vmem:[%s4190_s2 + $0xec] sm:$0xf]  ;;  %v2282_v10 = vld [vmem:[%s4190_s2 + $0xf8] sm:$0xf0]  ;;  %v2256_v11 = vld [vmem:[%s4190_s2 + $0xc0] sm:$0xf] }
   0x4   :  { %261 = vmatpush.bf16.msra.mxu0 %v2273_v3  ;;  %v2285_v12 = vor.u32 %v2567_v9, %v2282_v10  ;;  %v2564_v13 = vld [vmem:[%s4190_s2 + $0xcc] sm:$0xf0]  ;;  %v2562_v14 = vld [vmem:[%s4190_s2 + $0xc4] sm:$0xf]  ;;  %v2258_v15 = vld [vmem:[%s4190_s2 + $0xd0] sm:$0xf0] }
   0x5   :  { %290 = vmatpush.bf16.msra.mxu1 %v2277_v7  ;;  %319 = vmatpush.bf16.msra.mxu2 %v2281_v8  ;;  %v2257_v16 = vor.u32 %v2564_v13, %v2256_v11  ;;  %v2261_v17 = vor.u32 %v2562_v14, %v2258_v15  ;;  %v2264_v18 = vld [vmem:[%s4190_s2 + $0xc8] sm:$0xf]  ;;  %v2565_v19 = vld [vmem:[%s4190_s2 + $0xd4] sm:$0xf0]  ;;  %v2563_v20 = vld [vmem:[%s4190_s2 + $0xcc] sm:$0xf] }
   0x6   :  { %348 = vmatpush.bf16.msra.mxu3 %v2285_v12  ;;  %v2265_v21 = vor.u32 %v2565_v19, %v2264_v18  ;;  %v2266_v22 = vld [vmem:[%s4190_s2 + $0xd8] sm:$0xf0]  ;;  %v2240_v23 = vld [vmem:[%s4190_s2 + $0xa0] sm:$0xf]  ;;  %v2560_v24 = vld [vmem:[%s4190_s2 + $0xac] sm:$0xf0] }
   0x7   :  { %v2269_v25 = vor.u32 %v2563_v20, %v2266_v22  ;;  %v2558_v26 = vld [vmem:[%s4190_s2 + $0xa4] sm:$0xf]  ;;  %v2242_v27 = vld [vmem:[%s4190_s2 + $0xb0] sm:$0xf0]  ;;  %v2248_v28 = vld [vmem:[%s4190_s2 + $0xa8] sm:$0xf]  ;;  %v2241_v29 = vor.u32 %v2560_v24, %v2240_v23 }
   0x8   :  { %262 = vmatpush.bf16.msra.mxu0 %v2257_v16  ;;  %v2561_v30 = vld [vmem:[%s4190_s2 + $0xb4] sm:$0xf0]  ;;  %v2559_v31 = vld [vmem:[%s4190_s2 + $0xac] sm:$0xf]  ;;  %v2250_v32 = vld [vmem:[%s4190_s2 + $0xb8] sm:$0xf0]  ;;  %v2245_v33 = vor.u32 %v2558_v26, %v2242_v27 }
   0x9   :  { %291 = vmatpush.bf16.msra.mxu1 %v2261_v17  ;;  %320 = vmatpush.bf16.msra.mxu2 %v2265_v21  ;;  %v2249_v34 = vor.u32 %v2561_v30, %v2248_v28  ;;  %v2224_v35 = vld [vmem:[%s4190_s2 + $0x80] sm:$0xf]  ;;  %v2556_v36 = vld [vmem:[%s4190_s2 + $0x8c] sm:$0xf0]  ;;  %v2554_v37 = vld [vmem:[%s4190_s2 + $0x84] sm:$0xf]  ;;  %v2253_v38 = vor.u32 %v2559_v31, %v2250_v32 }
   0xa   :  { %349 = vmatpush.bf16.msra.mxu3 %v2269_v25  ;;  %v2226_v39 = vld [vmem:[%s4190_s2 + $0x90] sm:$0xf0]  ;;  %v2232_v40 = vld [vmem:[%s4190_s2 + $0x88] sm:$0xf]  ;;  %v2557_v41 = vld [vmem:[%s4190_s2 + $0x94] sm:$0xf0]  ;;  %v2225_v44 = vor.u32 %v2556_v36, %v2224_v35 }
   0xb   :  { %v2555_v42 = vld [vmem:[%s4190_s2 + $0x8c] sm:$0xf]  ;;  %v2234_v43 = vld [vmem:[%s4190_s2 + $0x98] sm:$0xf0]  ;;  %v2229_v45 = vor.u32 %v2554_v37, %v2226_v39  ;;  %v2233_v46 = vor.u32 %v2557_v41, %v2232_v40  ;;  %v2208_v47 = vld [vmem:[%s4190_s2 + $0x60] sm:$0xf] }
   0xc   :  { %263 = vmatpush.bf16.msra.mxu0 %v2241_v29  ;;  %v2552_v48 = vld [vmem:[%s4190_s2 + $0x6c] sm:$0xf0]  ;;  %v2550_v49 = vld [vmem:[%s4190_s2 + $0x64] sm:$0xf]  ;;  %v2237_v50 = vor.u32 %v2555_v42, %v2234_v43  ;;  %v2210_v51 = vld [vmem:[%s4190_s2 + $0x70] sm:$0xf0] }
   0xd   :  { %292 = vmatpush.bf16.msra.mxu1 %v2245_v33  ;;  %321 = vmatpush.bf16.msra.mxu2 %v2249_v34  ;;  %v2216_v52 = vld [vmem:[%s4190_s2 + $0x68] sm:$0xf]  ;;  %v2553_v53 = vld [vmem:[%s4190_s2 + $0x74] sm:$0xf0]  ;;  %v2551_v54 = vld [vmem:[%s4190_s2 + $0x6c] sm:$0xf]  ;;  %v2209_v56 = vor.u32 %v2552_v48, %v2208_v47  ;;  %v2213_v57 = vor.u32 %v2550_v49, %v2210_v51 }
   0xe   :  { %350 = vmatpush.bf16.msra.mxu3 %v2253_v38  ;;  %v2218_v55 = vld [vmem:[%s4190_s2 + $0x78] sm:$0xf0]  ;;  %v2217_v58 = vor.u32 %v2553_v53, %v2216_v52  ;;  %v2192_v59 = vld [vmem:[%s4190_s2 + $0x40] sm:$0xf]  ;;  %v2548_v60 = vld [vmem:[%s4190_s2 + $0x4c] sm:$0xf0] }
   0xf   :  { %v2546_v61 = vld [vmem:[%s4190_s2 + $0x44] sm:$0xf]  ;;  %v2221_v62 = vor.u32 %v2551_v54, %v2218_v55  ;;  %v2194_v63 = vld [vmem:[%s4190_s2 + $0x50] sm:$0xf0]  ;;  %v2200_v0 = vld [vmem:[%s4190_s2 + $0x48] sm:$0xf]  ;;  %v2193_v4 = vor.u32 %v2548_v60, %v2192_v59 }
  0x10   :  { %264 = vmatpush.bf16.msra.mxu0 %v2225_v44  ;;  %v2549_v1 = vld [vmem:[%s4190_s2 + $0x54] sm:$0xf0]  ;;  %v2547_v2 = vld [vmem:[%s4190_s2 + $0x4c] sm:$0xf]  ;;  %v2202_v3 = vld [vmem:[%s4190_s2 + $0x58] sm:$0xf0]  ;;  %v2197_v5 = vor.u32 %v2546_v61, %v2194_v63 }
  0x11   :  { %293 = vmatpush.bf16.msra.mxu1 %v2229_v45  ;;  %322 = vmatpush.bf16.msra.mxu2 %v2233_v46  ;;  %v2201_v6 = vor.u32 %v2549_v1, %v2200_v0  ;;  %v2176_v7 = vld [vmem:[%s4190_s2 + $0x20] sm:$0xf]  ;;  %v2544_v8 = vld [vmem:[%s4190_s2 + $0x2c] sm:$0xf0]  ;;  %v2542_v9 = vld [vmem:[%s4190_s2 + $0x24] sm:$0xf]  ;;  %v2205_v10 = vor.u32 %v2547_v2, %v2202_v3 }
  0x12   :  { %351 = vmatpush.bf16.msra.mxu3 %v2237_v50  ;;  %v2178_v11 = vld [vmem:[%s4190_s2 + $0x30] sm:$0xf0]  ;;  %v2184_v12 = vld [vmem:[%s4190_s2 + $0x28] sm:$0xf]  ;;  %v2545_v13 = vld [vmem:[%s4190_s2 + $0x34] sm:$0xf0]  ;;  %v2177_v16 = vor.u32 %v2544_v8, %v2176_v7 }
  0x13   :  { %v2543_v14 = vld [vmem:[%s4190_s2 + $0x2c] sm:$0xf]  ;;  %v2186_v15 = vld [vmem:[%s4190_s2 + $0x38] sm:$0xf0]  ;;  %v2160_v17 = vld [vmem:[%s4190_s2] sm:$0xf]  ;;  %v2181_v18 = vor.u32 %v2542_v9, %v2178_v11  ;;  %v2185_v19 = vor.u32 %v2545_v13, %v2184_v12 }
  0x14   :  { %265 = vmatpush.bf16.msra.mxu0 %v2209_v56  ;;  %v2540_v20 = vld [vmem:[%s4190_s2 + $0xc] sm:$0xf0]  ;;  %v2538_v21 = vld [vmem:[%s4190_s2 + $0x4] sm:$0xf]  ;;  %v2162_v22 = vld [vmem:[%s4190_s2 + $0x10] sm:$0xf0]  ;;  %v2189_v23 = vor.u32 %v2543_v14, %v2186_v15 }
  0x15   :  { %294 = vmatpush.bf16.msra.mxu1 %v2213_v57  ;;  %323 = vmatpush.bf16.msra.mxu2 %v2217_v58  ;;  %v2168_v24 = vld [vmem:[%s4190_s2 + $0x8] sm:$0xf]  ;;  %v2541_v25 = vld [vmem:[%s4190_s2 + $0x14] sm:$0xf0]  ;;  %v2539_v26 = vld [vmem:[%s4190_s2 + $0xc] sm:$0xf]  ;;  %v2161_v30 = vor.u32 %v2540_v20, %v2160_v17  ;;  %v2165_v33 = vor.u32 %v2538_v21, %v2162_v22 }
  0x16   :  { %352 = vmatpush.bf16.msra.mxu3 %v2221_v62  ;;  %v2170_v27 = vld [vmem:[%s4190_s2 + $0x18] sm:$0xf0]  ;;  %v2584_v28 = vld [vmem:[%s4192_s4 + $0x74] sm:$0xf]  ;;  %v2169_v34 = vor.u32 %v2541_v25, %v2168_v24  ;;  %v2534_v35 = vld [vmem:[%s4191_s0] sm:$0xff] }
  0x17   :  { %v2346_v29 = vld [vmem:[%s4192_s4 + $0x78] sm:$0xf0]  ;;  %v2600_v31 = vld [vmem:[%s4192_s4 + $0xf4] sm:$0xf]  ;;  %v2173_v36 = vor.u32 %v2539_v26, %v2170_v27  ;;  %v2344_v38 = vld [vmem:[%s4192_s4 + $0x70] sm:$0xf] }
  0x18   :  { %266 = vmatpush.bf16.msra.mxu0 %v2193_v4  ;;  %v2410_v32 = vld [vmem:[%s4192_s4 + $0xf8] sm:$0xf0]  ;;  %v3001_v37 = vor.u32 %v2584_v28, %v2346_v29  ;;  %v2585_v39 = vld [vmem:[%s4192_s4 + $0x74] sm:$0xf0]  ;;  %v2408_v40 = vld [vmem:[%s4192_s4 + $0xf0] sm:$0xf] }
  0x19   :  { %295 = vmatpush.bf16.msra.mxu1 %v2197_v5  ;;  %324 = vmatpush.bf16.msra.mxu2 %v2201_v6  ;;  %v3012_v41 = vor.u32 %v2600_v31, %v2410_v32  ;;  %v2601_v42 = vld [vmem:[%s4192_s4 + $0xf4] sm:$0xf0]  ;;  %v2582_v43 = vld [vmem:[%s4192_s4 + $0x64] sm:$0xf]  ;;  %v2338_v44 = vld [vmem:[%s4192_s4 + $0x68] sm:$0xf0]  ;;  %v3029_v47 = vor.u32 %v2585_v39, %v2344_v38 }
  0x1a   :  { %353 = vmatpush.bf16.msra.mxu3 %v2205_v10  ;;  %v2598_v45 = vld [vmem:[%s4192_s4 + $0xe4] sm:$0xf]  ;;  %v2402_v46 = vld [vmem:[%s4192_s4 + $0xe8] sm:$0xf0]  ;;  %v3032_v48 = vor.u32 %v2601_v42, %v2408_v40  ;;  %v3034_v49 = vor.u32 %v2582_v43, %v2338_v44  ;;  %v2336_v50 = vld [vmem:[%s4192_s4 + $0x60] sm:$0xf] }
  0x1b   :  { %v2583_v51 = vld [vmem:[%s4192_s4 + $0x64] sm:$0xf0]  ;;  %v2400_v52 = vld [vmem:[%s4192_s4 + $0xe0] sm:$0xf]  ;;  %v3046_v53 = vor.u32 %v2598_v45, %v2402_v46  ;;  %v2580_v55 = vld [vmem:[%s4192_s4 + $0x54] sm:$0xf] }
  0x1c   :  { %267 = vmatpush.bf16.msra.mxu0 %v2177_v16  ;;  %v2599_v54 = vld [vmem:[%s4192_s4 + $0xe4] sm:$0xf0]  ;;  %v2330_v56 = vld [vmem:[%s4192_s4 + $0x58] sm:$0xf0]  ;;  %v2596_v57 = vld [vmem:[%s4192_s4 + $0xd4] sm:$0xf]  ;;  %v3064_v59 = vor.u32 %v2583_v51, %v2336_v50 }
  0x1d   :  { %296 = vmatpush.bf16.msra.mxu1 %v2181_v18  ;;  %325 = vmatpush.bf16.msra.mxu2 %v2185_v19  ;;  %v2394_v58 = vld [vmem:[%s4192_s4 + $0xd8] sm:$0xf0]  ;;  %v3068_v60 = vor.u32 %v2599_v54, %v2400_v52  ;;  %v3070_v61 = vor.u32 %v2580_v55, %v2330_v56  ;;  %v2328_v62 = vld [vmem:[%s4192_s4 + $0x50] sm:$0xf]  ;;  %v2581_v63 = vld [vmem:[%s4192_s4 + $0x54] sm:$0xf0] }
  0x1e   :  { %354 = vmatpush.bf16.msra.mxu3 %v2189_v23  ;;  %v2392_v0 = vld [vmem:[%s4192_s4 + $0xd0] sm:$0xf]  ;;  %v3082_v1 = vor.u32 %v2596_v57, %v2394_v58  ;;  %v2597_v2 = vld [vmem:[%s4192_s4 + $0xd4] sm:$0xf0]  ;;  %v2578_v3 = vld [vmem:[%s4192_s4 + $0x44] sm:$0xf]  ;;  %v3100_v7 = vor.u32 %v2581_v63, %v2328_v62 }
  0x1f   :  { %v2322_v4 = vld [vmem:[%s4192_s4 + $0x48] sm:$0xf0]  ;;  %v2594_v5 = vld [vmem:[%s4192_s4 + $0xc4] sm:$0xf]  ;;  %v3104_v8 = vor.u32 %v2597_v2, %v2392_v0  ;;  %v2320_v10 = vld [vmem:[%s4192_s4 + $0x40] sm:$0xf] }
  0x20   :  { %268 = vmatpush.bf16.msra.mxu0 %v2161_v30  ;;  %v2386_v6 = vld [vmem:[%s4192_s4 + $0xc8] sm:$0xf0]  ;;  %v3106_v9 = vor.u32 %v2578_v3, %v2322_v4  ;;  %v2579_v11 = vld [vmem:[%s4192_s4 + $0x44] sm:$0xf0]  ;;  %v2384_v12 = vld [vmem:[%s4192_s4 + $0xc0] sm:$0xf] }
  0x21   :  { %297 = vmatpush.bf16.msra.mxu1 %v2165_v33  ;;  %326 = vmatpush.bf16.msra.mxu2 %v2169_v34  ;;  %v3118_v13 = vor.u32 %v2594_v5, %v2386_v6  ;;  %v2595_v14 = vld [vmem:[%s4192_s4 + $0xc4] sm:$0xf0]  ;;  %v2576_v15 = vld [vmem:[%s4192_s4 + $0x34] sm:$0xf]  ;;  %v2314_v16 = vld [vmem:[%s4192_s4 + $0x38] sm:$0xf0]  ;;  %v3139_v20 = vor.u32 %v2579_v11, %v2320_v10 }
  0x22   :  { %355 = vmatpush.bf16.msra.mxu3 %v2173_v36  ;;  %v2592_v17 = vld [vmem:[%s4192_s4 + $0xb4] sm:$0xf]  ;;  %v2378_v18 = vld [vmem:[%s4192_s4 + $0xb8] sm:$0xf0]  ;;  %v2535_v19 = vld [vmem:[%s4191_s0 + $0x8] sm:$0xff]  ;;  %v3143_v21 = vor.u32 %v2595_v14, %v2384_v12  ;;  %v3145_v22 = vor.u32 %v2576_v15, %v2314_v16 }
  0x23   :  { %269 = vmatmul.bf16.vlgmr.msra.gmra.mxu0 %v2534_v35  ;;  %v2312_v23 = vld [vmem:[%s4192_s4 + $0x30] sm:$0xf]  ;;  %v2577_v24 = vld [vmem:[%s4192_s4 + $0x34] sm:$0xf0]  ;;  %v3157_v26 = vor.u32 %v2592_v17, %v2378_v18  ;;  %v2574_v28 = vld [vmem:[%s4192_s4 + $0x24] sm:$0xf] }
  0x24   :  { %298 = vmatmul.bf16.vlgmr.msra.gmra.mxu1 %v2534_v35  ;;  %327 = vmatmul.bf16.vlgmr.msra.gmra.mxu2 %v2534_v35  ;;  %v2376_v25 = vld [vmem:[%s4192_s4 + $0xb0] sm:$0xf]  ;;  %v2593_v27 = vld [vmem:[%s4192_s4 + $0xb4] sm:$0xf0]  ;;  %v2306_v29 = vld [vmem:[%s4192_s4 + $0x28] sm:$0xf0]  ;;  %v3175_v32 = vor.u32 %v2577_v24, %v2312_v23 }
  0x25   :  { %665 = vmatpush.bf16.msrb.mxu2 %v3001_v37  ;;  %356 = vmatmul.bf16.vlgmr.msra.gmra.mxu3 %v2534_v35  ;;  %v2590_v30 = vld [vmem:[%s4192_s4 + $0xa4] sm:$0xf]  ;;  %v2370_v31 = vld [vmem:[%s4192_s4 + $0xa8] sm:$0xf0]  ;;  %v3179_v33 = vor.u32 %v2593_v27, %v2376_v25  ;;  %v2304_v34 = vld [vmem:[%s4192_s4 + $0x20] sm:$0xf]  ;;  %v3187_v36 = vor.u32 %v2574_v28, %v2306_v29 }
  0x26   :  { %678 = vmatpush.bf16.msrb.mxu3 %v3012_v41  ;;  %639 = vmatpush.bf16.msrb.mxu0 %v3029_v47  ;;  %v2575_v35 = vld [vmem:[%s4192_s4 + $0x24] sm:$0xf0]  ;;  %v2368_v38 = vld [vmem:[%s4192_s4 + $0xa0] sm:$0xf]  ;;  %v3196_v40 = vor.u32 %v2590_v30, %v2370_v31  ;;  %v2572_v43 = vld [vmem:[%s4192_s4 + $0x14] sm:$0xf] }
  0x27   :  { %652 = vmatpush.bf16.msrb.mxu1 %v3032_v48  ;;  %v2591_v39 = vld [vmem:[%s4192_s4 + $0xa4] sm:$0xf0]  ;;  %v3199_v42 = vor.u32 %v2575_v35, %v2304_v34  ;;  %v2298_v44 = vld [vmem:[%s4192_s4 + $0x18] sm:$0xf0]  ;;  %v2588_v45 = vld [vmem:[%s4192_s4 + $0x94] sm:$0xf] }
  0x28   :  { %4260 = vst [vmem:[#allocation3_spill] sm:$0xff] %v3196_v40  ;;  %v3211_v46 = vor.u32 %v2591_v39, %v2368_v38  ;;  %v2296_v50 = vld [vmem:[%s4192_s4 + $0x10] sm:$0xf]  ;;  %v2573_v51 = vld [vmem:[%s4192_s4 + $0x14] sm:$0xf0]  ;;  %v3220_v52 = vor.u32 %v2572_v43, %v2298_v44 }
  0x29   :  { %666 = vmatpush.bf16.msrb.mxu2 %v3034_v49  ;;  %v2362_v54 = vld [vmem:[%s4192_s4 + $0x98] sm:$0xf0]  ;;  %v2360_v55 = vld [vmem:[%s4192_s4 + $0x90] sm:$0xf]  ;;  %v2589_v56 = vld [vmem:[%s4192_s4 + $0x94] sm:$0xf0]  ;;  %v3247_v2 = vor.u32 %v2573_v51, %v2296_v50 }
  0x2a   :  { %679 = vmatpush.bf16.msrb.mxu3 %v3046_v53  ;;  %640 = vmatpush.bf16.msrb.mxu0 %v3064_v59  ;;  %4261 = vst [vmem:[#allocation4_spill] sm:$0xff] %v3211_v46  ;;  %v3232_v57 = vor.u32 %v2588_v45, %v2362_v54  ;;  %v2570_v58 = vld [vmem:[%s4192_s4 + $0x4] sm:$0xf]  ;;  %v2290_v62 = vld [vmem:[%s4192_s4 + $0x8] sm:$0xf0]  ;;  %v3250_v3 = vor.u32 %v2589_v56, %v2360_v55  ;;  %v2536_v24 = vld [vmem:[%s4191_s0 + $0x10] sm:$0xff] }
  0x2b   :  { %653 = vmatpush.bf16.msrb.mxu1 %v3068_v60  ;;  %v2586_v63 = vld [vmem:[%s4192_s4 + $0x84] sm:$0xf]  ;;  %v2354_v0 = vld [vmem:[%s4192_s4 + $0x88] sm:$0xf0]  ;;  %v2288_v4 = vld [vmem:[%s4192_s4] sm:$0xf]  ;;  %v3262_v10 = vor.u32 %v2570_v58, %v2290_v62 }
  0x2c   :  { %4262 = vst [vmem:[#allocation5_spill] sm:$0xff] %v3232_v57  ;;  %v2571_v5 = vld [vmem:[%s4192_s4 + $0x4] sm:$0xf0]  ;;  %v2352_v6 = vld [vmem:[%s4192_s4 + $0x80] sm:$0xf]  ;;  %v3274_v15 = vor.u32 %v2586_v63, %v2354_v0  ;;  %v4198_v58 = vmov 0  }
  0x2d   :  { %667 = vmatpush.bf16.msrb.mxu2 %v3070_v61  ;;  %4263 = vst [vmem:[#allocation6_spill] sm:$0xff] %v3250_v3  ;;  %v2587_v11 = vld [vmem:[%s4192_s4 + $0x84] sm:$0xf0]  ;;  %v2472_v12 = vld [vmem:[%s4193_s5 + $0x70] sm:$0xf]  ;;  %v3283_v18 = vor.u32 %v2571_v5, %v2288_v4  ;;  %2628 = vset.pattern.permute.xlu0 %v4198_v58 }
  0x2e   :  { %680 = vmatpush.bf16.msrb.mxu3 %v3082_v1  ;;  %641 = vmatpush.bf16.msrb.mxu0 %v3100_v7  ;;  %v2617_v14 = vld [vmem:[%s4193_s5 + $0x74] sm:$0xf0]  ;;  %4264 = vst [vmem:[#allocation7_spill] sm:$0xff] %v3274_v15  ;;  %v2616_v16 = vld [vmem:[%s4193_s5 + $0x74] sm:$0xf] }
  0x2f   :  { %654 = vmatpush.bf16.msrb.mxu1 %v3104_v8  ;;  %v2474_v17 = vld [vmem:[%s4193_s5 + $0x78] sm:$0xf0]  ;;  %v3288_v23 = vor.u32 %v2617_v14, %v2472_v12  ;;  %v2464_v27 = vld [vmem:[%s4193_s5 + $0x60] sm:$0xf]  ;;  %v2615_v28 = vld [vmem:[%s4193_s5 + $0x64] sm:$0xf0]  ;;  %2629 = vset.pattern.permute.xlu1 %v4198_v58 }
  0x30   :  { %v3294_v25 = vor.u32 %v2616_v16, %v2474_v17  ;;  %v2614_v29 = vld [vmem:[%s4193_s5 + $0x64] sm:$0xf]  ;;  %v2466_v30 = vld [vmem:[%s4193_s5 + $0x68] sm:$0xf0]  ;;  %v3313_v31 = vor.u32 %v2615_v28, %v2464_v27  ;;  %v2456_v35 = vld [vmem:[%s4193_s5 + $0x50] sm:$0xf]  ;;  %2630 = vset.pattern.permute.xlu2 %v4198_v58 }
  0x31   :  { %668 = vmatpush.bf16.msrb.mxu2 %v3106_v9  ;;  %v3316_v34 = vor.u32 %v2614_v29, %v2466_v30  ;;  %v2613_v38 = vld [vmem:[%s4193_s5 + $0x54] sm:$0xf0]  ;;  %v2612_v39 = vld [vmem:[%s4193_s5 + $0x54] sm:$0xf]  ;;  %v2458_v43 = vld [vmem:[%s4193_s5 + $0x58] sm:$0xf0] }
  0x32   :  { %681 = vmatpush.bf16.msrb.mxu3 %v3118_v13  ;;  %642 = vmatpush.bf16.msrb.mxu0 %v3139_v20  ;;  %4266 = vst [vmem:[#allocation9_spill] sm:$0xff] %v3294_v25  ;;  %v3331_v44 = vor.u32 %v2613_v38, %v2456_v35  ;;  %v3335_v45 = vor.u32 %v2612_v39, %v2458_v43  ;;  %v2448_v50 = vld [vmem:[%s4193_s5 + $0x40] sm:$0xf]  ;;  %v2611_v51 = vld [vmem:[%s4193_s5 + $0x44] sm:$0xf0] }
  0x33   :  { %655 = vmatpush.bf16.msrb.mxu1 %v3143_v21  ;;  %274 = vmatmul.bf16.gmra.mxu0 %v2535_v19  ;;  %4267 = vst [vmem:[#allocation10_spill] sm:$0xff] %v3316_v34  ;;  %v2610_v54 = vld [vmem:[%s4193_s5 + $0x44] sm:$0xf]  ;;  %v2450_v55 = vld [vmem:[%s4193_s5 + $0x48] sm:$0xf0]  ;;  %v3350_v56 = vor.u32 %v2611_v51, %v2448_v50 }
  0x34   :  { %303 = vmatmul.bf16.gmra.mxu1 %v2535_v19  ;;  %332 = vmatmul.bf16.gmra.mxu2 %v2535_v19  ;;  %4268 = vst [vmem:[#allocation11_spill] sm:$0xff] %v3335_v45  ;;  %v3354_v62 = vor.u32 %v2610_v54, %v2450_v55  ;;  %v2440_v63 = vld [vmem:[%s4193_s5 + $0x30] sm:$0xf]  ;;  %v2609_v0 = vld [vmem:[%s4193_s5 + $0x34] sm:$0xf0] }
  0x35   :  { %669 = vmatpush.bf16.msrb.mxu2 %v3145_v22  ;;  %361 = vmatmul.bf16.gmra.mxu3 %v2535_v19  ;;  %v3286_v19 = vor.u32 %v2587_v11, %v2352_v6  ;;  %v2608_v4 = vld [vmem:[%s4193_s5 + $0x34] sm:$0xf]  ;;  %v2442_v5 = vld [vmem:[%s4193_s5 + $0x38] sm:$0xf0]  ;;  %v3372_v6 = vor.u32 %v2609_v0, %v2440_v63  ;;  %v2432_v14 = vld [vmem:[%s4193_s5 + $0x20] sm:$0xf] }
  0x36   :  { %682 = vmatpush.bf16.msrb.mxu3 %v3157_v26  ;;  %643 = vmatpush.bf16.msrb.mxu0 %v3175_v32  ;;  %4269 = vst [vmem:[#allocation12_spill] sm:$0xff] %v3354_v62  ;;  %v2537_v11 = vld [vmem:[%s4191_s0 + $0x18] sm:$0xff]  ;;  %v3378_v12 = vor.u32 %v2608_v4, %v2442_v5  ;;  %v2607_v16 = vld [vmem:[%s4193_s5 + $0x24] sm:$0xf0]  ;;  %v2606_v17 = vld [vmem:[%s4193_s5 + $0x24] sm:$0xf] }
  0x37   :  { %656 = vmatpush.bf16.msrb.mxu1 %v3179_v33  ;;  %4265 = vst [vmem:[#allocation8_spill] sm:$0xff] %v3286_v19  ;;  %v3394_v27 = vor.u32 %v2607_v16, %v2432_v14  ;;  %v2424_v29 = vld [vmem:[%s4193_s5 + $0x10] sm:$0xf]  ;;  %v2605_v30 = vld [vmem:[%s4193_s5 + $0x14] sm:$0xf0]  ;;  %v2753_v4 = vmov 0.0|0.0  }
  0x38   :  { %4270 = vst [vmem:[#allocation13_spill] sm:$0xff] %v3378_v12  ;;  %v2604_v35 = vld [vmem:[%s4193_s5 + $0x14] sm:$0xf]  ;;  %v2426_v38 = vld [vmem:[%s4193_s5 + $0x18] sm:$0xf0]  ;;  %v3412_v39 = vor.u32 %v2605_v30, %v2424_v29 }
  0x39   :  { %670 = vmatpush.bf16.msrb.mxu2 %v3187_v36  ;;  %v3416_v43 = vor.u32 %v2604_v35, %v2426_v38  ;;  %v2416_v50 = vld [vmem:[%s4193_s5] sm:$0xf]  ;;  %v2603_v51 = vld [vmem:[%s4193_s5 + $0x4] sm:$0xf0]  ;;  %v2602_v54 = vld [vmem:[%s4193_s5 + $0x4] sm:$0xf] }
  0x3a   :  { %683 = vmatpush.bf16.msrb.mxu3 %v3196_v40  ;;  %644 = vmatpush.bf16.msrb.mxu0 %v3199_v42  ;;  %v2418_v55 = vld [vmem:[%s4193_s5 + $0x8] sm:$0xf0]  ;;  %v3431_v63 = vor.u32 %v2603_v51, %v2416_v50 }
  0x3b   :  { %657 = vmatpush.bf16.msrb.mxu1 %v3211_v46  ;;  %4272 = vst [vmem:[#allocation15_spill] sm:$0xff] %v3416_v43  ;;  %v3435_v0 = vor.u32 %v2602_v54, %v2418_v55 }
  0x3d   :  { %671 = vmatpush.bf16.msrb.mxu2 %v3220_v52  ;;  %4273 = vst [vmem:[#allocation16_spill] sm:$0xff] %v3435_v0 }
  0x3e   :  { %684 = vmatpush.bf16.msrb.mxu3 %v3232_v57  ;;  %645 = vmatpush.bf16.msrb.mxu0 %v3247_v2 }
  0x3f   :  { %658 = vmatpush.bf16.msrb.mxu1 %v3250_v3 }
  0x41   :  { %672 = vmatpush.bf16.msrb.mxu2 %v3262_v10 }
  0x42   :  { %685 = vmatpush.bf16.msrb.mxu3 %v3274_v15  ;;  %646 = vmatpush.bf16.msrb.mxu0 %v3283_v18 }
  0x43   :  { %659 = vmatpush.bf16.msrb.mxu1 %v3286_v19  ;;  %279 = vmatmul.bf16.gmra.mxu0 %v2536_v24 }
  0x44   :  { %308 = vmatmul.bf16.gmra.mxu1 %v2536_v24  ;;  %337 = vmatmul.bf16.gmra.mxu2 %v2536_v24 }
  0x45   :  { %366 = vmatmul.bf16.gmra.mxu3 %v2536_v24  ;;  %v2434_v24 = vld [vmem:[%s4193_s5 + $0x28] sm:$0xf0] }
  0x46   :  { %939 = vmatpush.bf16.msra.mxu3 %v3029_v47  ;;  %773 = vmatpush.bf16.msra.mxu0 %v3288_v23  ;;  %v3397_v28 = vor.u32 %v2606_v17, %v2434_v24 }
  0x47   :  { %786 = vmatpush.bf16.msra.mxu1 %v3294_v25 }
  0x48   :  { %4271 = vst [vmem:[#allocation14_spill] sm:$0xff] %v3397_v28 }
  0x4a   :  { %774 = vmatpush.bf16.msra.mxu0 %v3313_v31  ;;  %940 = vmatpush.bf16.msra.mxu3 %v3064_v59 }
  0x4b   :  { %787 = vmatpush.bf16.msra.mxu1 %v3316_v34 }
  0x4e   :  { %775 = vmatpush.bf16.msra.mxu0 %v3331_v44  ;;  %941 = vmatpush.bf16.msra.mxu3 %v3100_v7 }
  0x4f   :  { %788 = vmatpush.bf16.msra.mxu1 %v3335_v45 }
  0x52   :  { %776 = vmatpush.bf16.msra.mxu0 %v3350_v56  ;;  %942 = vmatpush.bf16.msra.mxu3 %v3139_v20 }
  0x53   :  { %789 = vmatpush.bf16.msra.mxu1 %v3354_v62  ;;  %284 = vmatmul.bf16.gmra.mxu0 %v2537_v11 }
  0x54   :  { %313 = vmatmul.bf16.gmra.mxu1 %v2537_v11  ;;  %342 = vmatmul.bf16.gmra.mxu2 %v2537_v11 }
  0x55   :  { %371 = vmatmul.bf16.gmra.mxu3 %v2537_v11  ;;  %v67_v11 = vld [vmem:[%s4194_s3] sm:$0xf] }
  0x56   :  { %777 = vmatpush.bf16.msra.mxu0 %v3372_v6  ;;  %943 = vmatpush.bf16.msra.mxu3 %v3175_v32  ;;  %v3482_v16 = vperm.slane %v67_v11, 2  ;;  %v3493_v38 = vperm.slane %v67_v11, 0  ;;  %v3497_v51 = vperm.slane %v67_v11, 1 }
  0x57   :  { %790 = vmatpush.bf16.msra.mxu1 %v3378_v12 }
  0x58   :  { %4274 = vst [vmem:[#allocation17_spill] sm:$0xff] %v3482_v16 }
  0x59   :  { %4277 = vst [vmem:[#allocation20_spill] sm:$0xff] %v3493_v38 }
  0x5a   :  { %778 = vmatpush.bf16.msra.mxu0 %v3394_v27  ;;  %944 = vmatpush.bf16.msra.mxu3 %v3199_v42  ;;  %4279 = vst [vmem:[#allocation22_spill] sm:$0xff] %v3497_v51 }
  0x5b   :  { %791 = vmatpush.bf16.msra.mxu1 %v3397_v28 }
  0x5e   :  { %779 = vmatpush.bf16.msra.mxu0 %v3412_v39  ;;  %945 = vmatpush.bf16.msra.mxu3 %v3247_v2 }
  0x5f   :  { %792 = vmatpush.bf16.msra.mxu1 %v3416_v43 }
  0x62   :  { %780 = vmatpush.bf16.msra.mxu0 %v3431_v63  ;;  %946 = vmatpush.bf16.msra.mxu3 %v3283_v18 }
  0x63   :  { %793 = vmatpush.bf16.msra.mxu1 %v3435_v0  ;;  %647 = vmatmul.bf16.vlgmr.msrb.gmra.mxu0 %v2753_v4 }
  0x64   :  { %660 = vmatmul.bf16.vlgmr.msrb.gmra.mxu1 %v2753_v4  ;;  %673 = vmatmul.bf16.vlgmr.msrb.gmra.mxu2 %v2753_v4 }
  0x65   :  { %686 = vmatmul.bf16.vlgmr.msrb.gmra.mxu3 %v2753_v4 }
  0x66   :  { %952 = vmatpush.bf16.msrb.mxu0 %v3032_v48  ;;  %993 = vmatpush.bf16.msrb.mxu3 %v3288_v23 }
  0x67   :  { %965 = vmatpush.bf16.msrb.mxu1 %v3001_v37 }
  0x6a   :  { %953 = vmatpush.bf16.msrb.mxu0 %v3068_v60  ;;  %994 = vmatpush.bf16.msrb.mxu3 %v3313_v31 }
  0x6b   :  { %966 = vmatpush.bf16.msrb.mxu1 %v3034_v49 }
  0x6e   :  { %954 = vmatpush.bf16.msrb.mxu0 %v3104_v8  ;;  %995 = vmatpush.bf16.msrb.mxu3 %v3331_v44 }
  0x6f   :  { %967 = vmatpush.bf16.msrb.mxu1 %v3070_v61 }
  0x72   :  { %955 = vmatpush.bf16.msrb.mxu0 %v3143_v21  ;;  %996 = vmatpush.bf16.msrb.mxu3 %v3350_v56 }
  0x73   :  { %968 = vmatpush.bf16.msrb.mxu1 %v3106_v9  ;;  %781 = vmatmul.bf16.vlgmr.msra.gmra.mxu0 %v4198_v58 }
  0x74   :  { %794 = vmatmul.bf16.vlgmr.msra.gmra.mxu1 %v4198_v58 }
  0x76   :  { %956 = vmatpush.bf16.msrb.mxu0 %v3179_v33  ;;  %997 = vmatpush.bf16.msrb.mxu3 %v3372_v6 }
  0x77   :  { %969 = vmatpush.bf16.msrb.mxu1 %v3145_v22 }
  0x7a   :  { %957 = vmatpush.bf16.msrb.mxu0 %v3211_v46  ;;  %998 = vmatpush.bf16.msrb.mxu3 %v3394_v27 }
  0x7b   :  { %970 = vmatpush.bf16.msrb.mxu1 %v3187_v36 }
  0x7e   :  { %958 = vmatpush.bf16.msrb.mxu0 %v3250_v3  ;;  %999 = vmatpush.bf16.msrb.mxu3 %v3412_v39 }
  0x7f   :  { %971 = vmatpush.bf16.msrb.mxu1 %v3220_v52 }
  0x82   :  { %959 = vmatpush.bf16.msrb.mxu0 %v3286_v19  ;;  %1000 = vmatpush.bf16.msrb.mxu3 %v3431_v63 }
  0x83   :  { %972 = vmatpush.bf16.msrb.mxu1 %v3262_v10 }
  0x86   :  { %1006 = vmatpush.bf16.msra.mxu0 %v3294_v25 }
  0x8a   :  { %1007 = vmatpush.bf16.msra.mxu0 %v3316_v34 }
  0x8e   :  { %1008 = vmatpush.bf16.msra.mxu0 %v3335_v45 }
  0x92   :  { %1009 = vmatpush.bf16.msra.mxu0 %v3354_v62  ;;  %v3604_v62 = vld [vmem:[%s4195_s6 + $0x8] sm:$0xff] }
  0x93   :  { %4306 = vst [vmem:[#allocation49_spill] sm:$0xff] %v3604_v62 }
  0x96   :  { %1010 = vmatpush.bf16.msra.mxu0 %v3378_v12 }
  0x9a   :  { %1011 = vmatpush.bf16.msra.mxu0 %v3397_v28 }
  0x9e   :  { %1012 = vmatpush.bf16.msra.mxu0 %v3416_v43 }
  0xa0   :  { %v3475_v5 = vpop.f32.mrf.mxu0 }
  0xa1   :  { %v3480_v14 = vpop.f32.mrf.mxu1 }
  0xa2   :  { %1013 = vmatpush.bf16.msra.mxu0 %v3435_v0  ;;  %v3507_v0 = vperm.slane %v67_v11, 3  ;;  %v300_v19 = vadd.f32 %v3480_v14, %v3497_v51 }
  0xa4   :  { %4283 = vst [vmem:[#allocation26_spill] sm:$0xff] %v3507_v0 }
  0xa7   :  { %v328_v17 = vpop.f32.mrf.mxu2 }
  0xa8   :  { %v3485_v24 = vadd.f32 %v328_v17, %v3482_v16  ;;  %v3487_v29 = vpop.f32.mrf.mxu3  ;;  %v3489_v30 = vpop.f32.mrf.mxu0 }
  0xa9   :  { %4275 = vst [vmem:[#allocation18_spill] sm:$0xff] %v3489_v30  ;;  %v3491_v35 = vpop.f32.mrf.mxu1 }
  0xaa   :  { %4276 = vst [vmem:[#allocation19_spill] sm:$0xff] %v3491_v35 }
  0xaf   :  { %v3495_v50 = vpop.f32.mrf.mxu2 }
  0xb0   :  { %4278 = vst [vmem:[#allocation21_spill] sm:$0xff] %v3495_v50  ;;  %v3499_v54 = vpop.f32.mrf.mxu3  ;;  %v275_v55 = vpop.f32.mrf.mxu0 }
  0xb1   :  { %4280 = vst [vmem:[#allocation23_spill] sm:$0xff] %v3499_v54  ;;  %v3502_v4 = vadd.f32 %v275_v55, %v3493_v38  ;;  %v304_v17 = vpop.f32.mrf.mxu1 }
  0xb2   :  { %v3505_v58 = vadd.f32 %v304_v17, %v3497_v51 }
  0xb3   :  { %4281 = vst [vmem:[#allocation24_spill] sm:$0xff] %v3502_v4 }
  0xb4   :  { %4282 = vst [vmem:[#allocation25_spill] sm:$0xff] %v3505_v58 }
  0xb7   :  { %v333_v30 = vpop.f32.mrf.mxu2 }
  0xb8   :  { %v3510_v35 = vadd.f32 %v333_v30, %v3482_v16  ;;  %v362_v43 = vpop.f32.mrf.mxu3  ;;  %v3512_v50 = vpop.f32.mrf.mxu0  ;;  %v3529_v30 = vld [vmem:[%s4195_s6 + $0x38] sm:$0xff] }
  0xb9   :  { %4285 = vst [vmem:[#allocation28_spill] sm:$0xff] %v3512_v50  ;;  %v3515_v28 = vadd.f32 %v362_v43, %v3507_v0  ;;  %v3517_v54 = vpop.f32.mrf.mxu1  ;;  %892 = vmatpush.bf16.msra.mxu2 %v3529_v30  ;;  %1064 = vmatpush.bf16.msra.mxu1 %v3529_v30  ;;  %v3539_v43 = vld [vmem:[%s4195_s6 + $0x30] sm:$0xff] }
  0xba   :  { %4284 = vst [vmem:[#allocation27_spill] sm:$0xff] %v3510_v35  ;;  %v3580_v35 = vld [vmem:[%s4195_s6 + $0x18] sm:$0xff] }
  0xbb   :  { %4286 = vst [vmem:[#allocation29_spill] sm:$0xff] %v3515_v28 }
  0xbc   :  { %4287 = vst [vmem:[#allocation30_spill] sm:$0xff] %v3517_v54  ;;  %v3556_v54 = vld [vmem:[%s4195_s6 + $0x28] sm:$0xff] }
  0xbd   :  { %893 = vmatpush.bf16.msra.mxu2 %v3539_v43  ;;  %1065 = vmatpush.bf16.msra.mxu1 %v3539_v43  ;;  %4300 = vst [vmem:[#allocation43_spill] sm:$0xff] %v3580_v35 }
  0xbf   :  { %v3519_v55 = vpop.f32.mrf.mxu2 }
  0xc0   :  { %4288 = vst [vmem:[#allocation31_spill] sm:$0xff] %v3519_v55  ;;  %v3521_v4 = vpop.f32.mrf.mxu3  ;;  %v280_v17 = vpop.f32.mrf.mxu0 }
  0xc1   :  { %4289 = vst [vmem:[#allocation32_spill] sm:$0xff] %v3521_v4  ;;  %v3524_v11 = vadd.f32 %v280_v17, %v3493_v38  ;;  %v309_v58 = vpop.f32.mrf.mxu1  ;;  %894 = vmatpush.bf16.msra.mxu2 %v3556_v54  ;;  %1066 = vmatpush.bf16.msra.mxu1 %v3556_v54 }
  0xc2   :  { %v3532_v50 = vadd.f32 %v309_v58, %v3497_v51 }
  0xc3   :  { %4290 = vst [vmem:[#allocation33_spill] sm:$0xff] %v3524_v11 }
  0xc4   :  { %4291 = vst [vmem:[#allocation34_spill] sm:$0xff] %v3532_v50 }
  0xc7   :  { %v338_v17 = vpop.f32.mrf.mxu2 }
  0xc8   :  { %v3544_v11 = vadd.f32 %v338_v17, %v3482_v16  ;;  %v367_v4 = vpop.f32.mrf.mxu3  ;;  %v3546_v58 = vpop.f32.mrf.mxu0  ;;  %v3563_v17 = vld [vmem:[%s4195_s6 + $0x20] sm:$0xff] }
  0xc9   :  { %4293 = vst [vmem:[#allocation36_spill] sm:$0xff] %v3546_v58  ;;  %v3549_v50 = vadd.f32 %v367_v4, %v3507_v0  ;;  %v3551_v55 = vpop.f32.mrf.mxu1  ;;  %895 = vmatpush.bf16.msra.mxu2 %v3563_v17  ;;  %1067 = vmatpush.bf16.msra.mxu1 %v3563_v17 }
  0xca   :  { %4292 = vst [vmem:[#allocation35_spill] sm:$0xff] %v3544_v11 }
  0xcb   :  { %4294 = vst [vmem:[#allocation37_spill] sm:$0xff] %v3549_v50 }
  0xcc   :  { %4295 = vst [vmem:[#allocation38_spill] sm:$0xff] %v3551_v55 }
  0xcd   :  { %896 = vmatpush.bf16.msra.mxu2 %v3580_v35  ;;  %1068 = vmatpush.bf16.msra.mxu1 %v3580_v35 }
  0xcf   :  { %v3565_v58 = vpop.f32.mrf.mxu2 }
  0xd0   :  { %4296 = vst [vmem:[#allocation39_spill] sm:$0xff] %v3565_v58  ;;  %v3569_v4 = vpop.f32.mrf.mxu3  ;;  %v285_v55 = vpop.f32.mrf.mxu0 }
  0xd1   :  { %4297 = vst [vmem:[#allocation40_spill] sm:$0xff] %v3569_v4  ;;  %v3572_v50 = vadd.f32 %v285_v55, %v3493_v38  ;;  %v314_v11 = vpop.f32.mrf.mxu1  ;;  %v3587_v4 = vld [vmem:[%s4195_s6 + $0x10] sm:$0xff] }
  0xd2   :  { %v3575_v28 = vadd.f32 %v314_v11, %v3497_v51  ;;  %4301 = vst [vmem:[#allocation44_spill] sm:$0xff] %v3587_v4  ;;  %897 = vmatpush.bf16.msra.mxu2 %v3587_v4  ;;  %1069 = vmatpush.bf16.msra.mxu1 %v3587_v4 }
  0xd3   :  { %4298 = vst [vmem:[#allocation41_spill] sm:$0xff] %v3572_v50 }
  0xd4   :  { %4299 = vst [vmem:[#allocation42_spill] sm:$0xff] %v3575_v28 }
  0xd6   :  { %898 = vmatpush.bf16.msra.mxu2 %v3604_v62  ;;  %1070 = vmatpush.bf16.msra.mxu1 %v3604_v62 }
  0xd7   :  { %v343_v55 = vpop.f32.mrf.mxu2 }
  0xd8   :  { %v3590_v50 = vadd.f32 %v343_v55, %v3482_v16  ;;  %v372_v11 = vpop.f32.mrf.mxu3  ;;  %v3592_v28 = vpop.f32.mrf.mxu0  ;;  %v3611_v55 = vld [vmem:[%s4195_s6] sm:$0xff] }
  0xd9   :  { %4303 = vst [vmem:[#allocation46_spill] sm:$0xff] %v3592_v28  ;;  %v3597_v58 = vadd.f32 %v372_v11, %v3507_v0  ;;  %v3599_v12 = vpop.f32.mrf.mxu1 }
  0xda   :  { %4302 = vst [vmem:[#allocation45_spill] sm:$0xff] %v3590_v50  ;;  %899 = vmatpush.bf16.msra.mxu2 %v3611_v55  ;;  %1071 = vmatpush.bf16.msra.mxu1 %v3611_v55  ;;  %v271_v50 = vadd.f32 %v3475_v5, %v3493_v38 }
  0xdb   :  { %4304 = vst [vmem:[#allocation47_spill] sm:$0xff] %v3597_v58 }
  0xdc   :  { %4305 = vst [vmem:[#allocation48_spill] sm:$0xff] %v3599_v12 }
  0xdd   :  { %4307 = vst [vmem:[#allocation50_spill] sm:$0xff] %v3611_v55 }
  0xde   :  { %978 = vmatpush.bf16.msrb.mxu2 %v3012_v41 }
  0xdf   :  { %v3613_v28 = vpop.f32.mrf.mxu2 }
  0xe0   :  { %4308 = vst [vmem:[#allocation51_spill] sm:$0xff] %v3613_v28  ;;  %v3615_v11 = vpop.f32.mrf.mxu3  ;;  %v648_v58 = vpop.f32.mrf.mxu0 }
  0xe1   :  { %4309 = vst [vmem:[#allocation52_spill] sm:$0xff] %v3615_v11  ;;  %v661_v12 = vpop.f32.mrf.mxu1 }
  0xe2   :  { %v662_v16 = vadd.f32 %v661_v12, %v648_v58  ;;  %979 = vmatpush.bf16.msrb.mxu2 %v3046_v53 }
  0xe4   :  { %v691_v45 = vadd.f32 %v662_v16, %v271_v50 }
  0xe6   :  { %v2478_v34 = vmul.f32 -1.442695, %v691_v45  ;;  %980 = vmatpush.bf16.msrb.mxu2 %v3082_v1 }
  0xe7   :  { %v674_v25 = vpop.f32.mrf.mxu2 }
  0xe8   :  { %2631 = vpow2.f32 %v2478_v34  ;;  %v687_v28 = vpop.f32.mrf.mxu3  ;;  %v650_v11 = vpop.f32.mrf.mxu0 }
  0xe9   :  { %v688_v62 = vadd.f32 %v687_v28, %v674_v25  ;;  %v663_v55 = vpop.f32.mrf.mxu1 }
  0xea   :  { %981 = vmatpush.bf16.msrb.mxu2 %v3118_v13 }
  0xeb   :  { %v692_v3 = vadd.f32 %v688_v62, %v300_v19  ;;  %v358_v19 = vadd.f32 %v3487_v29, %v3507_v0 }
  0xed   :  { %v2479_v4 = vmul.f32 -1.442695, %v692_v3 }
  0xee   :  { %v2632_v12 = vpop.eup %2631  ;;  %982 = vmatpush.bf16.msrb.mxu2 %v3157_v26 }
  0xef   :  { %v804_v5 = vadd.f32 1.0, %v2632_v12  ;;  %2633 = vpow2.f32 %v2479_v4  ;;  %v676_v16 = vpop.f32.mrf.mxu2 }
  0xf0   :  { %v689_v45 = vpop.f32.mrf.mxu3  ;;  %v782_v50 = vpop.f32.mrf.mxu0 }
  0xf1   :  { %2635 = vrcp.f32 %v804_v5  ;;  %v3628_v34 = vadd.f32 %v782_v50, %v3485_v24  ;;  %v795_v58 = vpop.f32.mrf.mxu1  ;;  %v816_v11 = vand.u32 2147483648, %v804_v5  ;;  %v814_v16 = vand.u32 2147483647, %v804_v5 }
  0xf2   :  { %983 = vmatpush.bf16.msrb.mxu2 %v3196_v40  ;;  %v800_v28 = vadd.f32 %v795_v58, %v358_v19  ;;  %vm810_vm1 = vweird.f32 %v804_v5 }
  0xf3   :  { %v817_v58 = vor.u32 1.1754944e-38, %v816_v11  ;;  %vm815_vm3 = vcmp.eq.f32.partialorder %v814_v16, 8.507059e+37 }
  0xf5   :  { %v2634_v25 = vpop.eup %2633 }
  0xf6   :  { %v823_v3 = vadd.f32 1.0, %v2634_v25  ;;  %984 = vmatpush.bf16.msrb.mxu2 %v3232_v57  ;;  %v3639_v25 = vld [vmem:[%s4196_s1] sm:$0xff] }
  0xf7   :  { %v2636_v62 = vpop.eup %2635  ;;  %4310 = vst [vmem:[#allocation53_spill] sm:$0xff] %v3639_v25  ;;  %vm926_vm4 = vcmp.eq.s32.totalorder %v3639_v25, 1  ;;  %vm1098_vm14 = vcmp.eq.s32.totalorder %v3639_v25, 2 }
  0xf8   :  { %v806_v14 = vmul.f32 %v2636_v62, %v804_v5  ;;  %2637 = vrcp.f32 %v823_v3  ;;  %v784_v4 = vpop.f32.mrf.mxu0  ;;  %vm811_vm0 = vweird.f32 %v2636_v62  ;;  %v835_v0 = vand.u32 2147483648, %v823_v3 }
  0xf9   :  { %v797_v55 = vpop.f32.mrf.mxu1  ;;  %2639 = vtanh.f32 %v800_v28  ;;  %vm812_vm2 = vmor %vm810_vm1, %vm811_vm0  ;;  %v833_v11 = vand.u32 2147483647, %v823_v3  ;;  %vm829_vm6 = vweird.f32 %v823_v3 }
  0xfa   :  { %v807_v24 = vsub.f32 1.0, %v806_v14  ;;  %985 = vmatpush.bf16.msrb.mxu2 %v3274_v15  ;;  %v4311_v55 = vmov 0   ;;  %v836_v51 = vor.u32 1.1754944e-38, %v835_v0 }
  0xfb   :  { %vm834_vm8 = vcmp.eq.f32.partialorder %v833_v11, 8.507059e+37 }
  0xfc   :  { %v808_v12 = vmul.f32 %v2636_v62, %v807_v24  ;;  %v927_v24 = vsel %vm926_vm4, 1, %v4311_v55 }
  0xfd   :  { %929 = vperm.xlu0 %2628, %v927_v24  }
  0xfe   :  { %v2638_v29 = vpop.eup %2637  ;;  %v809_v45 = vadd.f32 %v2636_v62, %v808_v12 }
  0xff   :  { %v825_v50 = vmul.f32 %v2638_v29, %v823_v3  ;;  %v2640_v28 = vpop.eup %2639  ;;  %vm830_vm5 = vweird.f32 %v2638_v29 }
 0x100   :  { %v813_v19 = vsel %vm812_vm2, %v2636_v62, %v809_v45  ;;  %vm831_vm7 = vmor %vm829_vm6, %vm830_vm5 }
 0x101   :  { %v826_v14 = vsub.f32 1.0, %v825_v50  ;;  %v818_v4 = vsel %vm815_vm3, %v817_v58, %v813_v19 }
 0x102   :  { %v841_v12 = vmul.f32 %v2640_v28, %v818_v4 }
 0x103   :  { %v827_v5 = vmul.f32 %v2638_v29, %v826_v14 }
 0x105   :  { %v828_v38 = vadd.f32 %v2638_v29, %v827_v5 }
 0x107   :  { %v832_v15 = vsel %vm831_vm7, %v2638_v29, %v828_v38 }
 0x108   :  { %v837_v62 = vsel %vm834_vm8, %v836_v51, %v832_v15 }
 0x109   :  { %v840_v16 = vmul.f32 0.0, %v837_v62 }
 0x10b   :  { %v3643_v45 = vadd.f32 %v841_v12, %v840_v16 }
 0x10d   :  { %v843_v50 = vpack.c.bf16 %v3643_v45, %v3643_v45 }
 0x10f   :  { %900 = vmatmul.bf16.vlgmr.msra.gmra.mxu2 %v843_v50  ;;  %960 = vmatmul.bf16.vlgmr.msrb.gmra.mxu0 %v843_v50 }
 0x110   :  { %1111 = vmatpush.bf16.msra.mxu2 %v3029_v47  ;;  %1137 = vmatpush.bf16.msrb.mxu0 %v3001_v37 }
 0x114   :  { %1112 = vmatpush.bf16.msra.mxu2 %v3064_v59  ;;  %1138 = vmatpush.bf16.msrb.mxu0 %v3034_v49 }
 0x118   :  { %1113 = vmatpush.bf16.msra.mxu2 %v3100_v7  ;;  %1139 = vmatpush.bf16.msrb.mxu0 %v3070_v61 }
 0x11c   :  { %1114 = vmatpush.bf16.msra.mxu2 %v3139_v20  ;;  %1140 = vmatpush.bf16.msrb.mxu0 %v3106_v9 }
 0x11f   :  { %986 = vmatmul.bf16.vlgmr.msrb.gmra.mxu2 %v843_v50 }
 0x120   :  { %1115 = vmatpush.bf16.msra.mxu2 %v3175_v32  ;;  %1141 = vmatpush.bf16.msrb.mxu0 %v3145_v22 }
 0x124   :  { %1116 = vmatpush.bf16.msra.mxu2 %v3199_v42  ;;  %1142 = vmatpush.bf16.msrb.mxu0 %v3187_v36 }
 0x128   :  { %1117 = vmatpush.bf16.msra.mxu2 %v3247_v2  ;;  %1143 = vmatpush.bf16.msrb.mxu0 %v3220_v52 }
 0x12c   :  { %1118 = vmatpush.bf16.msra.mxu2 %v3283_v18  ;;  %1144 = vmatpush.bf16.msrb.mxu0 %v3262_v10 }
 0x130   :  { %1165 = vmatpush.bf16.msrb.mxu2 %v3288_v23 }
 0x134   :  { %1166 = vmatpush.bf16.msrb.mxu2 %v3313_v31 }
 0x138   :  { %1167 = vmatpush.bf16.msrb.mxu2 %v3331_v44 }
 0x13c   :  { %1168 = vmatpush.bf16.msrb.mxu2 %v3350_v56 }
 0x140   :  { %1169 = vmatpush.bf16.msrb.mxu2 %v3372_v6 }
 0x144   :  { %1170 = vmatpush.bf16.msrb.mxu2 %v3394_v27 }
 0x148   :  { %1171 = vmatpush.bf16.msrb.mxu2 %v3412_v39 }
 0x14c   :  { %1172 = vmatpush.bf16.msrb.mxu2 %v3431_v63 }
 0x18c   :  { %v3671_v15 = vpop.f32.mrf.mxu0 }
 0x192   :  { %v901_v0 = vpop.f32.mrf.mxu2 }
 0x193   :  { %v905_v38 = vadd.f32 %v901_v0, %v3628_v34 }
 0x194   :  { %v963_v51 = vpop.f32.mrf.mxu0 }
 0x195   :  { %v2512_v3 = vmul.f32 -1.442695, %v905_v38 }
 0x197   :  { %2641 = vpow2.f32 %v2512_v3  ;;  %v4312_v3 = vld [vmem:[#allocation44_spill] sm:$0xff] }
 0x19a   :  { %v903_v29 = vpop.f32.mrf.mxu2 }
 0x19b   :  { %v4313_v29 = vld [vmem:[#allocation6_spill] sm:$0xff] }
 0x19d   :  { %v2642_v58 = vpop.eup %2641 }
 0x19e   :  { %v909_v19 = vadd.f32 1.0, %v2642_v58  ;;  %v4314_v58 = vld [vmem:[#allocation49_spill] sm:$0xff] }
 0x1a0   :  { %2643 = vrcp.f32 %v909_v19  ;;  %v921_v5 = vand.u32 2147483648, %v909_v19  ;;  %v919_v62 = vand.u32 2147483647, %v909_v19  ;;  %vm915_vm10 = vweird.f32 %v909_v19 }
 0x1a2   :  { %v987_v28 = vpop.f32.mrf.mxu2  ;;  %v922_v34 = vor.u32 1.1754944e-38, %v921_v5  ;;  %vm920_vm12 = vcmp.eq.f32.partialorder %v919_v62, 8.507059e+37  ;;  %v4320_v5 = vld [vmem:[#allocation11_spill] sm:$0xff]  ;;  %v4322_v62 = vld [vmem:[#allocation13_spill] sm:$0xff] }
 0x1a6   :  { %v2644_v14 = vpop.eup %2643 }
 0x1a7   :  { %v911_v4 = vmul.f32 %v2644_v14, %v909_v19  ;;  %vm916_vm9 = vweird.f32 %v2644_v14  ;;  %v4315_v19 = vld [vmem:[#allocation8_spill] sm:$0xff] }
 0x1a8   :  { %vm917_vm11 = vmor %vm915_vm10, %vm916_vm9 }
 0x1a9   :  { %v912_v24 = vsub.f32 1.0, %v911_v4  ;;  %v4317_v4 = vld [vmem:[#allocation9_spill] sm:$0xff] }
 0x1aa   :  { %v989_v12 = vpop.f32.mrf.mxu2 }
 0x1ab   :  { %v913_v11 = vmul.f32 %v2644_v14, %v912_v24  ;;  %v4318_v24 = vld [vmem:[#allocation50_spill] sm:$0xff] }
 0x1ac   :  { %v4319_v12 = vld [vmem:[#allocation10_spill] sm:$0xff] }
 0x1ad   :  { %v914_v16 = vadd.f32 %v2644_v14, %v913_v11  ;;  %v4321_v11 = vld [vmem:[#allocation12_spill] sm:$0xff] }
 0x1af   :  { %v918_v50 = vsel %vm917_vm11, %v2644_v14, %v914_v16  ;;  %v4316_v14 = vld [vmem:[#allocation7_spill] sm:$0xff]  ;;  %v4323_v16 = vld [vmem:[#allocation14_spill] sm:$0xff] }
 0x1b0   :  { %v923_v0 = vsel %vm920_vm12, %v922_v34, %v918_v50  ;;  %v4324_v34 = vld [vmem:[#allocation15_spill] sm:$0xff]  ;;  %v4325_v50 = vld [vmem:[#allocation16_spill] sm:$0xff] }
 0x1b1   :  { %v3675_v38 = vmul.f32 %v923_v0, %v3643_v45 }
 0x1b3   :  { %v938_v51 = vpack.c.bf16 %v3675_v38, %v3675_v38 }
 0x1b5   :  { %947 = vmatmul.bf16.vlgmr.msra.gmra.mxu3 %v938_v51  ;;  %973 = vmatmul.bf16.vlgmr.msrb.gmra.mxu1 %v938_v51 }
 0x1b6   :  { %1014 = vmatmul.bf16.vlgmr.msra.gmra.mxu0 %v938_v51  ;;  %1124 = vmatpush.bf16.msra.mxu3 %v3032_v48 }
 0x1b7   :  { %1150 = vmatpush.bf16.msrb.mxu1 %v3012_v41  ;;  %1236 = vmatpush.bf16.msra.mxu0 %v3529_v30 }
 0x1ba   :  { %1125 = vmatpush.bf16.msra.mxu3 %v3068_v60 }
 0x1bb   :  { %1151 = vmatpush.bf16.msrb.mxu1 %v3046_v53  ;;  %1237 = vmatpush.bf16.msra.mxu0 %v3539_v43 }
 0x1be   :  { %1126 = vmatpush.bf16.msra.mxu3 %v3104_v8 }
 0x1bf   :  { %1152 = vmatpush.bf16.msrb.mxu1 %v3082_v1  ;;  %1238 = vmatpush.bf16.msra.mxu0 %v3556_v54 }
 0x1c2   :  { %1127 = vmatpush.bf16.msra.mxu3 %v3143_v21 }
 0x1c3   :  { %1153 = vmatpush.bf16.msrb.mxu1 %v3118_v13  ;;  %1239 = vmatpush.bf16.msra.mxu0 %v3563_v17 }
 0x1c5   :  { %1001 = vmatmul.bf16.vlgmr.msrb.gmra.mxu3 %v938_v51  ;;  %v4326_v51 = vld [vmem:[#allocation22_spill] sm:$0xff] }
 0x1c6   :  { %1128 = vmatpush.bf16.msra.mxu3 %v3179_v33 }
 0x1c7   :  { %1154 = vmatpush.bf16.msrb.mxu1 %v3157_v26  ;;  %1240 = vmatpush.bf16.msra.mxu0 %v3580_v35 }
 0x1ca   :  { %1129 = vmatpush.bf16.msra.mxu3 %v3211_v46 }
 0x1cb   :  { %1155 = vmatpush.bf16.msrb.mxu1 %v3196_v40  ;;  %1241 = vmatpush.bf16.msra.mxu0 %v4312_v3 }
 0x1ce   :  { %1130 = vmatpush.bf16.msra.mxu3 %v4313_v29  ;;  %v4329_v29 = vld [vmem:[#allocation18_spill] sm:$0xff] }
 0x1cf   :  { %1156 = vmatpush.bf16.msrb.mxu1 %v3232_v57  ;;  %1242 = vmatpush.bf16.msra.mxu0 %v4314_v58 }
 0x1d2   :  { %1131 = vmatpush.bf16.msra.mxu3 %v4315_v19 }
 0x1d3   :  { %1157 = vmatpush.bf16.msrb.mxu1 %v4316_v14  ;;  %1243 = vmatpush.bf16.msra.mxu0 %v4318_v24  ;;  %v4327_v14 = vld [vmem:[#allocation19_spill] sm:$0xff] }
 0x1d6   :  { %1178 = vmatpush.bf16.msrb.mxu3 %v4317_v4  ;;  %v302_v4 = vadd.f32 %v4327_v14, %v4326_v51 }
 0x1da   :  { %1179 = vmatpush.bf16.msrb.mxu3 %v4319_v12 }
 0x1de   :  { %1180 = vmatpush.bf16.msrb.mxu3 %v4320_v5  ;;  %v4328_v5 = vld [vmem:[#allocation20_spill] sm:$0xff] }
 0x1e2   :  { %1181 = vmatpush.bf16.msrb.mxu3 %v4321_v11  ;;  %v273_v11 = vadd.f32 %v4329_v29, %v4328_v5 }
 0x1e6   :  { %1182 = vmatpush.bf16.msrb.mxu3 %v4322_v62 }
 0x1ea   :  { %1183 = vmatpush.bf16.msrb.mxu3 %v4323_v16 }
 0x1ee   :  { %1184 = vmatpush.bf16.msrb.mxu3 %v4324_v34 }
 0x1f2   :  { %1185 = vmatpush.bf16.msrb.mxu3 %v4325_v50 }
 0x232   :  { %v974_v0 = vpop.f32.mrf.mxu1 }
 0x233   :  { %v988_v19 = vadd.f32 %v987_v28, %v974_v0  ;;  %v1015_v24 = vpop.f32.mrf.mxu0 }
 0x235   :  { %v992_v58 = vadd.f32 %v988_v19, %v302_v4  ;;  %v4330_v19 = vld [vmem:[#allocation17_spill] sm:$0xff] }
 0x237   :  { %v2514_v12 = vmul.f32 -1.442695, %v992_v58  ;;  %v4331_v58 = vld [vmem:[#allocation21_spill] sm:$0xff] }
 0x238   :  { %v948_v57 = vpop.f32.mrf.mxu3  ;;  %v331_v4 = vadd.f32 %v4331_v58, %v4330_v19  ;;  %v1099_v58 = vsel %vm1098_vm14, 1, %v4311_v55 }
 0x239   :  { %2645 = vpow2.f32 %v2514_v12  ;;  %v962_v62 = vadd.f32 %v3671_v15, %v948_v57  ;;  %v4332_v15 = vld [vmem:[#allocation26_spill] sm:$0xff]  ;;  %1101 = vperm.xlu0 %2628, %v1099_v58  }
 0x23a   :  { %v976_v16 = vpop.f32.mrf.mxu1 }
 0x23b   :  { %v991_v3 = vadd.f32 %v962_v62, %v273_v11  ;;  %v1017_v34 = vpop.f32.mrf.mxu0  ;;  %v4333_v11 = vld [vmem:[#allocation23_spill] sm:$0xff] }
 0x23d   :  { %v2513_v40 = vmul.f32 -1.442695, %v991_v3  ;;  %v360_v3 = vadd.f32 %v4333_v11, %v4332_v15 }
 0x23f   :  { %v2646_v50 = vpop.eup %2645  ;;  %2647 = vpow2.f32 %v2513_v40  ;;  %v1020_v16 = vadd.f32 %v1015_v24, %v360_v3 }
 0x240   :  { %v1043_v46 = vadd.f32 1.0, %v2646_v50  ;;  %v950_v35 = vpop.f32.mrf.mxu3 }
 0x242   :  { %2649 = vrcp.f32 %v1043_v46  ;;  %v1055_v50 = vand.u32 2147483648, %v1043_v46  ;;  %vm1049_vm15 = vweird.f32 %v1043_v46 }
 0x244   :  { %v1056_v11 = vor.u32 1.1754944e-38, %v1055_v50 }
 0x245   :  { %v2648_v28 = vpop.eup %2647 }
 0x246   :  { %v1024_v14 = vadd.f32 1.0, %v2648_v28 }
 0x248   :  { %v2650_v0 = vpop.eup %2649  ;;  %2651 = vrcp.f32 %v1024_v14  ;;  %v1002_v29 = vpop.f32.mrf.mxu3  ;;  %vm1030_vm2 = vweird.f32 %v1024_v14 }
 0x249   :  { %v1045_v12 = vmul.f32 %v2650_v0, %v1043_v46  ;;  %v3718_v51 = vadd.f32 %v1002_v29, %v331_v4  ;;  %vm1050_vm13 = vweird.f32 %v2650_v0  ;;  %v1053_v4 = vand.u32 2147483647, %v1043_v46 }
 0x24a   :  { %vm1051_vm0 = vmor %vm1049_vm15, %vm1050_vm13  ;;  %2653 = vtanh.f32 %v1020_v16  ;;  %v1036_v29 = vand.u32 2147483648, %v1024_v14  ;;  %vm1270_vm13 = vcmp.eq.s32.totalorder %v3639_v25, 3 }
 0x24b   :  { %v1046_v57 = vsub.f32 1.0, %v1045_v12  ;;  %vm1054_vm3 = vcmp.eq.f32.partialorder %v1053_v4, 8.507059e+37 }
 0x24d   :  { %v1047_v62 = vmul.f32 %v2650_v0, %v1046_v57  ;;  %v1034_v57 = vand.u32 2147483647, %v1024_v14 }
 0x24e   :  { %v2652_v40 = vpop.eup %2651 }
 0x24f   :  { %v1026_v35 = vmul.f32 %v2652_v40, %v1024_v14  ;;  %v1048_v34 = vadd.f32 %v2650_v0, %v1047_v62  ;;  %vm1031_vm1 = vweird.f32 %v2652_v40  ;;  %v1037_v62 = vor.u32 1.1754944e-38, %v1036_v29  ;;  %v930_v29 = vpop.permute.xlu0 %929 }
 0x250   :  { %v1004_v28 = vpop.f32.mrf.mxu3  ;;  %vm1032_vm4 = vmor %vm1030_vm2, %vm1031_vm1  ;;  %vm1035_vm5 = vcmp.eq.f32.partialorder %v1034_v57, 8.507059e+37  ;;  %v2654_v5 = vpop.eup %2653  ;;  %vm931_vm9 = vcmp.eq.s32.totalorder %v930_v29, 1  ;;  %v4338_v29 = vld [vmem:[#allocation6_spill] sm:$0xff] }
 0x251   :  { %v1027_v19 = vsub.f32 1.0, %v1026_v35  ;;  %v1052_v24 = vsel %vm1051_vm0, %v2650_v0, %v1048_v34 }
 0x252   :  { %v1057_v28 = vsel %vm1054_vm3, %v1056_v11, %v1052_v24 }
 0x253   :  { %v1028_v12 = vmul.f32 %v2652_v40, %v1027_v19  ;;  %v1060_v46 = vmul.f32 %v1057_v28, %v3643_v45 }
 0x255   :  { %v1029_v3 = vadd.f32 %v2652_v40, %v1028_v12 }
 0x257   :  { %v1033_v15 = vsel %vm1032_vm4, %v2652_v40, %v1029_v3 }
 0x258   :  { %v1038_v35 = vsel %vm1035_vm5, %v1037_v62, %v1033_v15 }
 0x259   :  { %v1061_v58 = vmul.f32 %v2654_v5, %v1038_v35 }
 0x25b   :  { %v3725_v16 = vadd.f32 %v1061_v58, %v1060_v46 }
 0x25d   :  { %v1063_v19 = vpack.c.bf16 %v3725_v16, %v3725_v16 }
 0x25f   :  { %1072 = vmatmul.bf16.vlgmr.msra.gmra.mxu1 %v1063_v19  ;;  %1132 = vmatmul.bf16.vlgmr.msra.gmra.mxu3 %v1063_v19 }
 0x260   :  { %1283 = vmatpush.bf16.msra.mxu1 %v3029_v47  ;;  %1309 = vmatpush.bf16.msra.mxu3 %v3001_v37 }
 0x264   :  { %1284 = vmatpush.bf16.msra.mxu1 %v3064_v59  ;;  %1310 = vmatpush.bf16.msra.mxu3 %v3034_v49 }
 0x268   :  { %1285 = vmatpush.bf16.msra.mxu1 %v3100_v7  ;;  %1311 = vmatpush.bf16.msra.mxu3 %v3070_v61 }
 0x26c   :  { %1286 = vmatpush.bf16.msra.mxu1 %v3139_v20  ;;  %1312 = vmatpush.bf16.msra.mxu3 %v3106_v9 }
 0x26f   :  { %1158 = vmatmul.bf16.vlgmr.msrb.gmra.mxu1 %v1063_v19 }
 0x270   :  { %1287 = vmatpush.bf16.msra.mxu1 %v3175_v32  ;;  %1313 = vmatpush.bf16.msra.mxu3 %v3145_v22 }
 0x274   :  { %1288 = vmatpush.bf16.msra.mxu1 %v3199_v42  ;;  %1314 = vmatpush.bf16.msra.mxu3 %v3187_v36 }
 0x278   :  { %1289 = vmatpush.bf16.msra.mxu1 %v3247_v2  ;;  %1315 = vmatpush.bf16.msra.mxu3 %v3220_v52 }
 0x27c   :  { %1290 = vmatpush.bf16.msra.mxu1 %v3283_v18  ;;  %1316 = vmatpush.bf16.msra.mxu3 %v3262_v10 }
 0x280   :  { %1337 = vmatpush.bf16.msrb.mxu1 %v3288_v23 }
 0x284   :  { %1338 = vmatpush.bf16.msrb.mxu1 %v3313_v31 }
 0x288   :  { %1339 = vmatpush.bf16.msrb.mxu1 %v3331_v44 }
 0x28c   :  { %1340 = vmatpush.bf16.msrb.mxu1 %v3350_v56 }
 0x290   :  { %1341 = vmatpush.bf16.msrb.mxu1 %v3372_v6 }
 0x294   :  { %1342 = vmatpush.bf16.msrb.mxu1 %v3394_v27 }
 0x298   :  { %1343 = vmatpush.bf16.msrb.mxu1 %v3412_v39 }
 0x29c   :  { %1344 = vmatpush.bf16.msrb.mxu1 %v3431_v63 }
 0x2dc   :  { %v1073_v45 = vpop.f32.mrf.mxu1 }
 0x2dd   :  { %v1077_v5 = vadd.f32 %v1073_v45, %v3718_v51  ;;  %v1102_v51 = vpop.permute.xlu0 %1101 }
 0x2de   :  { %vm1103_vm11 = vcmp.eq.s32.totalorder %v1102_v51, 1  ;;  %v4346_v51 = vld [vmem:[#allocation11_spill] sm:$0xff] }
 0x2df   :  { %v2515_v14 = vmul.f32 -1.442695, %v1077_v5  ;;  %v932_v5 = vsel %vm931_vm9, %v3675_v38, 0.0  ;;  %v4334_v38 = vld [vmem:[#allocation43_spill] sm:$0xff] }
 0x2e1   :  { %2655 = vpow2.f32 %v2515_v14 }
 0x2e2   :  { %v3754_v0 = vpop.f32.mrf.mxu3 }
 0x2e4   :  { %v1075_v15 = vpop.f32.mrf.mxu1 }
 0x2e7   :  { %v2656_v40 = vpop.eup %2655 }
 0x2e8   :  { %v1081_v34 = vadd.f32 1.0, %v2656_v40  ;;  %v4335_v40 = vld [vmem:[#allocation4_spill] sm:$0xff] }
 0x2ea   :  { %2657 = vrcp.f32 %v1081_v34  ;;  %v1135_v50 = vpop.f32.mrf.mxu3  ;;  %v1093_v3 = vand.u32 2147483648, %v1081_v34  ;;  %v1091_v28 = vand.u32 2147483647, %v1081_v34  ;;  %vm1087_vm7 = vweird.f32 %v1081_v34 }
 0x2eb   :  { %v4337_v50 = vld [vmem:[#allocation44_spill] sm:$0xff] }
 0x2ec   :  { %v1159_v4 = vpop.f32.mrf.mxu1  ;;  %v1094_v46 = vor.u32 1.1754944e-38, %v1093_v3  ;;  %vm1092_vm10 = vcmp.eq.f32.partialorder %v1091_v28, 8.507059e+37  ;;  %v4343_v3 = vld [vmem:[#allocation9_spill] sm:$0xff]  ;;  %v4345_v28 = vld [vmem:[#allocation10_spill] sm:$0xff] }
 0x2f0   :  { %v2658_v12 = vpop.eup %2657 }
 0x2f1   :  { %v1083_v57 = vmul.f32 %v2658_v12, %v1081_v34  ;;  %vm1088_vm6 = vweird.f32 %v2658_v12  ;;  %v4336_v34 = vld [vmem:[#allocation3_spill] sm:$0xff] }
 0x2f2   :  { %vm1089_vm8 = vmor %vm1087_vm7, %vm1088_vm6 }
 0x2f3   :  { %v1084_v24 = vsub.f32 1.0, %v1083_v57  ;;  %v4340_v57 = vld [vmem:[#allocation49_spill] sm:$0xff] }
 0x2f4   :  { %v1161_v11 = vpop.f32.mrf.mxu1 }
 0x2f5   :  { %v1085_v62 = vmul.f32 %v2658_v12, %v1084_v24  ;;  %v4341_v24 = vld [vmem:[#allocation8_spill] sm:$0xff]  ;;  %v4342_v11 = vld [vmem:[#allocation7_spill] sm:$0xff] }
 0x2f7   :  { %v1086_v35 = vadd.f32 %v2658_v12, %v1085_v62  ;;  %v4344_v62 = vld [vmem:[#allocation50_spill] sm:$0xff] }
 0x2f9   :  { %v1090_v58 = vsel %vm1089_vm8, %v2658_v12, %v1086_v35  ;;  %v4339_v12 = vld [vmem:[#allocation5_spill] sm:$0xff]  ;;  %v4347_v35 = vld [vmem:[#allocation12_spill] sm:$0xff] }
 0x2fa   :  { %v1095_v19 = vsel %vm1092_vm10, %v1094_v46, %v1090_v58  ;;  %v4348_v46 = vld [vmem:[#allocation13_spill] sm:$0xff]  ;;  %v4349_v58 = vld [vmem:[#allocation14_spill] sm:$0xff] }
 0x2fb   :  { %v1097_v45 = vmul.f32 %v1095_v19, %v3725_v16  ;;  %v4350_v19 = vld [vmem:[#allocation15_spill] sm:$0xff] }
 0x2fd   :  { %v3758_v14 = vsel %vm1103_vm11, %v1097_v45, %v932_v5  ;;  %v1110_v15 = vpack.c.bf16 %v1097_v45, %v1097_v45  ;;  %v4351_v45 = vld [vmem:[#allocation16_spill] sm:$0xff] }
 0x2ff   :  { %1119 = vmatmul.bf16.vlgmr.msra.gmra.mxu2 %v1110_v15  ;;  %1145 = vmatmul.bf16.vlgmr.msrb.gmra.mxu0 %v1110_v15 }
 0x300   :  { %1186 = vmatmul.bf16.vlgmr.msrb.gmra.mxu3 %v1110_v15  ;;  %1296 = vmatpush.bf16.msra.mxu2 %v3032_v48 }
 0x301   :  { %1322 = vmatpush.bf16.msrb.mxu0 %v3012_v41  ;;  %1408 = vmatpush.bf16.msrb.mxu3 %v3529_v30 }
 0x304   :  { %1297 = vmatpush.bf16.msra.mxu2 %v3068_v60 }
 0x305   :  { %1323 = vmatpush.bf16.msrb.mxu0 %v3046_v53  ;;  %1409 = vmatpush.bf16.msrb.mxu3 %v3539_v43 }
 0x308   :  { %1298 = vmatpush.bf16.msra.mxu2 %v3104_v8 }
 0x309   :  { %1324 = vmatpush.bf16.msrb.mxu0 %v3082_v1  ;;  %1410 = vmatpush.bf16.msrb.mxu3 %v3556_v54 }
 0x30c   :  { %1299 = vmatpush.bf16.msra.mxu2 %v3143_v21 }
 0x30d   :  { %1325 = vmatpush.bf16.msrb.mxu0 %v3118_v13  ;;  %1411 = vmatpush.bf16.msrb.mxu3 %v3563_v17 }
 0x30f   :  { %1173 = vmatmul.bf16.vlgmr.msrb.gmra.mxu2 %v1110_v15 }
 0x310   :  { %1300 = vmatpush.bf16.msra.mxu2 %v3179_v33 }
 0x311   :  { %1326 = vmatpush.bf16.msrb.mxu0 %v3157_v26  ;;  %1412 = vmatpush.bf16.msrb.mxu3 %v4334_v38 }
 0x314   :  { %1301 = vmatpush.bf16.msra.mxu2 %v4335_v40 }
 0x315   :  { %1327 = vmatpush.bf16.msrb.mxu0 %v4336_v34  ;;  %1413 = vmatpush.bf16.msrb.mxu3 %v4337_v50 }
 0x318   :  { %1302 = vmatpush.bf16.msra.mxu2 %v4338_v29 }
 0x319   :  { %1328 = vmatpush.bf16.msrb.mxu0 %v4339_v12  ;;  %1414 = vmatpush.bf16.msrb.mxu3 %v4340_v57 }
 0x31c   :  { %1303 = vmatpush.bf16.msra.mxu2 %v4341_v24 }
 0x31d   :  { %1329 = vmatpush.bf16.msrb.mxu0 %v4342_v11  ;;  %1415 = vmatpush.bf16.msrb.mxu3 %v4344_v62  ;;  %v4352_v11 = vld [vmem:[#allocation25_spill] sm:$0xff] }
 0x320   :  { %1350 = vmatpush.bf16.msrb.mxu2 %v4343_v3 }
 0x324   :  { %1351 = vmatpush.bf16.msrb.mxu2 %v4345_v28 }
 0x328   :  { %1352 = vmatpush.bf16.msrb.mxu2 %v4346_v51 }
 0x32c   :  { %1353 = vmatpush.bf16.msrb.mxu2 %v4347_v35  ;;  %v4353_v35 = vld [vmem:[#allocation24_spill] sm:$0xff] }
 0x330   :  { %1354 = vmatpush.bf16.msrb.mxu2 %v4348_v46 }
 0x334   :  { %1355 = vmatpush.bf16.msrb.mxu2 %v4349_v58 }
 0x338   :  { %1356 = vmatpush.bf16.msrb.mxu2 %v4350_v19 }
 0x33c   :  { %1357 = vmatpush.bf16.msrb.mxu2 %v4351_v45 }
 0x37c   :  { %v1146_v5 = vpop.f32.mrf.mxu0 }
 0x37d   :  { %v1160_v15 = vadd.f32 %v1159_v4, %v1146_v5 }
 0x37f   :  { %v1164_v3 = vadd.f32 %v1160_v15, %v4352_v11 }
 0x381   :  { %v2517_v24 = vmul.f32 -1.442695, %v1164_v3 }
 0x382   :  { %v1120_v62 = vpop.f32.mrf.mxu2 }
 0x383   :  { %2659 = vpow2.f32 %v2517_v24  ;;  %v1134_v28 = vadd.f32 %v3754_v0, %v1120_v62  ;;  %v1187_v51 = vpop.f32.mrf.mxu3  ;;  %v4354_v24 = vld [vmem:[#allocation27_spill] sm:$0xff] }
 0x384   :  { %v1148_v57 = vpop.f32.mrf.mxu0 }
 0x385   :  { %v1163_v12 = vadd.f32 %v1134_v28, %v4353_v35  ;;  %v4355_v28 = vld [vmem:[#allocation29_spill] sm:$0xff] }
 0x387   :  { %v2516_v46 = vmul.f32 -1.442695, %v1163_v12  ;;  %v1192_v12 = vadd.f32 %v1187_v51, %v4355_v28 }
 0x389   :  { %v2660_v29 = vpop.eup %2659  ;;  %2661 = vpow2.f32 %v2516_v46 }
 0x38a   :  { %v1215_v58 = vadd.f32 1.0, %v2660_v29  ;;  %v1122_v19 = vpop.f32.mrf.mxu2 }
 0x38b   :  { %v1189_v50 = vpop.f32.mrf.mxu3  ;;  %v1271_v19 = vsel %vm1270_vm13, 1, %v4311_v55 }
 0x38c   :  { %2663 = vrcp.f32 %v1215_v58  ;;  %v1227_v50 = vand.u32 2147483648, %v1215_v58  ;;  %vm1221_vm14 = vweird.f32 %v1215_v58  ;;  %v1225_v34 = vand.u32 2147483647, %v1215_v58  ;;  %1273 = vperm.xlu1 %2629, %v1271_v19  }
 0x38e   :  { %vm1226_vm2 = vcmp.eq.f32.partialorder %v1225_v34, 8.507059e+37 }
 0x38f   :  { %v2662_v45 = vpop.eup %2661 }
 0x390   :  { %v1196_v4 = vadd.f32 1.0, %v2662_v45 }
 0x392   :  { %v2664_v5 = vpop.eup %2663  ;;  %2665 = vrcp.f32 %v1196_v4  ;;  %v1174_v11 = vpop.f32.mrf.mxu2  ;;  %vm1202_vm1 = vweird.f32 %v1196_v4 }
 0x393   :  { %v1217_v3 = vmul.f32 %v2664_v5, %v1215_v58  ;;  %v3796_v15 = vadd.f32 %v1174_v11, %v4354_v24  ;;  %vm1222_vm12 = vweird.f32 %v2664_v5  ;;  %v1208_v11 = vand.u32 2147483648, %v1196_v4 }
 0x394   :  { %vm1223_vm15 = vmor %vm1221_vm14, %vm1222_vm12  ;;  %2667 = vtanh.f32 %v1192_v12  ;;  %v1206_v24 = vand.u32 2147483647, %v1196_v4 }
 0x395   :  { %v1218_v0 = vsub.f32 1.0, %v1217_v3  ;;  %v1209_v28 = vor.u32 1.1754944e-38, %v1208_v11 }
 0x396   :  { %vm1207_vm4 = vcmp.eq.f32.partialorder %v1206_v24, 8.507059e+37 }
 0x397   :  { %v1219_v57 = vmul.f32 %v2664_v5, %v1218_v0  ;;  %v1228_v0 = vor.u32 1.1754944e-38, %v1227_v50 }
 0x398   :  { %v2666_v62 = vpop.eup %2665 }
 0x399   :  { %v1198_v35 = vmul.f32 %v2666_v62, %v1196_v4  ;;  %v1220_v46 = vadd.f32 %v2664_v5, %v1219_v57  ;;  %vm1203_vm0 = vweird.f32 %v2666_v62 }
 0x39a   :  { %v1176_v29 = vpop.f32.mrf.mxu2  ;;  %vm1204_vm3 = vmor %vm1202_vm1, %vm1203_vm0  ;;  %v2668_v55 = vpop.eup %2667 }
 0x39b   :  { %v1199_v45 = vsub.f32 1.0, %v1198_v35  ;;  %v1224_v51 = vsel %vm1223_vm15, %v2664_v5, %v1220_v46 }
 0x39c   :  { %v1229_v29 = vsel %vm1226_vm2, %v1228_v0, %v1224_v51 }
 0x39d   :  { %v1200_v3 = vmul.f32 %v2666_v62, %v1199_v45  ;;  %v1232_v58 = vmul.f32 %v1229_v29, %v3725_v16 }
 0x39f   :  { %v1201_v57 = vadd.f32 %v2666_v62, %v1200_v3 }
 0x3a1   :  { %v1205_v25 = vsel %vm1204_vm3, %v2666_v62, %v1201_v57 }
 0x3a2   :  { %v1210_v35 = vsel %vm1207_vm4, %v1209_v28, %v1205_v25 }
 0x3a3   :  { %v1233_v19 = vmul.f32 %v2668_v55, %v1210_v35 }
 0x3a5   :  { %v3802_v40 = vadd.f32 %v1233_v19, %v1232_v58 }
 0x3a7   :  { %v1235_v12 = vpack.c.bf16 %v3802_v40, %v3802_v40 }
 0x3a9   :  { %1244 = vmatmul.bf16.vlgmr.msra.gmra.mxu0 %v1235_v12  ;;  %1304 = vmatmul.bf16.vlgmr.msra.gmra.mxu2 %v1235_v12 }
 0x3aa   :  { %1455 = vmatpush.bf16.msra.mxu0 %v3029_v47  ;;  %1481 = vmatpush.bf16.msra.mxu2 %v3001_v37 }
 0x3ae   :  { %1456 = vmatpush.bf16.msra.mxu0 %v3064_v59  ;;  %1482 = vmatpush.bf16.msra.mxu2 %v3034_v49 }
 0x3b2   :  { %1457 = vmatpush.bf16.msra.mxu0 %v3100_v7  ;;  %1483 = vmatpush.bf16.msra.mxu2 %v3070_v61 }
 0x3b6   :  { %1458 = vmatpush.bf16.msra.mxu0 %v3139_v20  ;;  %1484 = vmatpush.bf16.msra.mxu2 %v3106_v9 }
 0x3b9   :  { %1330 = vmatmul.bf16.vlgmr.msrb.gmra.mxu0 %v1235_v12 }
 0x3ba   :  { %1459 = vmatpush.bf16.msra.mxu0 %v3175_v32  ;;  %1485 = vmatpush.bf16.msra.mxu2 %v3145_v22 }
 0x3be   :  { %1460 = vmatpush.bf16.msra.mxu0 %v3199_v42  ;;  %1486 = vmatpush.bf16.msra.mxu2 %v3187_v36 }
 0x3c2   :  { %1461 = vmatpush.bf16.msra.mxu0 %v3247_v2  ;;  %1487 = vmatpush.bf16.msra.mxu2 %v3220_v52 }
 0x3c6   :  { %1462 = vmatpush.bf16.msra.mxu0 %v3283_v18  ;;  %1488 = vmatpush.bf16.msra.mxu2 %v3262_v10 }
 0x3ca   :  { %1509 = vmatpush.bf16.msrb.mxu0 %v3288_v23 }
 0x3ce   :  { %1510 = vmatpush.bf16.msrb.mxu0 %v3313_v31 }
 0x3d2   :  { %1511 = vmatpush.bf16.msrb.mxu0 %v3331_v44 }
 0x3d6   :  { %1512 = vmatpush.bf16.msrb.mxu0 %v3350_v56 }
 0x3da   :  { %1513 = vmatpush.bf16.msrb.mxu0 %v3372_v6 }
 0x3de   :  { %1514 = vmatpush.bf16.msrb.mxu0 %v3394_v27 }
 0x3e2   :  { %1515 = vmatpush.bf16.msrb.mxu0 %v3412_v39 }
 0x3e6   :  { %1516 = vmatpush.bf16.msrb.mxu0 %v3431_v63 }
 0x426   :  { %v1245_v25 = vpop.f32.mrf.mxu0 }
 0x427   :  { %v1249_v55 = vadd.f32 %v1245_v25, %v3796_v15  ;;  %v1274_v15 = vpop.permute.xlu1 %1273 }
 0x428   :  { %vm1275_vm9 = vcmp.eq.s32.totalorder %v1274_v15, 1  ;;  %v4374_v15 = vld [vmem:[#allocation28_spill] sm:$0xff] }
 0x429   :  { %v2518_v16 = vmul.f32 -1.442695, %v1249_v55  ;;  %v4360_v55 = vld [vmem:[#allocation5_spill] sm:$0xff] }
 0x42b   :  { %2669 = vpow2.f32 %v2518_v16  ;;  %v4361_v16 = vld [vmem:[#allocation49_spill] sm:$0xff] }
 0x42c   :  { %v3831_v34 = vpop.f32.mrf.mxu2 }
 0x42e   :  { %v1247_v4 = vpop.f32.mrf.mxu0 }
 0x42f   :  { %v4363_v4 = vld [vmem:[#allocation7_spill] sm:$0xff] }
 0x431   :  { %v2670_v5 = vpop.eup %2669 }
 0x432   :  { %v1253_v62 = vadd.f32 1.0, %v2670_v5  ;;  %v4364_v5 = vld [vmem:[#allocation9_spill] sm:$0xff] }
 0x434   :  { %2671 = vrcp.f32 %v1253_v62  ;;  %v1307_v46 = vpop.f32.mrf.mxu2  ;;  %v1265_v51 = vand.u32 2147483648, %v1253_v62  ;;  %v1263_v57 = vand.u32 2147483647, %v1253_v62  ;;  %vm1259_vm6 = vweird.f32 %v1253_v62 }
 0x435   :  { %v4367_v46 = vld [vmem:[#allocation11_spill] sm:$0xff] }
 0x436   :  { %v3833_v50 = vpop.f32.mrf.mxu0  ;;  %v1266_v29 = vor.u32 1.1754944e-38, %v1265_v51  ;;  %vm1264_vm8 = vcmp.eq.f32.partialorder %v1263_v57, 8.507059e+37  ;;  %v4372_v51 = vld [vmem:[#allocation16_spill] sm:$0xff] }
 0x437   :  { %v4373_v57 = vld [vmem:[#allocation20_spill] sm:$0xff] }
 0x43a   :  { %v2672_v45 = vpop.eup %2671 }
 0x43b   :  { %v1255_v11 = vmul.f32 %v2672_v45, %v1253_v62  ;;  %vm1260_vm5 = vweird.f32 %v2672_v45  ;;  %v4365_v62 = vld [vmem:[#allocation50_spill] sm:$0xff] }
 0x43c   :  { %vm1261_vm7 = vmor %vm1259_vm6, %vm1260_vm5 }
 0x43d   :  { %v1256_v3 = vsub.f32 1.0, %v1255_v11  ;;  %v4369_v11 = vld [vmem:[#allocation13_spill] sm:$0xff] }
 0x43e   :  { %v1333_v24 = vpop.f32.mrf.mxu0 }
 0x43f   :  { %v1257_v0 = vmul.f32 %v2672_v45, %v1256_v3  ;;  %v4370_v3 = vld [vmem:[#allocation14_spill] sm:$0xff]  ;;  %v4371_v24 = vld [vmem:[#allocation15_spill] sm:$0xff] }
 0x441   :  { %v1258_v28 = vadd.f32 %v2672_v45, %v1257_v0 }
 0x443   :  { %v1262_v35 = vsel %vm1261_vm7, %v2672_v45, %v1258_v28  ;;  %v4368_v45 = vld [vmem:[#allocation12_spill] sm:$0xff]  ;;  %v278_v28 = vadd.f32 %v4374_v15, %v4373_v57  ;;  %v4377_v15 = vld [vmem:[#allocation17_spill] sm:$0xff]  ;;  %v4378_v57 = vld [vmem:[#allocation31_spill] sm:$0xff] }
 0x444   :  { %v1267_v58 = vsel %vm1264_vm8, %v1266_v29, %v1262_v35 }
 0x445   :  { %v1269_v19 = vmul.f32 %v1267_v58, %v3802_v40 }
 0x447   :  { %v3837_v12 = vsel %vm1275_vm9, %v1269_v19, %v3758_v14  ;;  %v1282_v25 = vpack.c.bf16 %v1269_v19, %v1269_v19  ;;  %v4358_v14 = vld [vmem:[#allocation44_spill] sm:$0xff] }
 0x449   :  { %1291 = vmatmul.bf16.vlgmr.msra.gmra.mxu1 %v1282_v25  ;;  %1317 = vmatmul.bf16.vlgmr.msra.gmra.mxu3 %v1282_v25 }
 0x44a   :  { %1358 = vmatmul.bf16.vlgmr.msrb.gmra.mxu2 %v1282_v25  ;;  %1468 = vmatpush.bf16.msra.mxu1 %v3032_v48 }
 0x44b   :  { %1494 = vmatpush.bf16.msra.mxu3 %v3012_v41  ;;  %1580 = vmatpush.bf16.msrb.mxu2 %v3529_v30  ;;  %v4356_v30 = vld [vmem:[#allocation4_spill] sm:$0xff] }
 0x44e   :  { %1469 = vmatpush.bf16.msra.mxu1 %v3068_v60 }
 0x44f   :  { %1495 = vmatpush.bf16.msra.mxu3 %v3046_v53  ;;  %1581 = vmatpush.bf16.msrb.mxu2 %v3539_v43  ;;  %v4357_v43 = vld [vmem:[#allocation3_spill] sm:$0xff] }
 0x452   :  { %1470 = vmatpush.bf16.msra.mxu1 %v3104_v8 }
 0x453   :  { %1496 = vmatpush.bf16.msra.mxu3 %v3082_v1  ;;  %1582 = vmatpush.bf16.msrb.mxu2 %v3556_v54  ;;  %v4359_v54 = vld [vmem:[#allocation6_spill] sm:$0xff] }
 0x456   :  { %1471 = vmatpush.bf16.msra.mxu1 %v3143_v21 }
 0x457   :  { %1497 = vmatpush.bf16.msra.mxu3 %v3118_v13  ;;  %1583 = vmatpush.bf16.msrb.mxu2 %v3563_v17  ;;  %v4362_v17 = vld [vmem:[#allocation8_spill] sm:$0xff] }
 0x459   :  { %1345 = vmatmul.bf16.vlgmr.msrb.gmra.mxu1 %v1282_v25  ;;  %v4375_v25 = vld [vmem:[#allocation22_spill] sm:$0xff] }
 0x45a   :  { %1472 = vmatpush.bf16.msra.mxu1 %v3179_v33 }
 0x45b   :  { %1498 = vmatpush.bf16.msra.mxu3 %v3157_v26  ;;  %1584 = vmatpush.bf16.msrb.mxu2 %v4334_v38  ;;  %v4366_v38 = vld [vmem:[#allocation10_spill] sm:$0xff] }
 0x45e   :  { %1473 = vmatpush.bf16.msra.mxu1 %v4356_v30 }
 0x45f   :  { %1499 = vmatpush.bf16.msra.mxu3 %v4357_v43  ;;  %1585 = vmatpush.bf16.msrb.mxu2 %v4358_v14  ;;  %v4376_v14 = vld [vmem:[#allocation30_spill] sm:$0xff] }
 0x462   :  { %1474 = vmatpush.bf16.msra.mxu1 %v4359_v54 }
 0x463   :  { %1500 = vmatpush.bf16.msra.mxu3 %v4360_v55  ;;  %1586 = vmatpush.bf16.msrb.mxu2 %v4361_v16  ;;  %v307_v16 = vadd.f32 %v4376_v14, %v4375_v25  ;;  %v4380_v14 = vld [vmem:[#allocation32_spill] sm:$0xff] }
 0x466   :  { %1475 = vmatpush.bf16.msra.mxu1 %v4362_v17 }
 0x467   :  { %1501 = vmatpush.bf16.msra.mxu3 %v4363_v4  ;;  %1587 = vmatpush.bf16.msrb.mxu2 %v4365_v62 }
 0x46a   :  { %1522 = vmatpush.bf16.msrb.mxu1 %v4364_v5 }
 0x46e   :  { %1523 = vmatpush.bf16.msrb.mxu1 %v4366_v38 }
 0x472   :  { %1524 = vmatpush.bf16.msrb.mxu1 %v4367_v46 }
 0x476   :  { %1525 = vmatpush.bf16.msrb.mxu1 %v4368_v45 }
 0x47a   :  { %1526 = vmatpush.bf16.msrb.mxu1 %v4369_v11 }
 0x47e   :  { %1527 = vmatpush.bf16.msrb.mxu1 %v4370_v3 }
 0x482   :  { %1528 = vmatpush.bf16.msrb.mxu1 %v4371_v24 }
 0x486   :  { %1529 = vmatpush.bf16.msrb.mxu1 %v4372_v51 }
 0x4c6   :  { %v1292_v0 = vpop.f32.mrf.mxu1 }
 0x4c7   :  { %v1306_v29 = vadd.f32 %v3831_v34, %v1292_v0  ;;  %v336_v34 = vadd.f32 %v4378_v57, %v4377_v15 }
 0x4c9   :  { %v1335_v35 = vadd.f32 %v1306_v29, %v278_v28 }
 0x4cb   :  { %v2519_v58 = vmul.f32 -1.442695, %v1335_v35 }
 0x4cc   :  { %v1318_v19 = vpop.f32.mrf.mxu3 }
 0x4cd   :  { %2673 = vpow2.f32 %v2519_v58  ;;  %v1332_v62 = vadd.f32 %v3833_v50, %v1318_v19  ;;  %v1359_v3 = vpop.f32.mrf.mxu2  ;;  %v4379_v58 = vld [vmem:[#allocation26_spill] sm:$0xff] }
 0x4ce   :  { %v1294_v11 = vpop.f32.mrf.mxu1  ;;  %v365_v50 = vadd.f32 %v4380_v14, %v4379_v58 }
 0x4cf   :  { %v1336_v24 = vadd.f32 %v1332_v62, %v307_v16 }
 0x4d1   :  { %v2520_v45 = vmul.f32 -1.442695, %v1336_v24  ;;  %v1364_v24 = vadd.f32 %v1359_v3, %v365_v50 }
 0x4d3   :  { %v2674_v51 = vpop.eup %2673  ;;  %2675 = vpow2.f32 %v2520_v45 }
 0x4d4   :  { %v1368_v46 = vadd.f32 1.0, %v2674_v51  ;;  %v1320_v38 = vpop.f32.mrf.mxu3 }
 0x4d5   :  { %v1361_v0 = vpop.f32.mrf.mxu2 }
 0x4d6   :  { %2677 = vrcp.f32 %v1368_v46  ;;  %v1346_v28 = vpop.f32.mrf.mxu1  ;;  %v1380_v38 = vand.u32 2147483648, %v1368_v46  ;;  %v1378_v57 = vand.u32 2147483647, %v1368_v46  ;;  %vm1374_vm11 = vweird.f32 %v1368_v46 }
 0x4d7   :  { %v3879_v29 = vadd.f32 %v1346_v28, %v336_v34  ;;  %v4381_v28 = vld [vmem:[#allocation53_spill] sm:$0xff] }
 0x4d8   :  { %vm1442_vm12 = vcmp.eq.s32.totalorder %v4381_v28, 4  ;;  %v1381_v14 = vor.u32 1.1754944e-38, %v1380_v38  ;;  %vm1379_vm14 = vcmp.eq.f32.partialorder %v1378_v57, 8.507059e+37 }
 0x4d9   :  { %v2676_v35 = vpop.eup %2675 }
 0x4da   :  { %v1387_v19 = vadd.f32 1.0, %v2676_v35  ;;  %v4382_v35 = vmov 0  }
 0x4db   :  { %v1443_v58 = vsel %vm1442_vm12, 1, %v4382_v35 }
 0x4dc   :  { %v2678_v11 = vpop.eup %2677  ;;  %2679 = vrcp.f32 %v1387_v19  ;;  %1445 = vperm.xlu1 %2629, %v1443_v58   ;;  %vm1393_vm0 = vweird.f32 %v1387_v19 }
 0x4dd   :  { %v1370_v16 = vmul.f32 %v2678_v11, %v1368_v46  ;;  %2681 = vtanh.f32 %v1364_v24  ;;  %vm1375_vm10 = vweird.f32 %v2678_v11 }
 0x4de   :  { %v1348_v45 = vpop.f32.mrf.mxu1  ;;  %vm1376_vm13 = vmor %vm1374_vm11, %vm1375_vm10 }
 0x4df   :  { %v1371_v51 = vsub.f32 1.0, %v1370_v16  ;;  %v1399_v16 = vand.u32 2147483648, %v1387_v19 }
 0x4e1   :  { %v1372_v62 = vmul.f32 %v2678_v11, %v1371_v51  ;;  %v1397_v51 = vand.u32 2147483647, %v1387_v19  ;;  %v1400_v46 = vor.u32 1.1754944e-38, %v1399_v16 }
 0x4e2   :  { %v2680_v0 = vpop.eup %2679 }
 0x4e3   :  { %v1389_v15 = vmul.f32 %v2680_v0, %v1387_v19  ;;  %v1373_v34 = vadd.f32 %v2678_v11, %v1372_v62  ;;  %v2682_v50 = vpop.eup %2681  ;;  %vm1394_vm15 = vweird.f32 %v2680_v0  ;;  %vm1398_vm2 = vcmp.eq.f32.partialorder %v1397_v51, 8.507059e+37 }
 0x4e4   :  { %vm1395_vm1 = vmor %vm1393_vm0, %vm1394_vm15 }
 0x4e5   :  { %v1390_v25 = vsub.f32 1.0, %v1389_v15  ;;  %v1377_v3 = vsel %vm1376_vm13, %v2678_v11, %v1373_v34 }
 0x4e6   :  { %v1382_v24 = vsel %vm1379_vm14, %v1381_v14, %v1377_v3 }
 0x4e7   :  { %v1391_v45 = vmul.f32 %v2680_v0, %v1390_v25  ;;  %v1405_v5 = vmul.f32 %v2682_v50, %v1382_v24 }
 0x4e9   :  { %v1392_v62 = vadd.f32 %v2680_v0, %v1391_v45 }
 0x4eb   :  { %v1396_v28 = vsel %vm1395_vm1, %v2680_v0, %v1392_v62 }
 0x4ec   :  { %v1401_v38 = vsel %vm1398_vm2, %v1400_v46, %v1396_v28 }
 0x4ed   :  { %v1404_v35 = vmul.f32 %v1401_v38, %v3802_v40 }
 0x4ef   :  { %v3886_v15 = vadd.f32 %v1405_v5, %v1404_v35 }
 0x4f1   :  { %v1407_v58 = vpack.c.bf16 %v3886_v15, %v3886_v15 }
 0x4f3   :  { %1416 = vmatmul.bf16.vlgmr.msrb.gmra.mxu3 %v1407_v58  ;;  %1476 = vmatmul.bf16.vlgmr.msra.gmra.mxu1 %v1407_v58 }
 0x4f4   :  { %1627 = vmatpush.bf16.msrb.mxu3 %v3029_v47  ;;  %1653 = vmatpush.bf16.msra.mxu1 %v3001_v37 }
 0x4f8   :  { %1628 = vmatpush.bf16.msrb.mxu3 %v3064_v59  ;;  %1654 = vmatpush.bf16.msra.mxu1 %v3034_v49 }
 0x4fc   :  { %1629 = vmatpush.bf16.msrb.mxu3 %v3100_v7  ;;  %1655 = vmatpush.bf16.msra.mxu1 %v3070_v61 }
 0x500   :  { %1630 = vmatpush.bf16.msrb.mxu3 %v3139_v20  ;;  %1656 = vmatpush.bf16.msra.mxu1 %v3106_v9 }
 0x503   :  { %1502 = vmatmul.bf16.vlgmr.msra.gmra.mxu3 %v1407_v58 }
 0x504   :  { %1631 = vmatpush.bf16.msrb.mxu3 %v3175_v32  ;;  %1657 = vmatpush.bf16.msra.mxu1 %v3145_v22 }
 0x508   :  { %1632 = vmatpush.bf16.msrb.mxu3 %v3199_v42  ;;  %1658 = vmatpush.bf16.msra.mxu1 %v3187_v36 }
 0x50c   :  { %1633 = vmatpush.bf16.msrb.mxu3 %v3247_v2  ;;  %1659 = vmatpush.bf16.msra.mxu1 %v3220_v52 }
 0x510   :  { %1634 = vmatpush.bf16.msrb.mxu3 %v3283_v18  ;;  %1660 = vmatpush.bf16.msra.mxu1 %v3262_v10 }
 0x514   :  { %1681 = vmatpush.bf16.msra.mxu3 %v3288_v23 }
 0x518   :  { %1682 = vmatpush.bf16.msra.mxu3 %v3313_v31 }
 0x51c   :  { %1683 = vmatpush.bf16.msra.mxu3 %v3331_v44 }
 0x520   :  { %1684 = vmatpush.bf16.msra.mxu3 %v3350_v56 }
 0x524   :  { %1685 = vmatpush.bf16.msra.mxu3 %v3372_v6 }
 0x528   :  { %1686 = vmatpush.bf16.msra.mxu3 %v3394_v27 }
 0x52c   :  { %1687 = vmatpush.bf16.msra.mxu3 %v3412_v39 }
 0x530   :  { %1688 = vmatpush.bf16.msra.mxu3 %v3431_v63 }
 0x54e   :  { %v1446_v62 = vpop.permute.xlu1 %1445 }
 0x54f   :  { %vm1447_vm7 = vcmp.eq.s32.totalorder %v1446_v62, 1  ;;  %v4391_v62 = vld [vmem:[#allocation14_spill] sm:$0xff] }
 0x570   :  { %v3914_v40 = vpop.f32.mrf.mxu1 }
 0x576   :  { %v1417_v5 = vpop.f32.mrf.mxu3 }
 0x577   :  { %v1421_v25 = vadd.f32 %v1417_v5, %v3879_v29 }
 0x578   :  { %v1479_v19 = vpop.f32.mrf.mxu1 }
 0x579   :  { %v2521_v11 = vmul.f32 -1.442695, %v1421_v25  ;;  %v3928_v19 = vld [vmem:[%s4195_s6 + $0x38] sm:$0xff] }
 0x57b   :  { %2683 = vpow2.f32 %v2521_v11  ;;  %v3944_v11 = vld [vmem:[%s4195_s6 + $0x28] sm:$0xff] }
 0x57e   :  { %v1419_v57 = vpop.f32.mrf.mxu3 }
 0x57f   :  { %v3952_v57 = vld [vmem:[%s4195_s6 + $0x20] sm:$0xff] }
 0x581   :  { %v2684_v0 = vpop.eup %2683 }
 0x582   :  { %v1425_v34 = vadd.f32 1.0, %v2684_v0  ;;  %v3960_v0 = vld [vmem:[%s4195_s6 + $0x18] sm:$0xff] }
 0x584   :  { %2685 = vrcp.f32 %v1425_v34  ;;  %v1437_v24 = vand.u32 2147483648, %v1425_v34  ;;  %v1435_v51 = vand.u32 2147483647, %v1425_v34  ;;  %vm1431_vm4 = vweird.f32 %v1425_v34 }
 0x586   :  { %v3917_v14 = vpop.f32.mrf.mxu3  ;;  %v1438_v29 = vor.u32 1.1754944e-38, %v1437_v24  ;;  %vm1436_vm6 = vcmp.eq.f32.partialorder %v1435_v51, 8.507059e+37  ;;  %v4388_v24 = vld [vmem:[#allocation11_spill] sm:$0xff]  ;;  %v4390_v51 = vld [vmem:[#allocation13_spill] sm:$0xff] }
 0x58a   :  { %v2686_v35 = vpop.eup %2685 }
 0x58b   :  { %v1427_v3 = vmul.f32 %v2686_v35, %v1425_v34  ;;  %vm1432_vm3 = vweird.f32 %v2686_v35  ;;  %v3968_v34 = vld [vmem:[%s4195_s6 + $0x10] sm:$0xff] }
 0x58c   :  { %vm1433_vm5 = vmor %vm1431_vm4, %vm1432_vm3  ;;  %4383 = vst [vmem:[#allocation19_spill] sm:$0xff] %v3968_v34 }
 0x58d   :  { %v1428_v50 = vsub.f32 1.0, %v1427_v3  ;;  %v4385_v3 = vld [vmem:[#allocation9_spill] sm:$0xff] }
 0x58e   :  { %v1505_v16 = vpop.f32.mrf.mxu3 }
 0x58f   :  { %v1429_v45 = vmul.f32 %v2686_v35, %v1428_v50  ;;  %v3985_v50 = vld [vmem:[%s4195_s6] sm:$0xff]  ;;  %v4387_v16 = vld [vmem:[#allocation10_spill] sm:$0xff] }
 0x590   :  { %4386 = vst [vmem:[#allocation21_spill] sm:$0xff] %v3985_v50 }
 0x591   :  { %v1430_v46 = vadd.f32 %v2686_v35, %v1429_v45  ;;  %v4389_v45 = vld [vmem:[#allocation12_spill] sm:$0xff] }
 0x593   :  { %v1434_v28 = vsel %vm1433_vm5, %v2686_v35, %v1430_v46  ;;  %v3976_v35 = vld [vmem:[%s4195_s6 + $0x8] sm:$0xff]  ;;  %v4392_v46 = vld [vmem:[#allocation15_spill] sm:$0xff] }
 0x594   :  { %v1439_v38 = vsel %vm1436_vm6, %v1438_v29, %v1434_v28  ;;  %4384 = vst [vmem:[#allocation18_spill] sm:$0xff] %v3976_v35  ;;  %v4393_v29 = vld [vmem:[#allocation16_spill] sm:$0xff] }
 0x595   :  { %v1441_v58 = vmul.f32 %v1439_v38, %v3886_v15 }
 0x597   :  { %v3921_v5 = vsel %vm1447_vm7, %v1441_v58, %v3837_v12  ;;  %v1454_v25 = vpack.c.bf16 %v1441_v58, %v1441_v58  ;;  %v3936_v12 = vld [vmem:[%s4195_s6 + $0x30] sm:$0xff] }
 0x599   :  { %1463 = vmatmul.bf16.vlgmr.msra.gmra.mxu0 %v1454_v25  ;;  %1489 = vmatmul.bf16.vlgmr.msra.gmra.mxu2 %v1454_v25 }
 0x59a   :  { %1530 = vmatmul.bf16.vlgmr.msrb.gmra.mxu1 %v1454_v25  ;;  %1640 = vmatpush.bf16.msra.mxu0 %v3032_v48 }
 0x59b   :  { %1666 = vmatpush.bf16.msra.mxu2 %v3012_v41  ;;  %1752 = vmatpush.bf16.msrb.mxu1 %v3928_v19 }
 0x59e   :  { %1641 = vmatpush.bf16.msra.mxu0 %v3068_v60 }
 0x59f   :  { %1667 = vmatpush.bf16.msra.mxu2 %v3046_v53  ;;  %1753 = vmatpush.bf16.msrb.mxu1 %v3936_v12 }
 0x5a2   :  { %1642 = vmatpush.bf16.msra.mxu0 %v3104_v8 }
 0x5a3   :  { %1668 = vmatpush.bf16.msra.mxu2 %v3082_v1  ;;  %1754 = vmatpush.bf16.msrb.mxu1 %v3944_v11 }
 0x5a6   :  { %1643 = vmatpush.bf16.msra.mxu0 %v3143_v21 }
 0x5a7   :  { %1669 = vmatpush.bf16.msra.mxu2 %v3118_v13  ;;  %1755 = vmatpush.bf16.msrb.mxu1 %v3952_v57 }
 0x5a9   :  { %1517 = vmatmul.bf16.vlgmr.msrb.gmra.mxu0 %v1454_v25  ;;  %v4394_v25 = vld [vmem:[#allocation33_spill] sm:$0xff] }
 0x5aa   :  { %1644 = vmatpush.bf16.msra.mxu0 %v3179_v33 }
 0x5ab   :  { %1670 = vmatpush.bf16.msra.mxu2 %v3157_v26  ;;  %1756 = vmatpush.bf16.msrb.mxu1 %v3960_v0 }
 0x5ae   :  { %1645 = vmatpush.bf16.msra.mxu0 %v4356_v30 }
 0x5af   :  { %1671 = vmatpush.bf16.msra.mxu2 %v4357_v43  ;;  %1757 = vmatpush.bf16.msrb.mxu1 %v3968_v34 }
 0x5b2   :  { %1646 = vmatpush.bf16.msra.mxu0 %v4359_v54 }
 0x5b3   :  { %1672 = vmatpush.bf16.msra.mxu2 %v4360_v55  ;;  %1758 = vmatpush.bf16.msrb.mxu1 %v3976_v35 }
 0x5b6   :  { %1647 = vmatpush.bf16.msra.mxu0 %v4362_v17 }
 0x5b7   :  { %1673 = vmatpush.bf16.msra.mxu2 %v4363_v4  ;;  %1759 = vmatpush.bf16.msrb.mxu1 %v3985_v50  ;;  %v4395_v4 = vld [vmem:[#allocation34_spill] sm:$0xff] }
 0x5ba   :  { %1694 = vmatpush.bf16.msrb.mxu0 %v4385_v3 }
 0x5be   :  { %1695 = vmatpush.bf16.msrb.mxu0 %v4387_v16 }
 0x5c2   :  { %1696 = vmatpush.bf16.msrb.mxu0 %v4388_v24 }
 0x5c6   :  { %1697 = vmatpush.bf16.msrb.mxu0 %v4389_v45 }
 0x5ca   :  { %1698 = vmatpush.bf16.msrb.mxu0 %v4390_v51 }
 0x5ce   :  { %1699 = vmatpush.bf16.msrb.mxu0 %v4391_v62 }
 0x5d2   :  { %1700 = vmatpush.bf16.msrb.mxu0 %v4392_v46 }
 0x5d6   :  { %1701 = vmatpush.bf16.msrb.mxu0 %v4393_v29 }
 0x616   :  { %v1464_v28 = vpop.f32.mrf.mxu0 }
 0x617   :  { %v1478_v38 = vadd.f32 %v3914_v40, %v1464_v28  ;;  %v1531_v58 = vpop.f32.mrf.mxu1  ;;  %v4396_v40 = vld [vmem:[#allocation35_spill] sm:$0xff] }
 0x619   :  { %v1507_v50 = vadd.f32 %v1478_v38, %v4394_v25 }
 0x61b   :  { %v2522_v3 = vmul.f32 -1.442695, %v1507_v50 }
 0x61c   :  { %v1490_v16 = vpop.f32.mrf.mxu2 }
 0x61d   :  { %2687 = vpow2.f32 %v2522_v3  ;;  %v1504_v24 = vadd.f32 %v3917_v14, %v1490_v16  ;;  %v4397_v3 = vld [vmem:[#allocation37_spill] sm:$0xff] }
 0x61e   :  { %v1466_v45 = vpop.f32.mrf.mxu0  ;;  %v1536_v54 = vadd.f32 %v1531_v58, %v4397_v3  ;;  %v4399_v58 = vmov 0  }
 0x61f   :  { %v1508_v51 = vadd.f32 %v1504_v24, %v4395_v4  ;;  %v1533_v17 = vpop.f32.mrf.mxu1 }
 0x621   :  { %v2523_v62 = vmul.f32 -1.442695, %v1508_v51 }
 0x623   :  { %v2688_v35 = vpop.eup %2687  ;;  %2689 = vpow2.f32 %v2523_v62 }
 0x624   :  { %v1540_v46 = vadd.f32 1.0, %v2688_v35  ;;  %v1492_v29 = vpop.f32.mrf.mxu2 }
 0x626   :  { %2691 = vrcp.f32 %v1540_v46  ;;  %v1518_v55 = vpop.f32.mrf.mxu0  ;;  %v1552_v17 = vand.u32 2147483648, %v1540_v46  ;;  %v1550_v35 = vand.u32 2147483647, %v1540_v46  ;;  %vm1546_vm9 = vweird.f32 %v1540_v46 }
 0x627   :  { %v4000_v28 = vadd.f32 %v1518_v55, %v4396_v40  ;;  %v4006_v55 = vld [vmem:[%s4196_s1] sm:$0xff] }
 0x628   :  { %4398 = vst [vmem:[#allocation23_spill] sm:$0xff] %v4006_v55  ;;  %vm1614_vm10 = vcmp.eq.s32.totalorder %v4006_v55, 5  ;;  %v1553_v29 = vor.u32 1.1754944e-38, %v1552_v17  ;;  %vm1551_vm12 = vcmp.eq.f32.partialorder %v1550_v35, 8.507059e+37 }
 0x629   :  { %v2690_v38 = vpop.eup %2689  ;;  %v1615_v40 = vsel %vm1614_vm10, 1, %v4399_v58 }
 0x62a   :  { %v1559_v50 = vadd.f32 1.0, %v2690_v38  ;;  %1617 = vperm.xlu2 %2630, %v1615_v40  }
 0x62c   :  { %v2692_v25 = vpop.eup %2691  ;;  %2693 = vrcp.f32 %v1559_v50  ;;  %vm1565_vm14 = vweird.f32 %v1559_v50 }
 0x62d   :  { %v1542_v14 = vmul.f32 %v2692_v25, %v1540_v46  ;;  %2695 = vtanh.f32 %v1536_v54  ;;  %vm1547_vm8 = vweird.f32 %v2692_v25 }
 0x62e   :  { %v1520_v16 = vpop.f32.mrf.mxu0  ;;  %vm1548_vm11 = vmor %vm1546_vm9, %vm1547_vm8 }
 0x62f   :  { %v1543_v4 = vsub.f32 1.0, %v1542_v14  ;;  %v1571_v16 = vand.u32 2147483648, %v1559_v50 }
 0x631   :  { %v1544_v24 = vmul.f32 %v2692_v25, %v1543_v4  ;;  %v1572_v43 = vor.u32 1.1754944e-38, %v1571_v16 }
 0x632   :  { %v2694_v45 = vpop.eup %2693 }
 0x633   :  { %v1545_v51 = vadd.f32 %v2692_v25, %v1544_v24  ;;  %v1561_v62 = vmul.f32 %v2694_v45, %v1559_v50  ;;  %v2696_v3 = vpop.eup %2695  ;;  %vm1566_vm13 = vweird.f32 %v2694_v45  ;;  %v1569_v24 = vand.u32 2147483647, %v1559_v50 }
 0x634   :  { %vm1567_vm15 = vmor %vm1565_vm14, %vm1566_vm13 }
 0x635   :  { %v1549_v38 = vsel %vm1548_vm11, %v2692_v25, %v1545_v51  ;;  %v1562_v54 = vsub.f32 1.0, %v1561_v62  ;;  %vm1570_vm0 = vcmp.eq.f32.partialorder %v1569_v24, 8.507059e+37 }
 0x636   :  { %v1554_v14 = vsel %vm1551_vm12, %v1553_v29, %v1549_v38 }
 0x637   :  { %v1577_v46 = vmul.f32 %v2696_v3, %v1554_v14  ;;  %v1563_v4 = vmul.f32 %v2694_v45, %v1562_v54 }
 0x639   :  { %v1564_v34 = vadd.f32 %v2694_v45, %v1563_v4 }
 0x63b   :  { %v1568_v55 = vsel %vm1567_vm15, %v2694_v45, %v1564_v34 }
 0x63c   :  { %v1573_v17 = vsel %vm1570_vm0, %v1572_v43, %v1568_v55 }
 0x63d   :  { %v1576_v58 = vmul.f32 %v1573_v17, %v3886_v15 }
 0x63f   :  { %v4011_v25 = vadd.f32 %v1577_v46, %v1576_v58 }
 0x641   :  { %v1579_v35 = vpack.c.bf16 %v4011_v25, %v4011_v25 }
 0x643   :  { %1588 = vmatmul.bf16.vlgmr.msrb.gmra.mxu2 %v1579_v35  ;;  %1648 = vmatmul.bf16.vlgmr.msra.gmra.mxu0 %v1579_v35 }
 0x644   :  { %1799 = vmatpush.bf16.msrb.mxu2 %v3029_v47  ;;  %1825 = vmatpush.bf16.msra.mxu0 %v3001_v37 }
 0x648   :  { %1800 = vmatpush.bf16.msrb.mxu2 %v3064_v59  ;;  %1826 = vmatpush.bf16.msra.mxu0 %v3034_v49 }
 0x64c   :  { %1801 = vmatpush.bf16.msrb.mxu2 %v3100_v7  ;;  %1827 = vmatpush.bf16.msra.mxu0 %v3070_v61 }
 0x650   :  { %1802 = vmatpush.bf16.msrb.mxu2 %v3139_v20  ;;  %1828 = vmatpush.bf16.msra.mxu0 %v3106_v9 }
 0x653   :  { %1674 = vmatmul.bf16.vlgmr.msra.gmra.mxu2 %v1579_v35 }
 0x654   :  { %1803 = vmatpush.bf16.msrb.mxu2 %v3175_v32  ;;  %1829 = vmatpush.bf16.msra.mxu0 %v3145_v22 }
 0x658   :  { %1804 = vmatpush.bf16.msrb.mxu2 %v3199_v42  ;;  %1830 = vmatpush.bf16.msra.mxu0 %v3187_v36 }
 0x65c   :  { %1805 = vmatpush.bf16.msrb.mxu2 %v3247_v2  ;;  %1831 = vmatpush.bf16.msra.mxu0 %v3220_v52 }
 0x660   :  { %1806 = vmatpush.bf16.msrb.mxu2 %v3283_v18  ;;  %1832 = vmatpush.bf16.msra.mxu0 %v3262_v10 }
 0x664   :  { %1853 = vmatpush.bf16.msra.mxu2 %v3288_v23 }
 0x668   :  { %1854 = vmatpush.bf16.msra.mxu2 %v3313_v31 }
 0x66c   :  { %1855 = vmatpush.bf16.msra.mxu2 %v3331_v44 }
 0x670   :  { %1856 = vmatpush.bf16.msra.mxu2 %v3350_v56 }
 0x674   :  { %1857 = vmatpush.bf16.msra.mxu2 %v3372_v6 }
 0x678   :  { %1858 = vmatpush.bf16.msra.mxu2 %v3394_v27 }
 0x67c   :  { %1859 = vmatpush.bf16.msra.mxu2 %v3412_v39 }
 0x680   :  { %1860 = vmatpush.bf16.msra.mxu2 %v3431_v63 }
 0x684   :  { %v1618_v46 = vpop.permute.xlu2 %1617 }
 0x685   :  { %vm1619_vm5 = vcmp.eq.s32.totalorder %v1618_v46, 1  ;;  %v4413_v46 = vld [vmem:[#allocation14_spill] sm:$0xff] }
 0x6c0   :  { %v4039_v43 = vpop.f32.mrf.mxu0 }
 0x6c6   :  { %v1589_v15 = vpop.f32.mrf.mxu2 }
 0x6c7   :  { %v1593_v34 = vadd.f32 %v1589_v15, %v4000_v28 }
 0x6c8   :  { %v1651_v50 = vpop.f32.mrf.mxu0 }
 0x6c9   :  { %v2524_v45 = vmul.f32 -1.442695, %v1593_v34  ;;  %v4401_v50 = vld [vmem:[#allocation19_spill] sm:$0xff] }
 0x6cb   :  { %2697 = vpow2.f32 %v2524_v45  ;;  %v4402_v45 = vld [vmem:[#allocation6_spill] sm:$0xff] }
 0x6ce   :  { %v1591_v51 = vpop.f32.mrf.mxu2 }
 0x6cf   :  { %v4403_v51 = vld [vmem:[#allocation5_spill] sm:$0xff] }
 0x6d1   :  { %v2698_v62 = vpop.eup %2697 }
 0x6d2   :  { %v1597_v55 = vadd.f32 1.0, %v2698_v62  ;;  %v4404_v62 = vld [vmem:[#allocation18_spill] sm:$0xff] }
 0x6d4   :  { %2699 = vrcp.f32 %v1597_v55  ;;  %v1609_v3 = vand.u32 2147483648, %v1597_v55  ;;  %v1607_v16 = vand.u32 2147483647, %v1597_v55  ;;  %vm1603_vm2 = vweird.f32 %v1597_v55 }
 0x6d6   :  { %v1675_v29 = vpop.f32.mrf.mxu2  ;;  %v1610_v28 = vor.u32 1.1754944e-38, %v1609_v3  ;;  %vm1608_vm4 = vcmp.eq.f32.partialorder %v1607_v16, 8.507059e+37  ;;  %v4410_v3 = vld [vmem:[#allocation11_spill] sm:$0xff]  ;;  %v4412_v16 = vld [vmem:[#allocation13_spill] sm:$0xff] }
 0x6da   :  { %v2700_v58 = vpop.eup %2699 }
 0x6db   :  { %v1599_v40 = vmul.f32 %v2700_v58, %v1597_v55  ;;  %vm1604_vm1 = vweird.f32 %v2700_v58  ;;  %v4405_v55 = vld [vmem:[#allocation8_spill] sm:$0xff] }
 0x6dc   :  { %vm1605_vm3 = vmor %vm1603_vm2, %vm1604_vm1 }
 0x6dd   :  { %v1600_v38 = vsub.f32 1.0, %v1599_v40  ;;  %v4407_v40 = vld [vmem:[#allocation9_spill] sm:$0xff] }
 0x6de   :  { %v1677_v54 = vpop.f32.mrf.mxu2 }
 0x6df   :  { %v1601_v14 = vmul.f32 %v2700_v58, %v1600_v38  ;;  %v4408_v38 = vld [vmem:[#allocation21_spill] sm:$0xff]  ;;  %v4409_v54 = vld [vmem:[#allocation10_spill] sm:$0xff] }
 0x6e1   :  { %v1602_v4 = vadd.f32 %v2700_v58, %v1601_v14  ;;  %v4411_v14 = vld [vmem:[#allocation12_spill] sm:$0xff] }
 0x6e3   :  { %v1606_v24 = vsel %vm1605_vm3, %v2700_v58, %v1602_v4  ;;  %v4406_v58 = vld [vmem:[#allocation7_spill] sm:$0xff] }
 0x6e4   :  { %v1611_v17 = vsel %vm1608_vm4, %v1610_v28, %v1606_v24  ;;  %v4414_v4 = vld [vmem:[#allocation15_spill] sm:$0xff]  ;;  %v4415_v28 = vld [vmem:[#allocation16_spill] sm:$0xff] }
 0x6e5   :  { %v1613_v35 = vmul.f32 %v1611_v17, %v4011_v25  ;;  %v4416_v17 = vld [vmem:[#allocation22_spill] sm:$0xff] }
 0x6e7   :  { %v4044_v15 = vsel %vm1619_vm5, %v1613_v35, %v3921_v5  ;;  %v1626_v34 = vpack.c.bf16 %v1613_v35, %v1613_v35  ;;  %v4400_v5 = vld [vmem:[#allocation3_spill] sm:$0xff]  ;;  %v4417_v35 = vld [vmem:[#allocation38_spill] sm:$0xff] }
 0x6e9   :  { %1635 = vmatmul.bf16.vlgmr.msrb.gmra.mxu3 %v1626_v34  ;;  %1661 = vmatmul.bf16.vlgmr.msra.gmra.mxu1 %v1626_v34 }
 0x6ea   :  { %1702 = vmatmul.bf16.vlgmr.msrb.gmra.mxu0 %v1626_v34  ;;  %1812 = vmatpush.bf16.msrb.mxu3 %v3032_v48 }
 0x6eb   :  { %1838 = vmatpush.bf16.msra.mxu1 %v3012_v41  ;;  %1924 = vmatpush.bf16.msrb.mxu0 %v3928_v19 }
 0x6ee   :  { %1813 = vmatpush.bf16.msrb.mxu3 %v3068_v60 }
 0x6ef   :  { %1839 = vmatpush.bf16.msra.mxu1 %v3046_v53  ;;  %1925 = vmatpush.bf16.msrb.mxu0 %v3936_v12 }
 0x6f2   :  { %1814 = vmatpush.bf16.msrb.mxu3 %v3104_v8 }
 0x6f3   :  { %1840 = vmatpush.bf16.msra.mxu1 %v3082_v1  ;;  %1926 = vmatpush.bf16.msrb.mxu0 %v3944_v11 }
 0x6f6   :  { %1815 = vmatpush.bf16.msrb.mxu3 %v3143_v21 }
 0x6f7   :  { %1841 = vmatpush.bf16.msra.mxu1 %v3118_v13  ;;  %1927 = vmatpush.bf16.msrb.mxu0 %v3952_v57 }
 0x6f9   :  { %1689 = vmatmul.bf16.vlgmr.msra.gmra.mxu3 %v1626_v34  ;;  %v312_v34 = vadd.f32 %v4417_v35, %v4416_v17 }
 0x6fa   :  { %1816 = vmatpush.bf16.msrb.mxu3 %v3179_v33 }
 0x6fb   :  { %1842 = vmatpush.bf16.msra.mxu1 %v3157_v26  ;;  %1928 = vmatpush.bf16.msrb.mxu0 %v3960_v0 }
 0x6fe   :  { %1817 = vmatpush.bf16.msrb.mxu3 %v4356_v30 }
 0x6ff   :  { %1843 = vmatpush.bf16.msra.mxu1 %v4400_v5  ;;  %1929 = vmatpush.bf16.msrb.mxu0 %v4401_v50 }
 0x702   :  { %1818 = vmatpush.bf16.msrb.mxu3 %v4402_v45 }
 0x703   :  { %1844 = vmatpush.bf16.msra.mxu1 %v4403_v51  ;;  %1930 = vmatpush.bf16.msrb.mxu0 %v4404_v62  ;;  %v4419_v62 = vld [vmem:[#allocation36_spill] sm:$0xff] }
 0x706   :  { %1819 = vmatpush.bf16.msrb.mxu3 %v4405_v55 }
 0x707   :  { %1845 = vmatpush.bf16.msra.mxu1 %v4406_v58  ;;  %1931 = vmatpush.bf16.msrb.mxu0 %v4408_v38 }
 0x70a   :  { %1866 = vmatpush.bf16.msra.mxu3 %v4407_v40 }
 0x70e   :  { %1867 = vmatpush.bf16.msra.mxu3 %v4409_v54 }
 0x712   :  { %1868 = vmatpush.bf16.msra.mxu3 %v4410_v3  ;;  %v4418_v3 = vld [vmem:[#allocation20_spill] sm:$0xff] }
 0x716   :  { %1869 = vmatpush.bf16.msra.mxu3 %v4411_v14  ;;  %v283_v14 = vadd.f32 %v4419_v62, %v4418_v3 }
 0x71a   :  { %1870 = vmatpush.bf16.msra.mxu3 %v4412_v16 }
 0x71e   :  { %1871 = vmatpush.bf16.msra.mxu3 %v4413_v46 }
 0x722   :  { %1872 = vmatpush.bf16.msra.mxu3 %v4414_v4 }
 0x726   :  { %1873 = vmatpush.bf16.msra.mxu3 %v4415_v28 }
 0x766   :  { %v1662_v24 = vpop.f32.mrf.mxu1 }
 0x767   :  { %v1676_v40 = vadd.f32 %v1675_v29, %v1662_v24  ;;  %v1703_v38 = vpop.f32.mrf.mxu0 }
 0x769   :  { %v1680_v58 = vadd.f32 %v1676_v40, %v312_v34  ;;  %v4420_v40 = vld [vmem:[#allocation17_spill] sm:$0xff] }
 0x76b   :  { %v2526_v54 = vmul.f32 -1.442695, %v1680_v58  ;;  %v4421_v58 = vld [vmem:[#allocation39_spill] sm:$0xff] }
 0x76c   :  { %v1636_v55 = vpop.f32.mrf.mxu3  ;;  %v341_v35 = vadd.f32 %v4421_v58, %v4420_v40  ;;  %v4425_v40 = vmov 0  }
 0x76d   :  { %2701 = vpow2.f32 %v2526_v54  ;;  %v1650_v16 = vadd.f32 %v4039_v43, %v1636_v55  ;;  %v4422_v55 = vld [vmem:[#allocation26_spill] sm:$0xff] }
 0x76e   :  { %v1664_v46 = vpop.f32.mrf.mxu1 }
 0x76f   :  { %v1679_v51 = vadd.f32 %v1650_v16, %v283_v14  ;;  %v1705_v4 = vpop.f32.mrf.mxu0  ;;  %v4423_v14 = vld [vmem:[#allocation40_spill] sm:$0xff] }
 0x771   :  { %v2525_v45 = vmul.f32 -1.442695, %v1679_v51  ;;  %v370_v51 = vadd.f32 %v4423_v14, %v4422_v55 }
 0x773   :  { %v2702_v28 = vpop.eup %2701  ;;  %2703 = vpow2.f32 %v2525_v45  ;;  %v1708_v46 = vadd.f32 %v1703_v38, %v370_v51 }
 0x774   :  { %v1731_v50 = vadd.f32 1.0, %v2702_v28  ;;  %v1638_v5 = vpop.f32.mrf.mxu3  ;;  %v4424_v28 = vld [vmem:[#allocation23_spill] sm:$0xff] }
 0x775   :  { %vm1786_vm7 = vcmp.eq.s32.totalorder %v4424_v28, 6  ;;  %vm1958_vm5 = vcmp.eq.s32.totalorder %v4424_v28, 7 }
 0x776   :  { %2705 = vrcp.f32 %v1731_v50  ;;  %v1787_v3 = vsel %vm1786_vm7, 1, %v4425_v40  ;;  %vm1737_vm8 = vweird.f32 %v1731_v50  ;;  %v1741_v30 = vand.u32 2147483647, %v1731_v50 }
 0x777   :  { %1789 = vperm.xlu2 %2630, %v1787_v3  }
 0x778   :  { %vm1742_vm11 = vcmp.eq.f32.partialorder %v1741_v30, 8.507059e+37  ;;  %v4436_v30 = vld [vmem:[#allocation10_spill] sm:$0xff] }
 0x779   :  { %v2704_v29 = vpop.eup %2703 }
 0x77a   :  { %v1712_v24 = vadd.f32 1.0, %v2704_v29  ;;  %v1743_v29 = vand.u32 2147483648, %v1731_v50 }
 0x77c   :  { %v2706_v34 = vpop.eup %2705  ;;  %2707 = vrcp.f32 %v1712_v24  ;;  %v1690_v62 = vpop.f32.mrf.mxu3  ;;  %v1722_v38 = vand.u32 2147483647, %v1712_v24  ;;  %v1744_v14 = vor.u32 1.1754944e-38, %v1743_v29  ;;  %vm1718_vm12 = vweird.f32 %v1712_v24 }
 0x77d   :  { %v1733_v54 = vmul.f32 %v2706_v34, %v1731_v50  ;;  %v4085_v17 = vadd.f32 %v1690_v62, %v341_v35  ;;  %vm1738_vm6 = vweird.f32 %v2706_v34  ;;  %2709 = vtanh.f32 %v1708_v46 }
 0x77e   :  { %vm1739_vm9 = vmor %vm1737_vm8, %vm1738_vm6  ;;  %v1724_v62 = vand.u32 2147483648, %v1712_v24  ;;  %vm1723_vm14 = vcmp.eq.f32.partialorder %v1722_v38, 8.507059e+37 }
 0x77f   :  { %v1734_v43 = vsub.f32 1.0, %v1733_v54 }
 0x781   :  { %v1735_v16 = vmul.f32 %v2706_v34, %v1734_v43 }
 0x782   :  { %v2708_v45 = vpop.eup %2707 }
 0x783   :  { %v1736_v5 = vadd.f32 %v2706_v34, %v1735_v16  ;;  %v1714_v4 = vmul.f32 %v2708_v45, %v1712_v24  ;;  %vm1719_vm10 = vweird.f32 %v2708_v45  ;;  %v1725_v16 = vor.u32 1.1754944e-38, %v1724_v62  ;;  %v2710_v40 = vpop.eup %2709  ;;  %v4443_v24 = vld [vmem:[#allocation42_spill] sm:$0xff]  ;;  %v4444_v62 = vld [vmem:[#allocation41_spill] sm:$0xff] }
 0x784   :  { %v1692_v58 = vpop.f32.mrf.mxu3  ;;  %vm1720_vm13 = vmor %vm1718_vm12, %vm1719_vm10 }
 0x785   :  { %v1715_v35 = vsub.f32 1.0, %v1714_v4  ;;  %v1740_v54 = vsel %vm1739_vm9, %v2706_v34, %v1736_v5 }
 0x786   :  { %v1745_v58 = vsel %vm1742_vm11, %v1744_v14, %v1740_v54 }
 0x787   :  { %v1716_v43 = vmul.f32 %v2708_v45, %v1715_v35  ;;  %v1748_v3 = vmul.f32 %v1745_v58, %v4011_v25  ;;  %v4442_v25 = vld [vmem:[#allocation16_spill] sm:$0xff] }
 0x789   :  { %v1717_v51 = vadd.f32 %v2708_v45, %v1716_v43 }
 0x78b   :  { %v1721_v55 = vsel %vm1720_vm13, %v2708_v45, %v1717_v51 }
 0x78c   :  { %v1726_v50 = vsel %vm1723_vm14, %v1725_v16, %v1721_v55 }
 0x78d   :  { %v1749_v4 = vmul.f32 %v2710_v40, %v1726_v50 }
 0x78f   :  { %v4092_v46 = vadd.f32 %v1749_v4, %v1748_v3 }
 0x791   :  { %v1751_v34 = vpack.c.bf16 %v4092_v46, %v4092_v46 }
 0x793   :  { %1760 = vmatmul.bf16.vlgmr.msrb.gmra.mxu1 %v1751_v34  ;;  %1820 = vmatmul.bf16.vlgmr.msrb.gmra.mxu3 %v1751_v34 }
 0x794   :  { %1971 = vmatpush.bf16.msrb.mxu1 %v3029_v47  ;;  %1997 = vmatpush.bf16.msrb.mxu3 %v3001_v37 }
 0x798   :  { %1972 = vmatpush.bf16.msrb.mxu1 %v3064_v59  ;;  %1998 = vmatpush.bf16.msrb.mxu3 %v3034_v49 }
 0x79c   :  { %1973 = vmatpush.bf16.msrb.mxu1 %v3100_v7  ;;  %1999 = vmatpush.bf16.msrb.mxu3 %v3070_v61 }
 0x7a0   :  { %1974 = vmatpush.bf16.msrb.mxu1 %v3139_v20  ;;  %2000 = vmatpush.bf16.msrb.mxu3 %v3106_v9 }
 0x7a3   :  { %1846 = vmatmul.bf16.vlgmr.msra.gmra.mxu1 %v1751_v34 }
 0x7a4   :  { %1975 = vmatpush.bf16.msrb.mxu1 %v3175_v32  ;;  %2001 = vmatpush.bf16.msrb.mxu3 %v3145_v22 }
 0x7a8   :  { %1976 = vmatpush.bf16.msrb.mxu1 %v3199_v42  ;;  %2002 = vmatpush.bf16.msrb.mxu3 %v3187_v36 }
 0x7ac   :  { %1977 = vmatpush.bf16.msrb.mxu1 %v3247_v2  ;;  %2003 = vmatpush.bf16.msrb.mxu3 %v3220_v52 }
 0x7b0   :  { %1978 = vmatpush.bf16.msrb.mxu1 %v3283_v18  ;;  %2004 = vmatpush.bf16.msrb.mxu3 %v3262_v10 }
 0x7b4   :  { %2025 = vmatpush.bf16.msra.mxu1 %v3288_v23 }
 0x7b8   :  { %2026 = vmatpush.bf16.msra.mxu1 %v3313_v31 }
 0x7bc   :  { %2027 = vmatpush.bf16.msra.mxu1 %v3331_v44 }
 0x7c0   :  { %2028 = vmatpush.bf16.msra.mxu1 %v3350_v56 }
 0x7c4   :  { %2029 = vmatpush.bf16.msra.mxu1 %v3372_v6 }
 0x7c8   :  { %2030 = vmatpush.bf16.msra.mxu1 %v3394_v27 }
 0x7cc   :  { %2031 = vmatpush.bf16.msra.mxu1 %v3412_v39 }
 0x7d0   :  { %2032 = vmatpush.bf16.msra.mxu1 %v3431_v63 }
 0x7d1   :  { %v1790_v23 = vpop.permute.xlu2 %1789 }
 0x7d2   :  { %vm1791_vm3 = vcmp.eq.s32.totalorder %v1790_v23, 1 }
 0x810   :  { %v1761_v37 = vpop.f32.mrf.mxu1 }
 0x811   :  { %v1765_v47 = vadd.f32 %v1761_v37, %v4085_v17  ;;  %v4445_v37 = vld [vmem:[#allocation45_spill] sm:$0xff] }
 0x813   :  { %v2527_v49 = vmul.f32 -1.442695, %v1765_v47 }
 0x815   :  { %2711 = vpow2.f32 %v2527_v49 }
 0x816   :  { %v4121_v59 = vpop.f32.mrf.mxu3 }
 0x818   :  { %v1763_v61 = vpop.f32.mrf.mxu1 }
 0x81b   :  { %v2712_v7 = vpop.eup %2711 }
 0x81c   :  { %v1769_v9 = vadd.f32 1.0, %v2712_v7  ;;  %v4446_v7 = vld [vmem:[#allocation47_spill] sm:$0xff] }
 0x81e   :  { %2713 = vrcp.f32 %v1769_v9  ;;  %v1823_v20 = vpop.f32.mrf.mxu3  ;;  %v1781_v2 = vand.u32 2147483648, %v1769_v9  ;;  %v1779_v18 = vand.u32 2147483647, %v1769_v9  ;;  %vm1775_vm0 = vweird.f32 %v1769_v9 }
 0x820   :  { %v1847_v22 = vpop.f32.mrf.mxu1  ;;  %v1782_v44 = vor.u32 1.1754944e-38, %v1781_v2  ;;  %vm1780_vm2 = vcmp.eq.f32.partialorder %v1779_v18, 8.507059e+37 }
 0x824   :  { %v2714_v32 = vpop.eup %2713 }
 0x825   :  { %v1771_v36 = vmul.f32 %v2714_v32, %v1769_v9  ;;  %vm1776_vm15 = vweird.f32 %v2714_v32 }
 0x826   :  { %vm1777_vm1 = vmor %vm1775_vm0, %vm1776_vm15 }
 0x827   :  { %v1772_v42 = vsub.f32 1.0, %v1771_v36 }
 0x828   :  { %v1849_v52 = vpop.f32.mrf.mxu1 }
 0x829   :  { %v1773_v10 = vmul.f32 %v2714_v32, %v1772_v42  ;;  %v4447_v42 = vmov 0  }
 0x82a   :  { %v1959_v52 = vsel %vm1958_vm5, 1, %v4447_v42 }
 0x82b   :  { %v1774_v31 = vadd.f32 %v2714_v32, %v1773_v10  ;;  %1961 = vperm.xlu0 %2628, %v1959_v52   ;;  %v4452_v52 = vld [vmem:[#allocation17_spill] sm:$0xff] }
 0x82d   :  { %v1778_v56 = vsel %vm1777_vm1, %v2714_v32, %v1774_v31 }
 0x82e   :  { %v1783_v6 = vsel %vm1780_vm2, %v1782_v44, %v1778_v56  ;;  %vm2130_vm2 = vcmp.eq.s32.totalorder %v4424_v28, 8 }
 0x82f   :  { %v1785_v27 = vmul.f32 %v1783_v6, %v4092_v46 }
 0x831   :  { %v4125_v39 = vsel %vm1791_vm3, %v1785_v27, %v4044_v15  ;;  %v1798_v63 = vpack.c.bf16 %v1785_v27, %v1785_v27 }
 0x833   :  { %1807 = vmatmul.bf16.vlgmr.msrb.gmra.mxu2 %v1798_v63  ;;  %1833 = vmatmul.bf16.vlgmr.msra.gmra.mxu0 %v1798_v63 }
 0x834   :  { %1874 = vmatmul.bf16.vlgmr.msra.gmra.mxu3 %v1798_v63  ;;  %1984 = vmatpush.bf16.msrb.mxu2 %v3032_v48  ;;  %v4427_v48 = vld [vmem:[#allocation3_spill] sm:$0xff] }
 0x835   :  { %2010 = vmatpush.bf16.msra.mxu0 %v3012_v41  ;;  %2096 = vmatpush.bf16.msra.mxu3 %v3928_v19  ;;  %v4426_v41 = vld [vmem:[#allocation4_spill] sm:$0xff]  ;;  %v4437_v19 = vld [vmem:[#allocation11_spill] sm:$0xff] }
 0x838   :  { %1985 = vmatpush.bf16.msrb.mxu2 %v3068_v60  ;;  %v4429_v60 = vld [vmem:[#allocation6_spill] sm:$0xff] }
 0x839   :  { %2011 = vmatpush.bf16.msra.mxu0 %v3046_v53  ;;  %2097 = vmatpush.bf16.msra.mxu3 %v3936_v12  ;;  %v4428_v53 = vld [vmem:[#allocation19_spill] sm:$0xff]  ;;  %v4438_v12 = vld [vmem:[#allocation12_spill] sm:$0xff] }
 0x83c   :  { %1986 = vmatpush.bf16.msrb.mxu2 %v3104_v8  ;;  %v4431_v8 = vld [vmem:[#allocation18_spill] sm:$0xff] }
 0x83d   :  { %2012 = vmatpush.bf16.msra.mxu0 %v3082_v1  ;;  %2098 = vmatpush.bf16.msra.mxu3 %v3944_v11  ;;  %v4430_v1 = vld [vmem:[#allocation5_spill] sm:$0xff] }
 0x83e   :  { %v4439_v11 = vld [vmem:[#allocation13_spill] sm:$0xff] }
 0x840   :  { %1987 = vmatpush.bf16.msrb.mxu2 %v3143_v21  ;;  %v4433_v21 = vld [vmem:[#allocation7_spill] sm:$0xff] }
 0x841   :  { %2013 = vmatpush.bf16.msra.mxu0 %v3118_v13  ;;  %2099 = vmatpush.bf16.msra.mxu3 %v3952_v57  ;;  %v4432_v13 = vld [vmem:[#allocation8_spill] sm:$0xff]  ;;  %v4440_v57 = vld [vmem:[#allocation14_spill] sm:$0xff] }
 0x843   :  { %1861 = vmatmul.bf16.vlgmr.msra.gmra.mxu2 %v1798_v63 }
 0x844   :  { %1988 = vmatpush.bf16.msrb.mxu2 %v3179_v33  ;;  %v4434_v33 = vld [vmem:[#allocation9_spill] sm:$0xff] }
 0x845   :  { %2014 = vmatpush.bf16.msra.mxu0 %v3157_v26  ;;  %2100 = vmatpush.bf16.msra.mxu3 %v3960_v0  ;;  %v4435_v26 = vld [vmem:[#allocation21_spill] sm:$0xff]  ;;  %v4441_v0 = vld [vmem:[#allocation15_spill] sm:$0xff] }
 0x848   :  { %1989 = vmatpush.bf16.msrb.mxu2 %v4426_v41 }
 0x849   :  { %2015 = vmatpush.bf16.msra.mxu0 %v4427_v48  ;;  %2101 = vmatpush.bf16.msra.mxu3 %v4428_v53 }
 0x84c   :  { %1990 = vmatpush.bf16.msrb.mxu2 %v4429_v60 }
 0x84d   :  { %2016 = vmatpush.bf16.msra.mxu0 %v4430_v1  ;;  %2102 = vmatpush.bf16.msra.mxu3 %v4431_v8 }
 0x850   :  { %1991 = vmatpush.bf16.msrb.mxu2 %v4432_v13 }
 0x851   :  { %2017 = vmatpush.bf16.msra.mxu0 %v4433_v21  ;;  %2103 = vmatpush.bf16.msra.mxu3 %v4435_v26 }
 0x854   :  { %2038 = vmatpush.bf16.msra.mxu2 %v4434_v33 }
 0x858   :  { %2039 = vmatpush.bf16.msra.mxu2 %v4436_v30 }
 0x85c   :  { %2040 = vmatpush.bf16.msra.mxu2 %v4437_v19 }
 0x860   :  { %2041 = vmatpush.bf16.msra.mxu2 %v4438_v12 }
 0x864   :  { %2042 = vmatpush.bf16.msra.mxu2 %v4439_v11 }
 0x868   :  { %2043 = vmatpush.bf16.msra.mxu2 %v4440_v57 }
 0x86c   :  { %2044 = vmatpush.bf16.msra.mxu2 %v4441_v0 }
 0x870   :  { %2045 = vmatpush.bf16.msra.mxu2 %v4442_v25 }
 0x8b0   :  { %v1834_v15 = vpop.f32.mrf.mxu0 }
 0x8b1   :  { %v1848_v17 = vadd.f32 %v1847_v22, %v1834_v15 }
 0x8b3   :  { %v1852_v40 = vadd.f32 %v1848_v17, %v4443_v24 }
 0x8b5   :  { %v2529_v55 = vmul.f32 -1.442695, %v1852_v40 }
 0x8b6   :  { %v1808_v45 = vpop.f32.mrf.mxu2 }
 0x8b7   :  { %2715 = vpow2.f32 %v2529_v55  ;;  %v1822_v5 = vadd.f32 %v4121_v59, %v1808_v45  ;;  %v1875_v29 = vpop.f32.mrf.mxu3  ;;  %v1962_v45 = vpop.permute.xlu0 %1961 }
 0x8b8   :  { %v1836_v35 = vpop.f32.mrf.mxu0  ;;  %v1880_v9 = vadd.f32 %v1875_v29, %v4446_v7  ;;  %vm1963_vm1 = vcmp.eq.s32.totalorder %v1962_v45, 1 }
 0x8b9   :  { %v1851_v54 = vadd.f32 %v1822_v5, %v4444_v62 }
 0x8bb   :  { %v2528_v43 = vmul.f32 -1.442695, %v1851_v54 }
 0x8bd   :  { %v2716_v38 = vpop.eup %2715  ;;  %2717 = vpow2.f32 %v2528_v43 }
 0x8be   :  { %v1903_v14 = vadd.f32 1.0, %v2716_v38  ;;  %v1810_v51 = vpop.f32.mrf.mxu2 }
 0x8bf   :  { %v1877_v16 = vpop.f32.mrf.mxu3  ;;  %v4448_v51 = vld [vmem:[#allocation20_spill] sm:$0xff] }
 0x8c0   :  { %2719 = vrcp.f32 %v1903_v14  ;;  %v1915_v32 = vand.u32 2147483648, %v1903_v14  ;;  %vm1909_vm6 = vweird.f32 %v1903_v14  ;;  %v1913_v10 = vand.u32 2147483647, %v1903_v14  ;;  %v4449_v16 = vld [vmem:[#allocation46_spill] sm:$0xff] }
 0x8c2   :  { %v1916_v56 = vor.u32 1.1754944e-38, %v1915_v32  ;;  %vm1914_vm10 = vcmp.eq.f32.partialorder %v1913_v10, 8.507059e+37 }
 0x8c3   :  { %v2718_v58 = vpop.eup %2717 }
 0x8c4   :  { %v1884_v50 = vadd.f32 1.0, %v2718_v58  ;;  %v288_v58 = vadd.f32 %v4449_v16, %v4448_v51 }
 0x8c6   :  { %v2720_v3 = vpop.eup %2719  ;;  %2721 = vrcp.f32 %v1884_v50  ;;  %v1862_v4 = vpop.f32.mrf.mxu2  ;;  %v1896_v18 = vand.u32 2147483648, %v1884_v50  ;;  %v1894_v31 = vand.u32 2147483647, %v1884_v50  ;;  %vm1890_vm9 = vweird.f32 %v1884_v50 }
 0x8c7   :  { %v1905_v34 = vmul.f32 %v2720_v3, %v1903_v14  ;;  %v1879_v47 = vadd.f32 %v1862_v4, %v4445_v37  ;;  %vm1910_vm4 = vweird.f32 %v2720_v3  ;;  %2723 = vtanh.f32 %v1880_v9  ;;  %v4450_v37 = vld [vmem:[#allocation22_spill] sm:$0xff] }
 0x8c8   :  { %vm1911_vm7 = vmor %vm1909_vm6, %vm1910_vm4  ;;  %v1897_v27 = vor.u32 1.1754944e-38, %v1896_v18  ;;  %vm1895_vm12 = vcmp.eq.f32.partialorder %v1894_v31, 8.507059e+37 }
 0x8c9   :  { %v1906_v49 = vsub.f32 1.0, %v1905_v34 }
 0x8cb   :  { %v1907_v59 = vmul.f32 %v2720_v3, %v1906_v49 }
 0x8cc   :  { %v2722_v61 = vpop.eup %2721 }
 0x8cd   :  { %v1886_v20 = vmul.f32 %v2722_v61, %v1884_v50  ;;  %v1908_v22 = vadd.f32 %v2720_v3, %v1907_v59  ;;  %vm1891_vm8 = vweird.f32 %v2722_v61  ;;  %v2724_v48 = vpop.eup %2723 }
 0x8ce   :  { %v1864_v36 = vpop.f32.mrf.mxu2  ;;  %vm1892_vm11 = vmor %vm1890_vm9, %vm1891_vm8 }
 0x8cf   :  { %v1887_v2 = vsub.f32 1.0, %v1886_v20  ;;  %v1912_v44 = vsel %vm1911_vm7, %v2720_v3, %v1908_v22  ;;  %v2131_v36 = vsel %vm2130_vm2, 1, %v4447_v42 }
 0x8d0   :  { %v1917_v63 = vsel %vm1914_vm10, %v1916_v56, %v1912_v44  ;;  %2133 = vperm.xlu1 %2629, %v2131_v36   ;;  %v4454_v56 = vld [vmem:[#allocation26_spill] sm:$0xff] }
 0x8d1   :  { %v1888_v23 = vmul.f32 %v2722_v61, %v1887_v2  ;;  %v1920_v60 = vmul.f32 %v1917_v63, %v4092_v46  ;;  %v4453_v2 = vld [vmem:[#allocation51_spill] sm:$0xff] }
 0x8d2   :  { %v346_v10 = vadd.f32 %v4453_v2, %v4452_v52 }
 0x8d3   :  { %v1889_v6 = vadd.f32 %v2722_v61, %v1888_v23 }
 0x8d5   :  { %v1893_v41 = vsel %vm1892_vm11, %v2722_v61, %v1889_v6  ;;  %v4455_v6 = vld [vmem:[#allocation52_spill] sm:$0xff] }
 0x8d6   :  { %v1898_v53 = vsel %vm1895_vm12, %v1897_v27, %v1893_v41  ;;  %v375_v27 = vadd.f32 %v4455_v6, %v4454_v56 }
 0x8d7   :  { %v1921_v1 = vmul.f32 %v2724_v48, %v1898_v53 }
 0x8d9   :  { %v4167_v8 = vadd.f32 %v1921_v1, %v1920_v60 }
 0x8db   :  { %v1923_v13 = vpack.c.bf16 %v4167_v8, %v4167_v8 }
 0x8dd   :  { %1932 = vmatmul.bf16.vlgmr.msrb.gmra.mxu0 %v1923_v13  ;;  %1992 = vmatmul.bf16.vlgmr.msrb.gmra.mxu2 %v1923_v13 }
 0x8ed   :  { %2018 = vmatmul.bf16.vlgmr.msra.gmra.mxu0 %v1923_v13 }
 0x95a   :  { %v1933_v21 = vpop.f32.mrf.mxu0 }
 0x95b   :  { %v1937_v33 = vadd.f32 %v1933_v21, %v1879_v47  ;;  %v4451_v47 = vld [vmem:[#allocation48_spill] sm:$0xff] }
 0x95c   :  { %v317_v49 = vadd.f32 %v4451_v47, %v4450_v37  ;;  %v2134_v47 = vpop.permute.xlu1 %2133 }
 0x95d   :  { %v2530_v26 = vmul.f32 -1.442695, %v1937_v33 }
 0x95f   :  { %2725 = vpow2.f32 %v2530_v26 }
 0x960   :  { %v1993_v30 = vpop.f32.mrf.mxu2 }
 0x962   :  { %v1935_v19 = vpop.f32.mrf.mxu0 }
 0x965   :  { %v2726_v12 = vpop.eup %2725 }
 0x966   :  { %v1941_v11 = vadd.f32 1.0, %v2726_v12 }
 0x968   :  { %2727 = vrcp.f32 %v1941_v11  ;;  %v1995_v57 = vpop.f32.mrf.mxu2  ;;  %v1953_v24 = vand.u32 2147483648, %v1941_v11  ;;  %v1951_v55 = vand.u32 2147483647, %v1941_v11  ;;  %vm1947_vm14 = vweird.f32 %v1941_v11 }
 0x96a   :  { %v2019_v46 = vpop.f32.mrf.mxu0  ;;  %v1954_v29 = vor.u32 1.1754944e-38, %v1953_v24  ;;  %vm1952_vm0 = vcmp.eq.f32.partialorder %v1951_v55, 8.507059e+37 }
 0x96e   :  { %v2728_v0 = vpop.eup %2727 }
 0x96f   :  { %v1943_v25 = vmul.f32 %v2728_v0, %v1941_v11  ;;  %vm1948_vm13 = vweird.f32 %v2728_v0 }
 0x970   :  { %vm1949_vm15 = vmor %vm1947_vm14, %vm1948_vm13 }
 0x971   :  { %v1944_v15 = vsub.f32 1.0, %v1943_v25 }
 0x972   :  { %v2021_v17 = vpop.f32.mrf.mxu0 }
 0x973   :  { %v1945_v40 = vmul.f32 %v2728_v0, %v1944_v15 }
 0x975   :  { %v1946_v5 = vadd.f32 %v2728_v0, %v1945_v40 }
 0x977   :  { %v1950_v35 = vsel %vm1949_vm15, %v2728_v0, %v1946_v5  ;;  %vm2135_vm15 = vcmp.eq.s32.totalorder %v2134_v47, 1 }
 0x978   :  { %v1955_v62 = vsel %vm1952_vm0, %v1954_v29, %v1950_v35 }
 0x979   :  { %v1957_v54 = vmul.f32 %v1955_v62, %v4167_v8 }
 0x97b   :  { %v4173_v43 = vsel %vm1963_vm1, %v1957_v54, %v4125_v39  ;;  %v1970_v38 = vpack.c.bf16 %v1957_v54, %v1957_v54 }
 0x97d   :  { %1979 = vmatmul.bf16.vlgmr.msrb.gmra.mxu1 %v1970_v38  ;;  %2005 = vmatmul.bf16.vlgmr.msrb.gmra.mxu3 %v1970_v38 }
 0x97e   :  { %2046 = vmatmul.bf16.vlgmr.msra.gmra.mxu2 %v1970_v38 }
 0x98d   :  { %2033 = vmatmul.bf16.vlgmr.msra.gmra.mxu1 %v1970_v38 }
 0x9fa   :  { %v1980_v14 = vpop.f32.mrf.mxu1 }
 0x9fb   :  { %v1994_v50 = vadd.f32 %v1993_v30, %v1980_v14 }
 0x9fd   :  { %v2023_v3 = vadd.f32 %v1994_v50, %v288_v58 }
 0x9ff   :  { %v2531_v4 = vmul.f32 -1.442695, %v2023_v3 }
 0xa00   :  { %v2006_v34 = vpop.f32.mrf.mxu3 }
 0xa01   :  { %2729 = vpow2.f32 %v2531_v4  ;;  %v2020_v59 = vadd.f32 %v2019_v46, %v2006_v34  ;;  %v2047_v39 = vpop.f32.mrf.mxu2 }
 0xa02   :  { %v1982_v61 = vpop.f32.mrf.mxu1  ;;  %v2052_v28 = vadd.f32 %v2047_v39, %v375_v27 }
 0xa03   :  { %v2024_v7 = vadd.f32 %v2020_v59, %v317_v49 }
 0xa05   :  { %v2532_v9 = vmul.f32 -1.442695, %v2024_v7 }
 0xa07   :  { %v2730_v20 = vpop.eup %2729  ;;  %2731 = vpow2.f32 %v2532_v9 }
 0xa08   :  { %v2056_v22 = vadd.f32 1.0, %v2730_v20  ;;  %v2008_v32 = vpop.f32.mrf.mxu3 }
 0xa09   :  { %v2049_v18 = vpop.f32.mrf.mxu2 }
 0xa0a   :  { %2733 = vrcp.f32 %v2056_v22  ;;  %v2034_v23 = vpop.f32.mrf.mxu1  ;;  %v2068_v42 = vand.u32 2147483648, %v2056_v22  ;;  %v2066_v13 = vand.u32 2147483647, %v2056_v22  ;;  %vm2062_vm4 = vweird.f32 %v2056_v22 }
 0xa0b   :  { %v2051_v31 = vadd.f32 %v2034_v23, %v346_v10 }
 0xa0c   :  { %v2069_v30 = vor.u32 1.1754944e-38, %v2068_v42  ;;  %vm2067_vm6 = vcmp.eq.f32.partialorder %v2066_v13, 8.507059e+37 }
 0xa0d   :  { %v2732_v44 = vpop.eup %2731 }
 0xa0e   :  { %v2075_v63 = vadd.f32 1.0, %v2732_v44 }
 0xa10   :  { %v2734_v41 = vpop.eup %2733  ;;  %2735 = vrcp.f32 %v2075_v63  ;;  %v2087_v57 = vand.u32 2147483648, %v2075_v63  ;;  %v2085_v25 = vand.u32 2147483647, %v2075_v63  ;;  %vm2081_vm8 = vweird.f32 %v2075_v63 }
 0xa11   :  { %v2058_v48 = vmul.f32 %v2734_v41, %v2056_v22  ;;  %2737 = vtanh.f32 %v2052_v28  ;;  %vm2063_vm3 = vweird.f32 %v2734_v41 }
 0xa12   :  { %v2036_v53 = vpop.f32.mrf.mxu1  ;;  %vm2064_vm5 = vmor %vm2062_vm4, %vm2063_vm3  ;;  %v2088_v24 = vor.u32 1.1754944e-38, %v2087_v57  ;;  %vm2086_vm10 = vcmp.eq.f32.partialorder %v2085_v25, 8.507059e+37 }
 0xa13   :  { %v2059_v60 = vsub.f32 1.0, %v2058_v48 }
 0xa15   :  { %v2060_v1 = vmul.f32 %v2734_v41, %v2059_v60 }
 0xa16   :  { %v2736_v21 = vpop.eup %2735 }
 0xa17   :  { %v2077_v33 = vmul.f32 %v2736_v21, %v2075_v63  ;;  %v2061_v26 = vadd.f32 %v2734_v41, %v2060_v1  ;;  %v2738_v11 = vpop.eup %2737  ;;  %vm2082_vm7 = vweird.f32 %v2736_v21 }
 0xa18   :  { %vm2083_vm9 = vmor %vm2081_vm8, %vm2082_vm7 }
 0xa19   :  { %v2078_v19 = vsub.f32 1.0, %v2077_v33  ;;  %v2065_v12 = vsel %vm2064_vm5, %v2734_v41, %v2061_v26 }
 0xa1a   :  { %v2070_v46 = vsel %vm2067_vm6, %v2069_v30, %v2065_v12 }
 0xa1b   :  { %v2079_v0 = vmul.f32 %v2736_v21, %v2078_v19  ;;  %v2093_v15 = vmul.f32 %v2738_v11, %v2070_v46 }
 0xa1d   :  { %v2080_v17 = vadd.f32 %v2736_v21, %v2079_v0 }
 0xa1f   :  { %v2084_v40 = vsel %vm2083_vm9, %v2736_v21, %v2080_v17 }
 0xa20   :  { %v2089_v55 = vsel %vm2086_vm10, %v2088_v24, %v2084_v40 }
 0xa21   :  { %v2092_v45 = vmul.f32 %v2089_v55, %v4167_v8 }
 0xa23   :  { %v2094_v5 = vadd.f32 %v2093_v15, %v2092_v45 }
 0xa25   :  { %v2095_v29 = vpack.c.bf16 %v2094_v5, %v2094_v5 }
 0xa27   :  { %2104 = vmatmul.bf16.vlgmr.msra.gmra.mxu3 %v2095_v29 }
 0xaaa   :  { %v2105_v35 = vpop.f32.mrf.mxu3 }
 0xaab   :  { %v2109_v62 = vadd.f32 %v2105_v35, %v2051_v31 }
 0xaad   :  { %v2533_v54 = vmul.f32 -1.442695, %v2109_v62 }
 0xaaf   :  { %2739 = vpow2.f32 %v2533_v54 }
 0xab2   :  { %v2107_v38 = vpop.f32.mrf.mxu3 }
 0xab5   :  { %v2740_v14 = vpop.eup %2739 }
 0xab6   :  { %v2113_v51 = vadd.f32 1.0, %v2740_v14 }
 0xab8   :  { %2741 = vrcp.f32 %v2113_v51  ;;  %v2125_v3 = vand.u32 2147483648, %v2113_v51  ;;  %v2123_v34 = vand.u32 2147483647, %v2113_v51  ;;  %vm2119_vm12 = vweird.f32 %v2113_v51 }
 0xaba   :  { %v2126_v8 = vor.u32 1.1754944e-38, %v2125_v3  ;;  %vm2124_vm14 = vcmp.eq.f32.partialorder %v2123_v34, 8.507059e+37 }
 0xabe   :  { %v2742_v16 = vpop.eup %2741 }
 0xabf   :  { %v2115_v58 = vmul.f32 %v2742_v16, %v2113_v51  ;;  %vm2120_vm11 = vweird.f32 %v2742_v16 }
 0xac0   :  { %vm2121_vm13 = vmor %vm2119_vm12, %vm2120_vm11 }
 0xac1   :  { %v2116_v50 = vsub.f32 1.0, %v2115_v58 }
 0xac3   :  { %v2117_v4 = vmul.f32 %v2742_v16, %v2116_v50 }
 0xac5   :  { %v2118_v37 = vadd.f32 %v2742_v16, %v2117_v4 }
 0xac7   :  { %v2122_v49 = vsel %vm2121_vm13, %v2742_v16, %v2118_v37 }
 0xac8   :  { %v2127_v59 = vsel %vm2124_vm14, %v2126_v8, %v2122_v49 }
 0xac9   :  { %v2129_v39 = vmul.f32 %v2127_v59, %v2094_v5 }
 0xacb   :  { %v2136_v61 = vsel %vm2135_vm15, %v2129_v39, %v4173_v43 }
 0xacc   :  { %2137 = vst [vmem:[%s4197_s7] sm:$0xff] %v2136_v61 }

</bundles_post_ra>
